<compile_context>
chip_gen: v7x
topology: tpu7x:2x2x1
jax: 0.10.0
libtpu: 0.0.40
codegen_flags: <defaults>
</compile_context>

<pallas_src>
import jax
import jax.numpy as jnp
from jax import lax
from jax.experimental import pallas as pl
from jax.experimental.pallas import tpu as pltpu


def _round_up(x, m):
    return ((x + m - 1) // m) * m


def _pad_gates(w, h, hp):
    """Pad the last axis (4*h, PyTorch gate order i,f,g,o) per-gate to 4*hp."""
    lead = w.shape[:-1]
    w = w.reshape(lead + (4, h))
    w = jnp.pad(w, [(0, 0)] * len(lead) + [(0, 0), (0, hp - h)])
    return w.reshape(lead + (4 * hp,))


def _pick_batch_block(B, T, Hp, E):
    """Batch rows per grid step: multiple of 8, VMEM-budgeted, <= 256."""
    budget = 12 * 1024 * 1024                      # gx scratch + x tile budget
    per_row = T * (8 * Hp * 4 + 2 * E)             # f32 gates + bf16 x, per row
    bb = max(8, budget // max(per_row, 1))
    bb = (bb // 8) * 8
    bb = min(bb, 256, _round_up(B, 8))
    return max(bb, 8)


def _bilstm_head_kernel(x_ref,        # (T*Bb, E)   bf16, rows = t*Bb + batch
                        wih_ref,      # (E, 8*Hp)   bf16  [fwd gates | bwd gates]
                        whh_f_ref,    # (Hp, 4*Hp)  bf16
                        whh_b_ref,    # (Hp, 4*Hp)  bf16
                        bg_ref,       # (1, 8*Hp)   f32   (b_ih+b_hh, both dirs)
                        wlin_ref,     # (Hp, Lp)    bf16
                        blin_ref,     # (1, Lp)     f32   (-1e30 in padded cols)
                        out_ref,      # (Bb, Lp)    f32   softmax probabilities
                        gx_ref):      # scratch (T*Bb, 8*Hp) f32
    TB = x_ref.shape[0]
    Hp = whh_f_ref.shape[0]
    Bb = out_ref.shape[0]
    T = TB // Bb

    # ---- Phase 1: time-parallel input projection (out of the serial chain).
    # One MXU matmul covering both directions and all four gates; the bias
    # broadcast happens exactly once here.
    gx_ref[...] = (
        jnp.dot(x_ref[...], wih_ref[...], preferred_element_type=jnp.float32)
        + bg_ref[...])

    # ---- Phase 2: merged forward/backward recurrence (f32 state).
    h0 = jnp.zeros((Bb, Hp), jnp.float32)
    c0 = jnp.zeros((Bb, Hp), jnp.float32)

    def lstm_update(g, c):
        i = jax.nn.sigmoid(g[:, 0 * Hp:1 * Hp])
        f = jax.nn.sigmoid(g[:, 1 * Hp:2 * Hp])
        gg = jnp.tanh(g[:, 2 * Hp:3 * Hp])
        o = jax.nn.sigmoid(g[:, 3 * Hp:4 * Hp])
        c_new = f * c + i * gg
        h_new = o * jnp.tanh(c_new)
        return h_new, c_new

    def step(t, carry):
        h_f, c_f, h_b, c_b = carry
        row_f = pl.multiple_of(t * Bb, Bb)
        row_b = pl.multiple_of((T - 1 - t) * Bb, Bb)
        gx_f = gx_ref[pl.ds(row_f, Bb), 0:4 * Hp]
        gx_b = gx_ref[pl.ds(row_b, Bb), 4 * Hp:8 * Hp]
        hh_f = jnp.dot(h_f.astype(jnp.bfloat16), whh_f_ref[...],
                       preferred_element_type=jnp.float32)
        hh_b = jnp.dot(h_b.astype(jnp.bfloat16), whh_b_ref[...],
                       preferred_element_type=jnp.float32)
        h_f, c_f = lstm_update(gx_f + hh_f, c_f)
        h_b, c_b = lstm_update(gx_b + hh_b, c_b)
        return h_f, c_f, h_b, c_b

    h_f, _, h_b, _ = lax.fori_loop(0, T, step, (h0, c0, h0, c0),
                                   unroll=min(T, 8))

    # ---- Head: return_type='one' (sum of final hidden states), Linear, Softmax.
    feat = (h_f + h_b).astype(jnp.bfloat16)                       # (Bb, Hp)
    logits = (jnp.dot(feat, wlin_ref[...],
                      preferred_element_type=jnp.float32) + blin_ref[...])
    m = jnp.max(logits, axis=1, keepdims=True)
    e = jnp.exp(logits - m)
    denom = jnp.sum(e, axis=1, keepdims=True)
    out_ref[...] = e * pl.reciprocal(denom, approx=True)


def bilstm_classification_forward(token_ids, params, labels=None):
    """JAX glue (gather into kernel layout, zero-padding) + Pallas hot path."""
    B, T = token_ids.shape
    E = params["wih_f"].shape[0]
    H = params["whh_f"].shape[0]
    L = params["wlin"].shape[1]

    Hp = _round_up(H, 128)                  # lane-aligned gate slices
    Lp = _round_up(max(L, 1), 128)          # lane-dense output
    Bb = _pick_batch_block(B, T, Hp, E)     # batch rows per grid step
    B_pad = _round_up(B, Bb)
    NB = B_pad // Bb

    # Embedding gather straight into the kernel layout (NB, T*Bb, E), bf16.
    ids = jnp.pad(token_ids.T, ((0, 0), (0, B_pad - B)))          # (T, B_pad)
    ids = ids.reshape(T, NB, Bb).transpose(1, 0, 2)               # (NB, T, Bb)
    emb = params["embedding"].astype(jnp.bfloat16)
    x = jnp.take(emb, ids, axis=0).reshape(NB, T * Bb, E)         # (NB, T*Bb, E)

    # Weights padded per-gate to Hp / Lp; matmul operands in bf16.
    wih = jnp.concatenate([_pad_gates(params["wih_f"], H, Hp),
                           _pad_gates(params["wih_b"], H, Hp)],
                          axis=1).astype(jnp.bfloat16)            # (E, 8Hp)
    whh_f = jnp.pad(_pad_gates(params["whh_f"], H, Hp),
                    ((0, Hp - H), (0, 0))).astype(jnp.bfloat16)   # (Hp, 4Hp)
    whh_b = jnp.pad(_pad_gates(params["whh_b"], H, Hp),
                    ((0, Hp - H), (0, 0))).astype(jnp.bfloat16)   # (Hp, 4Hp)
    b_gates = jnp.concatenate([_pad_gates(params["b_f"], H, Hp),
                               _pad_gates(params["b_b"], H, Hp)],
                              axis=1).astype(jnp.float32)         # (1, 8Hp)
    wlin = jnp.pad(params["wlin"],
                   ((0, Hp - H), (0, Lp - L))).astype(jnp.bfloat16)   # (Hp, Lp)
    blin = jnp.pad(params["blin"], ((0, 0), (0, Lp - L)),
                   constant_values=-1e30).astype(jnp.float32)     # (1, Lp)

    grid_spec = pltpu.PrefetchScalarGridSpec(
        num_scalar_prefetch=0,
        grid=(NB,),
        in_specs=[
            pl.BlockSpec((None, T * Bb, E), lambda b: (b, 0, 0)),   # x
            pl.BlockSpec((E, 8 * Hp), lambda b: (0, 0)),            # wih
            pl.BlockSpec((Hp, 4 * Hp), lambda b: (0, 0)),           # whh_f
            pl.BlockSpec((Hp, 4 * Hp), lambda b: (0, 0)),           # whh_b
            pl.BlockSpec((1, 8 * Hp), lambda b: (0, 0)),            # b_gates
            pl.BlockSpec((Hp, Lp), lambda b: (0, 0)),               # wlin
            pl.BlockSpec((1, Lp), lambda b: (0, 0)),                # blin
        ],
        out_specs=pl.BlockSpec((Bb, Lp), lambda b: (b, 0)),
        scratch_shapes=[pltpu.VMEM((T * Bb, 8 * Hp), jnp.float32)],
    )

    probs_full = pl.pallas_call(
        _bilstm_head_kernel,
        out_shape=jax.ShapeDtypeStruct((B_pad, Lp), jnp.float32),
        grid_spec=grid_spec,
        compiler_params=pltpu.CompilerParams(
            dimension_semantics=("parallel",)),
    )(x, wih, whh_f, whh_b, b_gates, wlin, blin)

    probs = probs_full[:B, :L]

    if labels is not None:
        loss = jnp.mean((probs - labels) ** 2)   # torch.nn.MSELoss
        return probs, loss
    return probs, None


def init_params(key, vocab_size, embedding_dim, hidden_dim, label_num):
    """Deterministic synthetic parameters (PyTorch-like uniform init)."""
    ks = jax.random.split(key, 12)
    k = 1.0 / jnp.sqrt(hidden_dim)

    def u(key_, shape):
        return jax.random.uniform(key_, shape, jnp.float32, -k, k)

    return {
        "embedding": jax.random.normal(ks[0], (vocab_size, embedding_dim),
                                       jnp.float32),
        # forward direction (weights stored pre-transposed: (in, 4H))
        "wih_f": u(ks[1], (embedding_dim, 4 * hidden_dim)),
        "whh_f": u(ks[2], (hidden_dim, 4 * hidden_dim)),
        "b_f": u(ks[3], (1, 4 * hidden_dim)) + u(ks[4], (1, 4 * hidden_dim)),
        # backward direction
        "wih_b": u(ks[5], (embedding_dim, 4 * hidden_dim)),
        "whh_b": u(ks[6], (hidden_dim, 4 * hidden_dim)),
        "b_b": u(ks[7], (1, 4 * hidden_dim)) + u(ks[8], (1, 4 * hidden_dim)),
        # classifier head: Linear(hidden_dim, label_num)
        "wlin": u(ks[9], (hidden_dim, label_num)),
        "blin": u(ks[10], (1, label_num)),
    }


def _reference_forward(token_ids, params):
    """Pure-JAX f32 reference of the module forward (for validation)."""
    H = params["whh_f"].shape[0]
    x = jnp.take(params["embedding"], token_ids, axis=0)       # (B, T, E)
    xt = jnp.transpose(x, (1, 0, 2))                           # (T, B, E)
    B = x.shape[0]

    def run(x_seq, wih, whh, b):
        def cell(carry, x_t):
            h, c = carry
            g = x_t @ wih + h @ whh + b
            i = jax.nn.sigmoid(g[:, 0 * H:1 * H])
            f = jax.nn.sigmoid(g[:, 1 * H:2 * H])
            gg = jnp.tanh(g[:, 2 * H:3 * H])
            o = jax.nn.sigmoid(g[:, 3 * H:4 * H])
            c = f * c + i * gg
            h = o * jnp.tanh(c)
            return (h, c), None
        (h, _), _ = lax.scan(cell, (jnp.zeros((B, H)), jnp.zeros((B, H))),
                             x_seq)
        return h

    h_f = run(xt, params["wih_f"], params["whh_f"], params["b_f"])
    h_b = run(xt[::-1], params["wih_b"], params["whh_b"], params["b_b"])
    logits = (h_f + h_b) @ params["wlin"] + params["blin"]
    return jax.nn.softmax(logits, axis=1)


if __name__ == "__main__":
    # Small shapes consistent with the module's forward.
    B, T = 2, 8               # batch, sequence length
    V, E = 50, 32             # vocab_size, embedding_dim
    H, L = 32, 8              # hidden_dim, label_num

    key = jax.random.PRNGKey(0)
    k_params, k_tok = jax.random.split(key)

    params = init_params(k_params, V, E, H, L)
    token_ids = jax.random.randint(k_tok, (B, T), 0, V, dtype=jnp.int32)

    fwd = jax.jit(bilstm_classification_forward)
    probs, loss = fwd(token_ids, params)
    probs = jax.block_until_ready(probs)

    assert probs.shape == (B, L)
    # Softmax rows sum to 1 (approx reciprocal -> relaxed tolerance).
    assert bool(jnp.all(jnp.abs(jnp.sum(probs, axis=1) - 1.0) < 5e-3))
    # Match the pure-JAX f32 reference within bf16-matmul tolerance.
    ref = _reference_forward(token_ids, params)
    assert bool(jnp.all(jnp.abs(probs - ref) < 5e-2))
    print("KERNEL_OK")
</pallas_src>

<mosaic_0001>
module attributes {stable_mosaic.version = 11 : i64} {
  func.func @_bilstm_head_kernel(%arg0: i32, %arg1: memref<1x64x32xbf16, #tpu.memory_space<vmem>>, %arg2: memref<32x1024xbf16, #tpu.memory_space<vmem>>, %arg3: memref<128x512xbf16, #tpu.memory_space<vmem>>, %arg4: memref<128x512xbf16, #tpu.memory_space<vmem>>, %arg5: memref<1x1024xf32, #tpu.memory_space<vmem>>, %arg6: memref<128x128xbf16, #tpu.memory_space<vmem>>, %arg7: memref<1x128xf32, #tpu.memory_space<vmem>>, %arg8: memref<8x128xf32, #tpu.memory_space<vmem>>, %arg9: memref<64x1024xf32, #tpu.memory_space<vmem>>) attributes {dimension_semantics = [#tpu.dimension_semantics<parallel>], iteration_bounds = array<i64: 1>, scalar_prefetch = 0 : i64, scratch_operands = 1 : i64, tpu.core_type = #tpu.core_type<tc>, window_params = [{transform_indices = @transform_0, window_bounds = array<i64: 1, 64, 32>}, {pipeline_mode = #tpu.pipeline_mode<synchronous>, transform_indices = @transform_1, window_bounds = array<i64: 32, 1024>}, {pipeline_mode = #tpu.pipeline_mode<synchronous>, transform_indices = @transform_2, window_bounds = array<i64: 128, 512>}, {pipeline_mode = #tpu.pipeline_mode<synchronous>, transform_indices = @transform_3, window_bounds = array<i64: 128, 512>}, {pipeline_mode = #tpu.pipeline_mode<synchronous>, transform_indices = @transform_4, window_bounds = array<i64: 1, 1024>}, {pipeline_mode = #tpu.pipeline_mode<synchronous>, transform_indices = @transform_5, window_bounds = array<i64: 128, 128>}, {pipeline_mode = #tpu.pipeline_mode<synchronous>, transform_indices = @transform_6, window_bounds = array<i64: 1, 128>}, {transform_indices = @transform_7, window_bounds = array<i64: 8, 128>}]} {
    %c0 = arith.constant 0 : index
    %c0_0 = arith.constant 0 : index
    %c0_1 = arith.constant 0 : index
    %0 = vector.load %arg1[%c0, %c0_0, %c0_1] : memref<1x64x32xbf16, #tpu.memory_space<vmem>>, vector<1x64x32xbf16>
    %1 = vector.shape_cast %0 : vector<1x64x32xbf16> to vector<64x32xbf16>
    %c0_2 = arith.constant 0 : index
    %c0_3 = arith.constant 0 : index
    %2 = vector.load %arg2[%c0_2, %c0_3] : memref<32x1024xbf16, #tpu.memory_space<vmem>>, vector<32x1024xbf16>
    %cst = arith.constant dense<0.000000e+00> : vector<64x1024xf32>
    %3 = tpu.matmul %1, %2, %cst {dimension_numbers = #tpu.dot_dimension_numbers<[1], [0], [0], [1], [0, 0, 1, 1], [], []>} : vector<64x32xbf16>, vector<32x1024xbf16>, vector<64x1024xf32> -> vector<64x1024xf32>
    %c0_4 = arith.constant 0 : index
    %c0_5 = arith.constant 0 : index
    %4 = vector.load %arg5[%c0_4, %c0_5] : memref<1x1024xf32, #tpu.memory_space<vmem>>, vector<1x1024xf32>
    %5 = vector.broadcast %4 : vector<1x1024xf32> to vector<64x1024xf32>
    %6 = arith.addf %3, %5 : vector<64x1024xf32>
    %c0_6 = arith.constant 0 : index
    %c0_7 = arith.constant 0 : index
    %7 = vector.load %arg9[%c0_6, %c0_7] : memref<64x1024xf32, #tpu.memory_space<vmem>>, vector<64x1024xf32>
    tpu.vector_store %arg9[%c0_6, %c0_7], %6 {strides = array<i32>} : memref<64x1024xf32, #tpu.memory_space<vmem>>, vector<64x1024xf32>,
    %cst_8 = arith.constant 0.000000e+00 : f32
    %8 = vector.broadcast %cst_8 : f32 to vector<8x128xf32>
    %cst_9 = arith.constant 0.000000e+00 : f32
    %9 = vector.broadcast %cst_9 : f32 to vector<8x128xf32>
    %c0_i32 = arith.constant 0 : i32
    %c8_i32 = arith.constant 8 : i32
    %10 = arith.muli %c0_i32, %c8_i32 : i32
    %11 = tpu.assume_multiple %10, 8 : i32
    %c7_i32 = arith.constant 7 : i32
    %12 = arith.subi %c7_i32, %c0_i32 : i32
    %c8_i32_10 = arith.constant 8 : i32
    %13 = arith.muli %12, %c8_i32_10 : i32
    %14 = tpu.assume_multiple %13, 8 : i32
    %15 = arith.index_cast %11 : i32 to index
    %c0_11 = arith.constant 0 : index
    %16 = vector.load %arg9[%15, %c0_11] : memref<64x1024xf32, #tpu.memory_space<vmem>>, vector<8x512xf32>
    %17 = arith.index_cast %14 : i32 to index
    %c512 = arith.constant 512 : index
    %18 = vector.load %arg9[%17, %c512] : memref<64x1024xf32, #tpu.memory_space<vmem>>, vector<8x512xf32>
    %19 = arith.truncf %8 : vector<8x128xf32> to vector<8x128xbf16>
    %c0_12 = arith.constant 0 : index
    %c0_13 = arith.constant 0 : index
    %20 = vector.load %arg3[%c0_12, %c0_13] : memref<128x512xbf16, #tpu.memory_space<vmem>>, vector<128x512xbf16>
    %cst_14 = arith.constant dense<0.000000e+00> : vector<8x512xf32>
    %21 = tpu.matmul %19, %20, %cst_14 {dimension_numbers = #tpu.dot_dimension_numbers<[1], [0], [0], [1], [0, 0, 1, 1], [], []>} : vector<8x128xbf16>, vector<128x512xbf16>, vector<8x512xf32> -> vector<8x512xf32>
    %22 = arith.truncf %8 : vector<8x128xf32> to vector<8x128xbf16>
    %c0_15 = arith.constant 0 : index
    %c0_16 = arith.constant 0 : index
    %23 = vector.load %arg4[%c0_15, %c0_16] : memref<128x512xbf16, #tpu.memory_space<vmem>>, vector<128x512xbf16>
    %cst_17 = arith.constant dense<0.000000e+00> : vector<8x512xf32>
    %24 = tpu.matmul %22, %23, %cst_17 {dimension_numbers = #tpu.dot_dimension_numbers<[1], [0], [0], [1], [0, 0, 1, 1], [], []>} : vector<8x128xbf16>, vector<128x512xbf16>, vector<8x512xf32> -> vector<8x512xf32>
    %25 = arith.addf %16, %21 : vector<8x512xf32>
    %26 = vector.extract_strided_slice %25 {offsets = [0, 0], sizes = [8, 128], strides = [1, 1]} : vector<8x512xf32> to vector<8x128xf32>
    %27 = arith.negf %26 : vector<8x128xf32>
    %28 = math.exp %27 : vector<8x128xf32>
    %cst_18 = arith.constant 1.000000e+00 : f32
    %29 = vector.broadcast %cst_18 : f32 to vector<8x128xf32>
    %30 = arith.addf %29, %28 : vector<8x128xf32>
    %31 = arith.divf %29, %30 : vector<8x128xf32>
    %32 = vector.extract_strided_slice %25 {offsets = [0, 128], sizes = [8, 128], strides = [1, 1]} : vector<8x512xf32> to vector<8x128xf32>
    %33 = arith.negf %32 : vector<8x128xf32>
    %34 = math.exp %33 : vector<8x128xf32>
    %cst_19 = arith.constant 1.000000e+00 : f32
    %35 = vector.broadcast %cst_19 : f32 to vector<8x128xf32>
    %36 = arith.addf %35, %34 : vector<8x128xf32>
    %37 = arith.divf %35, %36 : vector<8x128xf32>
    %38 = vector.extract_strided_slice %25 {offsets = [0, 256], sizes = [8, 128], strides = [1, 1]} : vector<8x512xf32> to vector<8x128xf32>
    %39 = math.tanh %38 : vector<8x128xf32>
    %40 = vector.extract_strided_slice %25 {offsets = [0, 384], sizes = [8, 128], strides = [1, 1]} : vector<8x512xf32> to vector<8x128xf32>
    %41 = arith.negf %40 : vector<8x128xf32>
    %42 = math.exp %41 : vector<8x128xf32>
    %cst_20 = arith.constant 1.000000e+00 : f32
    %43 = vector.broadcast %cst_20 : f32 to vector<8x128xf32>
    %44 = arith.addf %43, %42 : vector<8x128xf32>
    %45 = arith.divf %43, %44 : vector<8x128xf32>
    %46 = arith.mulf %37, %9 : vector<8x128xf32>
    %47 = arith.mulf %31, %39 : vector<8x128xf32>
    %48 = arith.addf %46, %47 : vector<8x128xf32>
    %49 = math.tanh %48 : vector<8x128xf32>
    %50 = arith.mulf %45, %49 : vector<8x128xf32>
    %51 = arith.addf %18, %24 : vector<8x512xf32>
    %52 = vector.extract_strided_slice %51 {offsets = [0, 0], sizes = [8, 128], strides = [1, 1]} : vector<8x512xf32> to vector<8x128xf32>
    %53 = arith.negf %52 : vector<8x128xf32>
    %54 = math.exp %53 : vector<8x128xf32>
    %cst_21 = arith.constant 1.000000e+00 : f32
    %55 = vector.broadcast %cst_21 : f32 to vector<8x128xf32>
    %56 = arith.addf %55, %54 : vector<8x128xf32>
    %57 = arith.divf %55, %56 : vector<8x128xf32>
    %58 = vector.extract_strided_slice %51 {offsets = [0, 128], sizes = [8, 128], strides = [1, 1]} : vector<8x512xf32> to vector<8x128xf32>
    %59 = arith.negf %58 : vector<8x128xf32>
    %60 = math.exp %59 : vector<8x128xf32>
    %cst_22 = arith.constant 1.000000e+00 : f32
    %61 = vector.broadcast %cst_22 : f32 to vector<8x128xf32>
    %62 = arith.addf %61, %60 : vector<8x128xf32>
    %63 = arith.divf %61, %62 : vector<8x128xf32>
    %64 = vector.extract_strided_slice %51 {offsets = [0, 256], sizes = [8, 128], strides = [1, 1]} : vector<8x512xf32> to vector<8x128xf32>
    %65 = math.tanh %64 : vector<8x128xf32>
    %66 = vector.extract_strided_slice %51 {offsets = [0, 384], sizes = [8, 128], strides = [1, 1]} : vector<8x512xf32> to vector<8x128xf32>
    %67 = arith.negf %66 : vector<8x128xf32>
    %68 = math.exp %67 : vector<8x128xf32>
    %cst_23 = arith.constant 1.000000e+00 : f32
    %69 = vector.broadcast %cst_23 : f32 to vector<8x128xf32>
    %70 = arith.addf %69, %68 : vector<8x128xf32>
    %71 = arith.divf %69, %70 : vector<8x128xf32>
    %72 = arith.mulf %63, %9 : vector<8x128xf32>
    %73 = arith.mulf %57, %65 : vector<8x128xf32>
    %74 = arith.addf %72, %73 : vector<8x128xf32>
    %75 = math.tanh %74 : vector<8x128xf32>
    %76 = arith.mulf %71, %75 : vector<8x128xf32>
    %c1_i32 = arith.constant 1 : i32
    %c8_i32_24 = arith.constant 8 : i32
    %77 = arith.muli %c1_i32, %c8_i32_24 : i32
    %78 = tpu.assume_multiple %77, 8 : i32
    %c7_i32_25 = arith.constant 7 : i32
    %79 = arith.subi %c7_i32_25, %c1_i32 : i32
    %c8_i32_26 = arith.constant 8 : i32
    %80 = arith.muli %79, %c8_i32_26 : i32
    %81 = tpu.assume_multiple %80, 8 : i32
    %82 = arith.index_cast %78 : i32 to index
    %c0_27 = arith.constant 0 : index
    %83 = vector.load %arg9[%82, %c0_27] : memref<64x1024xf32, #tpu.memory_space<vmem>>, vector<8x512xf32>
    %84 = arith.index_cast %81 : i32 to index
    %c512_28 = arith.constant 512 : index
    %85 = vector.load %arg9[%84, %c512_28] : memref<64x1024xf32, #tpu.memory_space<vmem>>, vector<8x512xf32>
    %86 = arith.truncf %50 : vector<8x128xf32> to vector<8x128xbf16>
    %c0_29 = arith.constant 0 : index
    %c0_30 = arith.constant 0 : index
    %87 = vector.load %arg3[%c0_29, %c0_30] : memref<128x512xbf16, #tpu.memory_space<vmem>>, vector<128x512xbf16>
    %cst_31 = arith.constant dense<0.000000e+00> : vector<8x512xf32>
    %88 = tpu.matmul %86, %87, %cst_31 {dimension_numbers = #tpu.dot_dimension_numbers<[1], [0], [0], [1], [0, 0, 1, 1], [], []>} : vector<8x128xbf16>, vector<128x512xbf16>, vector<8x512xf32> -> vector<8x512xf32>
    %89 = arith.truncf %76 : vector<8x128xf32> to vector<8x128xbf16>
    %c0_32 = arith.constant 0 : index
    %c0_33 = arith.constant 0 : index
    %90 = vector.load %arg4[%c0_32, %c0_33] : memref<128x512xbf16, #tpu.memory_space<vmem>>, vector<128x512xbf16>
    %cst_34 = arith.constant dense<0.000000e+00> : vector<8x512xf32>
    %91 = tpu.matmul %89, %90, %cst_34 {dimension_numbers = #tpu.dot_dimension_numbers<[1], [0], [0], [1], [0, 0, 1, 1], [], []>} : vector<8x128xbf16>, vector<128x512xbf16>, vector<8x512xf32> -> vector<8x512xf32>
    %92 = arith.addf %83, %88 : vector<8x512xf32>
    %93 = vector.extract_strided_slice %92 {offsets = [0, 0], sizes = [8, 128], strides = [1, 1]} : vector<8x512xf32> to vector<8x128xf32>
    %94 = arith.negf %93 : vector<8x128xf32>
    %95 = math.exp %94 : vector<8x128xf32>
    %cst_35 = arith.constant 1.000000e+00 : f32
    %96 = vector.broadcast %cst_35 : f32 to vector<8x128xf32>
    %97 = arith.addf %96, %95 : vector<8x128xf32>
    %98 = arith.divf %96, %97 : vector<8x128xf32>
    %99 = vector.extract_strided_slice %92 {offsets = [0, 128], sizes = [8, 128], strides = [1, 1]} : vector<8x512xf32> to vector<8x128xf32>
    %100 = arith.negf %99 : vector<8x128xf32>
    %101 = math.exp %100 : vector<8x128xf32>
    %cst_36 = arith.constant 1.000000e+00 : f32
    %102 = vector.broadcast %cst_36 : f32 to vector<8x128xf32>
    %103 = arith.addf %102, %101 : vector<8x128xf32>
    %104 = arith.divf %102, %103 : vector<8x128xf32>
    %105 = vector.extract_strided_slice %92 {offsets = [0, 256], sizes = [8, 128], strides = [1, 1]} : vector<8x512xf32> to vector<8x128xf32>
    %106 = math.tanh %105 : vector<8x128xf32>
    %107 = vector.extract_strided_slice %92 {offsets = [0, 384], sizes = [8, 128], strides = [1, 1]} : vector<8x512xf32> to vector<8x128xf32>
    %108 = arith.negf %107 : vector<8x128xf32>
    %109 = math.exp %108 : vector<8x128xf32>
    %cst_37 = arith.constant 1.000000e+00 : f32
    %110 = vector.broadcast %cst_37 : f32 to vector<8x128xf32>
    %111 = arith.addf %110, %109 : vector<8x128xf32>
    %112 = arith.divf %110, %111 : vector<8x128xf32>
    %113 = arith.mulf %104, %48 : vector<8x128xf32>
    %114 = arith.mulf %98, %106 : vector<8x128xf32>
    %115 = arith.addf %113, %114 : vector<8x128xf32>
    %116 = math.tanh %115 : vector<8x128xf32>
    %117 = arith.mulf %112, %116 : vector<8x128xf32>
    %118 = arith.addf %85, %91 : vector<8x512xf32>
    %119 = vector.extract_strided_slice %118 {offsets = [0, 0], sizes = [8, 128], strides = [1, 1]} : vector<8x512xf32> to vector<8x128xf32>
    %120 = arith.negf %119 : vector<8x128xf32>
    %121 = math.exp %120 : vector<8x128xf32>
    %cst_38 = arith.constant 1.000000e+00 : f32
    %122 = vector.broadcast %cst_38 : f32 to vector<8x128xf32>
    %123 = arith.addf %122, %121 : vector<8x128xf32>
    %124 = arith.divf %122, %123 : vector<8x128xf32>
    %125 = vector.extract_strided_slice %118 {offsets = [0, 128], sizes = [8, 128], strides = [1, 1]} : vector<8x512xf32> to vector<8x128xf32>
    %126 = arith.negf %125 : vector<8x128xf32>
    %127 = math.exp %126 : vector<8x128xf32>
    %cst_39 = arith.constant 1.000000e+00 : f32
    %128 = vector.broadcast %cst_39 : f32 to vector<8x128xf32>
    %129 = arith.addf %128, %127 : vector<8x128xf32>
    %130 = arith.divf %128, %129 : vector<8x128xf32>
    %131 = vector.extract_strided_slice %118 {offsets = [0, 256], sizes = [8, 128], strides = [1, 1]} : vector<8x512xf32> to vector<8x128xf32>
    %132 = math.tanh %131 : vector<8x128xf32>
    %133 = vector.extract_strided_slice %118 {offsets = [0, 384], sizes = [8, 128], strides = [1, 1]} : vector<8x512xf32> to vector<8x128xf32>
    %134 = arith.negf %133 : vector<8x128xf32>
    %135 = math.exp %134 : vector<8x128xf32>
    %cst_40 = arith.constant 1.000000e+00 : f32
    %136 = vector.broadcast %cst_40 : f32 to vector<8x128xf32>
    %137 = arith.addf %136, %135 : vector<8x128xf32>
    %138 = arith.divf %136, %137 : vector<8x128xf32>
    %139 = arith.mulf %130, %74 : vector<8x128xf32>
    %140 = arith.mulf %124, %132 : vector<8x128xf32>
    %141 = arith.addf %139, %140 : vector<8x128xf32>
    %142 = math.tanh %141 : vector<8x128xf32>
    %143 = arith.mulf %138, %142 : vector<8x128xf32>
    %c2_i32 = arith.constant 2 : i32
    %c8_i32_41 = arith.constant 8 : i32
    %144 = arith.muli %c2_i32, %c8_i32_41 : i32
    %145 = tpu.assume_multiple %144, 8 : i32
    %c7_i32_42 = arith.constant 7 : i32
    %146 = arith.subi %c7_i32_42, %c2_i32 : i32
    %c8_i32_43 = arith.constant 8 : i32
    %147 = arith.muli %146, %c8_i32_43 : i32
    %148 = tpu.assume_multiple %147, 8 : i32
    %149 = arith.index_cast %145 : i32 to index
    %c0_44 = arith.constant 0 : index
    %150 = vector.load %arg9[%149, %c0_44] : memref<64x1024xf32, #tpu.memory_space<vmem>>, vector<8x512xf32>
    %151 = arith.index_cast %148 : i32 to index
    %c512_45 = arith.constant 512 : index
    %152 = vector.load %arg9[%151, %c512_45] : memref<64x1024xf32, #tpu.memory_space<vmem>>, vector<8x512xf32>
    %153 = arith.truncf %117 : vector<8x128xf32> to vector<8x128xbf16>
    %c0_46 = arith.constant 0 : index
    %c0_47 = arith.constant 0 : index
    %154 = vector.load %arg3[%c0_46, %c0_47] : memref<128x512xbf16, #tpu.memory_space<vmem>>, vector<128x512xbf16>
    %cst_48 = arith.constant dense<0.000000e+00> : vector<8x512xf32>
    %155 = tpu.matmul %153, %154, %cst_48 {dimension_numbers = #tpu.dot_dimension_numbers<[1], [0], [0], [1], [0, 0, 1, 1], [], []>} : vector<8x128xbf16>, vector<128x512xbf16>, vector<8x512xf32> -> vector<8x512xf32>
    %156 = arith.truncf %143 : vector<8x128xf32> to vector<8x128xbf16>
    %c0_49 = arith.constant 0 : index
    %c0_50 = arith.constant 0 : index
    %157 = vector.load %arg4[%c0_49, %c0_50] : memref<128x512xbf16, #tpu.memory_space<vmem>>, vector<128x512xbf16>
    %cst_51 = arith.constant dense<0.000000e+00> : vector<8x512xf32>
    %158 = tpu.matmul %156, %157, %cst_51 {dimension_numbers = #tpu.dot_dimension_numbers<[1], [0], [0], [1], [0, 0, 1, 1], [], []>} : vector<8x128xbf16>, vector<128x512xbf16>, vector<8x512xf32> -> vector<8x512xf32>
    %159 = arith.addf %150, %155 : vector<8x512xf32>
    %160 = vector.extract_strided_slice %159 {offsets = [0, 0], sizes = [8, 128], strides = [1, 1]} : vector<8x512xf32> to vector<8x128xf32>
    %161 = arith.negf %160 : vector<8x128xf32>
    %162 = math.exp %161 : vector<8x128xf32>
    %cst_52 = arith.constant 1.000000e+00 : f32
    %163 = vector.broadcast %cst_52 : f32 to vector<8x128xf32>
    %164 = arith.addf %163, %162 : vector<8x128xf32>
    %165 = arith.divf %163, %164 : vector<8x128xf32>
    %166 = vector.extract_strided_slice %159 {offsets = [0, 128], sizes = [8, 128], strides = [1, 1]} : vector<8x512xf32> to vector<8x128xf32>
    %167 = arith.negf %166 : vector<8x128xf32>
    %168 = math.exp %167 : vector<8x128xf32>
    %cst_53 = arith.constant 1.000000e+00 : f32
    %169 = vector.broadcast %cst_53 : f32 to vector<8x128xf32>
    %170 = arith.addf %169, %168 : vector<8x128xf32>
    %171 = arith.divf %169, %170 : vector<8x128xf32>
    %172 = vector.extract_strided_slice %159 {offsets = [0, 256], sizes = [8, 128], strides = [1, 1]} : vector<8x512xf32> to vector<8x128xf32>
    %173 = math.tanh %172 : vector<8x128xf32>
    %174 = vector.extract_strided_slice %159 {offsets = [0, 384], sizes = [8, 128], strides = [1, 1]} : vector<8x512xf32> to vector<8x128xf32>
    %175 = arith.negf %174 : vector<8x128xf32>
    %176 = math.exp %175 : vector<8x128xf32>
    %cst_54 = arith.constant 1.000000e+00 : f32
    %177 = vector.broadcast %cst_54 : f32 to vector<8x128xf32>
    %178 = arith.addf %177, %176 : vector<8x128xf32>
    %179 = arith.divf %177, %178 : vector<8x128xf32>
    %180 = arith.mulf %171, %115 : vector<8x128xf32>
    %181 = arith.mulf %165, %173 : vector<8x128xf32>
    %182 = arith.addf %180, %181 : vector<8x128xf32>
    %183 = math.tanh %182 : vector<8x128xf32>
    %184 = arith.mulf %179, %183 : vector<8x128xf32>
    %185 = arith.addf %152, %158 : vector<8x512xf32>
    %186 = vector.extract_strided_slice %185 {offsets = [0, 0], sizes = [8, 128], strides = [1, 1]} : vector<8x512xf32> to vector<8x128xf32>
    %187 = arith.negf %186 : vector<8x128xf32>
    %188 = math.exp %187 : vector<8x128xf32>
    %cst_55 = arith.constant 1.000000e+00 : f32
    %189 = vector.broadcast %cst_55 : f32 to vector<8x128xf32>
    %190 = arith.addf %189, %188 : vector<8x128xf32>
    %191 = arith.divf %189, %190 : vector<8x128xf32>
    %192 = vector.extract_strided_slice %185 {offsets = [0, 128], sizes = [8, 128], strides = [1, 1]} : vector<8x512xf32> to vector<8x128xf32>
    %193 = arith.negf %192 : vector<8x128xf32>
    %194 = math.exp %193 : vector<8x128xf32>
    %cst_56 = arith.constant 1.000000e+00 : f32
    %195 = vector.broadcast %cst_56 : f32 to vector<8x128xf32>
    %196 = arith.addf %195, %194 : vector<8x128xf32>
    %197 = arith.divf %195, %196 : vector<8x128xf32>
    %198 = vector.extract_strided_slice %185 {offsets = [0, 256], sizes = [8, 128], strides = [1, 1]} : vector<8x512xf32> to vector<8x128xf32>
    %199 = math.tanh %198 : vector<8x128xf32>
    %200 = vector.extract_strided_slice %185 {offsets = [0, 384], sizes = [8, 128], strides = [1, 1]} : vector<8x512xf32> to vector<8x128xf32>
    %201 = arith.negf %200 : vector<8x128xf32>
    %202 = math.exp %201 : vector<8x128xf32>
    %cst_57 = arith.constant 1.000000e+00 : f32
    %203 = vector.broadcast %cst_57 : f32 to vector<8x128xf32>
    %204 = arith.addf %203, %202 : vector<8x128xf32>
    %205 = arith.divf %203, %204 : vector<8x128xf32>
    %206 = arith.mulf %197, %141 : vector<8x128xf32>
    %207 = arith.mulf %191, %199 : vector<8x128xf32>
    %208 = arith.addf %206, %207 : vector<8x128xf32>
    %209 = math.tanh %208 : vector<8x128xf32>
    %210 = arith.mulf %205, %209 : vector<8x128xf32>
    %c3_i32 = arith.constant 3 : i32
    %c8_i32_58 = arith.constant 8 : i32
    %211 = arith.muli %c3_i32, %c8_i32_58 : i32
    %212 = tpu.assume_multiple %211, 8 : i32
    %c7_i32_59 = arith.constant 7 : i32
    %213 = arith.subi %c7_i32_59, %c3_i32 : i32
    %c8_i32_60 = arith.constant 8 : i32
    %214 = arith.muli %213, %c8_i32_60 : i32
    %215 = tpu.assume_multiple %214, 8 : i32
    %216 = arith.index_cast %212 : i32 to index
    %c0_61 = arith.constant 0 : index
    %217 = vector.load %arg9[%216, %c0_61] : memref<64x1024xf32, #tpu.memory_space<vmem>>, vector<8x512xf32>
    %218 = arith.index_cast %215 : i32 to index
    %c512_62 = arith.constant 512 : index
    %219 = vector.load %arg9[%218, %c512_62] : memref<64x1024xf32, #tpu.memory_space<vmem>>, vector<8x512xf32>
    %220 = arith.truncf %184 : vector<8x128xf32> to vector<8x128xbf16>
    %c0_63 = arith.constant 0 : index
    %c0_64 = arith.constant 0 : index
    %221 = vector.load %arg3[%c0_63, %c0_64] : memref<128x512xbf16, #tpu.memory_space<vmem>>, vector<128x512xbf16>
    %cst_65 = arith.constant dense<0.000000e+00> : vector<8x512xf32>
    %222 = tpu.matmul %220, %221, %cst_65 {dimension_numbers = #tpu.dot_dimension_numbers<[1], [0], [0], [1], [0, 0, 1, 1], [], []>} : vector<8x128xbf16>, vector<128x512xbf16>, vector<8x512xf32> -> vector<8x512xf32>
    %223 = arith.truncf %210 : vector<8x128xf32> to vector<8x128xbf16>
    %c0_66 = arith.constant 0 : index
    %c0_67 = arith.constant 0 : index
    %224 = vector.load %arg4[%c0_66, %c0_67] : memref<128x512xbf16, #tpu.memory_space<vmem>>, vector<128x512xbf16>
    %cst_68 = arith.constant dense<0.000000e+00> : vector<8x512xf32>
    %225 = tpu.matmul %223, %224, %cst_68 {dimension_numbers = #tpu.dot_dimension_numbers<[1], [0], [0], [1], [0, 0, 1, 1], [], []>} : vector<8x128xbf16>, vector<128x512xbf16>, vector<8x512xf32> -> vector<8x512xf32>
    %226 = arith.addf %217, %222 : vector<8x512xf32>
    %227 = vector.extract_strided_slice %226 {offsets = [0, 0], sizes = [8, 128], strides = [1, 1]} : vector<8x512xf32> to vector<8x128xf32>
    %228 = arith.negf %227 : vector<8x128xf32>
    %229 = math.exp %228 : vector<8x128xf32>
    %cst_69 = arith.constant 1.000000e+00 : f32
    %230 = vector.broadcast %cst_69 : f32 to vector<8x128xf32>
    %231 = arith.addf %230, %229 : vector<8x128xf32>
    %232 = arith.divf %230, %231 : vector<8x128xf32>
    %233 = vector.extract_strided_slice %226 {offsets = [0, 128], sizes = [8, 128], strides = [1, 1]} : vector<8x512xf32> to vector<8x128xf32>
    %234 = arith.negf %233 : vector<8x128xf32>
    %235 = math.exp %234 : vector<8x128xf32>
    %cst_70 = arith.constant 1.000000e+00 : f32
    %236 = vector.broadcast %cst_70 : f32 to vector<8x128xf32>
    %237 = arith.addf %236, %235 : vector<8x128xf32>
    %238 = arith.divf %236, %237 : vector<8x128xf32>
    %239 = vector.extract_strided_slice %226 {offsets = [0, 256], sizes = [8, 128], strides = [1, 1]} : vector<8x512xf32> to vector<8x128xf32>
    %240 = math.tanh %239 : vector<8x128xf32>
    %241 = vector.extract_strided_slice %226 {offsets = [0, 384], sizes = [8, 128], strides = [1, 1]} : vector<8x512xf32> to vector<8x128xf32>
    %242 = arith.negf %241 : vector<8x128xf32>
    %243 = math.exp %242 : vector<8x128xf32>
    %cst_71 = arith.constant 1.000000e+00 : f32
    %244 = vector.broadcast %cst_71 : f32 to vector<8x128xf32>
    %245 = arith.addf %244, %243 : vector<8x128xf32>
    %246 = arith.divf %244, %245 : vector<8x128xf32>
    %247 = arith.mulf %238, %182 : vector<8x128xf32>
    %248 = arith.mulf %232, %240 : vector<8x128xf32>
    %249 = arith.addf %247, %248 : vector<8x128xf32>
    %250 = math.tanh %249 : vector<8x128xf32>
    %251 = arith.mulf %246, %250 : vector<8x128xf32>
    %252 = arith.addf %219, %225 : vector<8x512xf32>
    %253 = vector.extract_strided_slice %252 {offsets = [0, 0], sizes = [8, 128], strides = [1, 1]} : vector<8x512xf32> to vector<8x128xf32>
    %254 = arith.negf %253 : vector<8x128xf32>
    %255 = math.exp %254 : vector<8x128xf32>
    %cst_72 = arith.constant 1.000000e+00 : f32
    %256 = vector.broadcast %cst_72 : f32 to vector<8x128xf32>
    %257 = arith.addf %256, %255 : vector<8x128xf32>
    %258 = arith.divf %256, %257 : vector<8x128xf32>
    %259 = vector.extract_strided_slice %252 {offsets = [0, 128], sizes = [8, 128], strides = [1, 1]} : vector<8x512xf32> to vector<8x128xf32>
    %260 = arith.negf %259 : vector<8x128xf32>
    %261 = math.exp %260 : vector<8x128xf32>
    %cst_73 = arith.constant 1.000000e+00 : f32
    %262 = vector.broadcast %cst_73 : f32 to vector<8x128xf32>
    %263 = arith.addf %262, %261 : vector<8x128xf32>
    %264 = arith.divf %262, %263 : vector<8x128xf32>
    %265 = vector.extract_strided_slice %252 {offsets = [0, 256], sizes = [8, 128], strides = [1, 1]} : vector<8x512xf32> to vector<8x128xf32>
    %266 = math.tanh %265 : vector<8x128xf32>
    %267 = vector.extract_strided_slice %252 {offsets = [0, 384], sizes = [8, 128], strides = [1, 1]} : vector<8x512xf32> to vector<8x128xf32>
    %268 = arith.negf %267 : vector<8x128xf32>
    %269 = math.exp %268 : vector<8x128xf32>
    %cst_74 = arith.constant 1.000000e+00 : f32
    %270 = vector.broadcast %cst_74 : f32 to vector<8x128xf32>
    %271 = arith.addf %270, %269 : vector<8x128xf32>
    %272 = arith.divf %270, %271 : vector<8x128xf32>
    %273 = arith.mulf %264, %208 : vector<8x128xf32>
    %274 = arith.mulf %258, %266 : vector<8x128xf32>
    %275 = arith.addf %273, %274 : vector<8x128xf32>
    %276 = math.tanh %275 : vector<8x128xf32>
    %277 = arith.mulf %272, %276 : vector<8x128xf32>
    %c4_i32 = arith.constant 4 : i32
    %c8_i32_75 = arith.constant 8 : i32
    %278 = arith.muli %c4_i32, %c8_i32_75 : i32
    %279 = tpu.assume_multiple %278, 8 : i32
    %c7_i32_76 = arith.constant 7 : i32
    %280 = arith.subi %c7_i32_76, %c4_i32 : i32
    %c8_i32_77 = arith.constant 8 : i32
    %281 = arith.muli %280, %c8_i32_77 : i32
    %282 = tpu.assume_multiple %281, 8 : i32
    %283 = arith.index_cast %279 : i32 to index
    %c0_78 = arith.constant 0 : index
    %284 = vector.load %arg9[%283, %c0_78] : memref<64x1024xf32, #tpu.memory_space<vmem>>, vector<8x512xf32>
    %285 = arith.index_cast %282 : i32 to index
    %c512_79 = arith.constant 512 : index
    %286 = vector.load %arg9[%285, %c512_79] : memref<64x1024xf32, #tpu.memory_space<vmem>>, vector<8x512xf32>
    %287 = arith.truncf %251 : vector<8x128xf32> to vector<8x128xbf16>
    %c0_80 = arith.constant 0 : index
    %c0_81 = arith.constant 0 : index
    %288 = vector.load %arg3[%c0_80, %c0_81] : memref<128x512xbf16, #tpu.memory_space<vmem>>, vector<128x512xbf16>
    %cst_82 = arith.constant dense<0.000000e+00> : vector<8x512xf32>
    %289 = tpu.matmul %287, %288, %cst_82 {dimension_numbers = #tpu.dot_dimension_numbers<[1], [0], [0], [1], [0, 0, 1, 1], [], []>} : vector<8x128xbf16>, vector<128x512xbf16>, vector<8x512xf32> -> vector<8x512xf32>
    %290 = arith.truncf %277 : vector<8x128xf32> to vector<8x128xbf16>
    %c0_83 = arith.constant 0 : index
    %c0_84 = arith.constant 0 : index
    %291 = vector.load %arg4[%c0_83, %c0_84] : memref<128x512xbf16, #tpu.memory_space<vmem>>, vector<128x512xbf16>
    %cst_85 = arith.constant dense<0.000000e+00> : vector<8x512xf32>
    %292 = tpu.matmul %290, %291, %cst_85 {dimension_numbers = #tpu.dot_dimension_numbers<[1], [0], [0], [1], [0, 0, 1, 1], [], []>} : vector<8x128xbf16>, vector<128x512xbf16>, vector<8x512xf32> -> vector<8x512xf32>
    %293 = arith.addf %284, %289 : vector<8x512xf32>
    %294 = vector.extract_strided_slice %293 {offsets = [0, 0], sizes = [8, 128], strides = [1, 1]} : vector<8x512xf32> to vector<8x128xf32>
    %295 = arith.negf %294 : vector<8x128xf32>
    %296 = math.exp %295 : vector<8x128xf32>
    %cst_86 = arith.constant 1.000000e+00 : f32
    %297 = vector.broadcast %cst_86 : f32 to vector<8x128xf32>
    %298 = arith.addf %297, %296 : vector<8x128xf32>
    %299 = arith.divf %297, %298 : vector<8x128xf32>
    %300 = vector.extract_strided_slice %293 {offsets = [0, 128], sizes = [8, 128], strides = [1, 1]} : vector<8x512xf32> to vector<8x128xf32>
    %301 = arith.negf %300 : vector<8x128xf32>
    %302 = math.exp %301 : vector<8x128xf32>
    %cst_87 = arith.constant 1.000000e+00 : f32
    %303 = vector.broadcast %cst_87 : f32 to vector<8x128xf32>
    %304 = arith.addf %303, %302 : vector<8x128xf32>
    %305 = arith.divf %303, %304 : vector<8x128xf32>
    %306 = vector.extract_strided_slice %293 {offsets = [0, 256], sizes = [8, 128], strides = [1, 1]} : vector<8x512xf32> to vector<8x128xf32>
    %307 = math.tanh %306 : vector<8x128xf32>
    %308 = vector.extract_strided_slice %293 {offsets = [0, 384], sizes = [8, 128], strides = [1, 1]} : vector<8x512xf32> to vector<8x128xf32>
    %309 = arith.negf %308 : vector<8x128xf32>
    %310 = math.exp %309 : vector<8x128xf32>
    %cst_88 = arith.constant 1.000000e+00 : f32
    %311 = vector.broadcast %cst_88 : f32 to vector<8x128xf32>
    %312 = arith.addf %311, %310 : vector<8x128xf32>
    %313 = arith.divf %311, %312 : vector<8x128xf32>
    %314 = arith.mulf %305, %249 : vector<8x128xf32>
    %315 = arith.mulf %299, %307 : vector<8x128xf32>
    %316 = arith.addf %314, %315 : vector<8x128xf32>
    %317 = math.tanh %316 : vector<8x128xf32>
    %318 = arith.mulf %313, %317 : vector<8x128xf32>
    %319 = arith.addf %286, %292 : vector<8x512xf32>
    %320 = vector.extract_strided_slice %319 {offsets = [0, 0], sizes = [8, 128], strides = [1, 1]} : vector<8x512xf32> to vector<8x128xf32>
    %321 = arith.negf %320 : vector<8x128xf32>
    %322 = math.exp %321 : vector<8x128xf32>
    %cst_89 = arith.constant 1.000000e+00 : f32
    %323 = vector.broadcast %cst_89 : f32 to vector<8x128xf32>
    %324 = arith.addf %323, %322 : vector<8x128xf32>
    %325 = arith.divf %323, %324 : vector<8x128xf32>
    %326 = vector.extract_strided_slice %319 {offsets = [0, 128], sizes = [8, 128], strides = [1, 1]} : vector<8x512xf32> to vector<8x128xf32>
    %327 = arith.negf %326 : vector<8x128xf32>
    %328 = math.exp %327 : vector<8x128xf32>
    %cst_90 = arith.constant 1.000000e+00 : f32
    %329 = vector.broadcast %cst_90 : f32 to vector<8x128xf32>
    %330 = arith.addf %329, %328 : vector<8x128xf32>
    %331 = arith.divf %329, %330 : vector<8x128xf32>
    %332 = vector.extract_strided_slice %319 {offsets = [0, 256], sizes = [8, 128], strides = [1, 1]} : vector<8x512xf32> to vector<8x128xf32>
    %333 = math.tanh %332 : vector<8x128xf32>
    %334 = vector.extract_strided_slice %319 {offsets = [0, 384], sizes = [8, 128], strides = [1, 1]} : vector<8x512xf32> to vector<8x128xf32>
    %335 = arith.negf %334 : vector<8x128xf32>
    %336 = math.exp %335 : vector<8x128xf32>
    %cst_91 = arith.constant 1.000000e+00 : f32
    %337 = vector.broadcast %cst_91 : f32 to vector<8x128xf32>
    %338 = arith.addf %337, %336 : vector<8x128xf32>
    %339 = arith.divf %337, %338 : vector<8x128xf32>
    %340 = arith.mulf %331, %275 : vector<8x128xf32>
    %341 = arith.mulf %325, %333 : vector<8x128xf32>
    %342 = arith.addf %340, %341 : vector<8x128xf32>
    %343 = math.tanh %342 : vector<8x128xf32>
    %344 = arith.mulf %339, %343 : vector<8x128xf32>
    %c5_i32 = arith.constant 5 : i32
    %c8_i32_92 = arith.constant 8 : i32
    %345 = arith.muli %c5_i32, %c8_i32_92 : i32
    %346 = tpu.assume_multiple %345, 8 : i32
    %c7_i32_93 = arith.constant 7 : i32
    %347 = arith.subi %c7_i32_93, %c5_i32 : i32
    %c8_i32_94 = arith.constant 8 : i32
    %348 = arith.muli %347, %c8_i32_94 : i32
    %349 = tpu.assume_multiple %348, 8 : i32
    %350 = arith.index_cast %346 : i32 to index
    %c0_95 = arith.constant 0 : index
    %351 = vector.load %arg9[%350, %c0_95] : memref<64x1024xf32, #tpu.memory_space<vmem>>, vector<8x512xf32>
    %352 = arith.index_cast %349 : i32 to index
    %c512_96 = arith.constant 512 : index
    %353 = vector.load %arg9[%352, %c512_96] : memref<64x1024xf32, #tpu.memory_space<vmem>>, vector<8x512xf32>
    %354 = arith.truncf %318 : vector<8x128xf32> to vector<8x128xbf16>
    %c0_97 = arith.constant 0 : index
    %c0_98 = arith.constant 0 : index
    %355 = vector.load %arg3[%c0_97, %c0_98] : memref<128x512xbf16, #tpu.memory_space<vmem>>, vector<128x512xbf16>
    %cst_99 = arith.constant dense<0.000000e+00> : vector<8x512xf32>
    %356 = tpu.matmul %354, %355, %cst_99 {dimension_numbers = #tpu.dot_dimension_numbers<[1], [0], [0], [1], [0, 0, 1, 1], [], []>} : vector<8x128xbf16>, vector<128x512xbf16>, vector<8x512xf32> -> vector<8x512xf32>
    %357 = arith.truncf %344 : vector<8x128xf32> to vector<8x128xbf16>
    %c0_100 = arith.constant 0 : index
    %c0_101 = arith.constant 0 : index
    %358 = vector.load %arg4[%c0_100, %c0_101] : memref<128x512xbf16, #tpu.memory_space<vmem>>, vector<128x512xbf16>
    %cst_102 = arith.constant dense<0.000000e+00> : vector<8x512xf32>
    %359 = tpu.matmul %357, %358, %cst_102 {dimension_numbers = #tpu.dot_dimension_numbers<[1], [0], [0], [1], [0, 0, 1, 1], [], []>} : vector<8x128xbf16>, vector<128x512xbf16>, vector<8x512xf32> -> vector<8x512xf32>
    %360 = arith.addf %351, %356 : vector<8x512xf32>
    %361 = vector.extract_strided_slice %360 {offsets = [0, 0], sizes = [8, 128], strides = [1, 1]} : vector<8x512xf32> to vector<8x128xf32>
    %362 = arith.negf %361 : vector<8x128xf32>
    %363 = math.exp %362 : vector<8x128xf32>
    %cst_103 = arith.constant 1.000000e+00 : f32
    %364 = vector.broadcast %cst_103 : f32 to vector<8x128xf32>
    %365 = arith.addf %364, %363 : vector<8x128xf32>
    %366 = arith.divf %364, %365 : vector<8x128xf32>
    %367 = vector.extract_strided_slice %360 {offsets = [0, 128], sizes = [8, 128], strides = [1, 1]} : vector<8x512xf32> to vector<8x128xf32>
    %368 = arith.negf %367 : vector<8x128xf32>
    %369 = math.exp %368 : vector<8x128xf32>
    %cst_104 = arith.constant 1.000000e+00 : f32
    %370 = vector.broadcast %cst_104 : f32 to vector<8x128xf32>
    %371 = arith.addf %370, %369 : vector<8x128xf32>
    %372 = arith.divf %370, %371 : vector<8x128xf32>
    %373 = vector.extract_strided_slice %360 {offsets = [0, 256], sizes = [8, 128], strides = [1, 1]} : vector<8x512xf32> to vector<8x128xf32>
    %374 = math.tanh %373 : vector<8x128xf32>
    %375 = vector.extract_strided_slice %360 {offsets = [0, 384], sizes = [8, 128], strides = [1, 1]} : vector<8x512xf32> to vector<8x128xf32>
    %376 = arith.negf %375 : vector<8x128xf32>
    %377 = math.exp %376 : vector<8x128xf32>
    %cst_105 = arith.constant 1.000000e+00 : f32
    %378 = vector.broadcast %cst_105 : f32 to vector<8x128xf32>
    %379 = arith.addf %378, %377 : vector<8x128xf32>
    %380 = arith.divf %378, %379 : vector<8x128xf32>
    %381 = arith.mulf %372, %316 : vector<8x128xf32>
    %382 = arith.mulf %366, %374 : vector<8x128xf32>
    %383 = arith.addf %381, %382 : vector<8x128xf32>
    %384 = math.tanh %383 : vector<8x128xf32>
    %385 = arith.mulf %380, %384 : vector<8x128xf32>
    %386 = arith.addf %353, %359 : vector<8x512xf32>
    %387 = vector.extract_strided_slice %386 {offsets = [0, 0], sizes = [8, 128], strides = [1, 1]} : vector<8x512xf32> to vector<8x128xf32>
    %388 = arith.negf %387 : vector<8x128xf32>
    %389 = math.exp %388 : vector<8x128xf32>
    %cst_106 = arith.constant 1.000000e+00 : f32
    %390 = vector.broadcast %cst_106 : f32 to vector<8x128xf32>
    %391 = arith.addf %390, %389 : vector<8x128xf32>
    %392 = arith.divf %390, %391 : vector<8x128xf32>
    %393 = vector.extract_strided_slice %386 {offsets = [0, 128], sizes = [8, 128], strides = [1, 1]} : vector<8x512xf32> to vector<8x128xf32>
    %394 = arith.negf %393 : vector<8x128xf32>
    %395 = math.exp %394 : vector<8x128xf32>
    %cst_107 = arith.constant 1.000000e+00 : f32
    %396 = vector.broadcast %cst_107 : f32 to vector<8x128xf32>
    %397 = arith.addf %396, %395 : vector<8x128xf32>
    %398 = arith.divf %396, %397 : vector<8x128xf32>
    %399 = vector.extract_strided_slice %386 {offsets = [0, 256], sizes = [8, 128], strides = [1, 1]} : vector<8x512xf32> to vector<8x128xf32>
    %400 = math.tanh %399 : vector<8x128xf32>
    %401 = vector.extract_strided_slice %386 {offsets = [0, 384], sizes = [8, 128], strides = [1, 1]} : vector<8x512xf32> to vector<8x128xf32>
    %402 = arith.negf %401 : vector<8x128xf32>
    %403 = math.exp %402 : vector<8x128xf32>
    %cst_108 = arith.constant 1.000000e+00 : f32
    %404 = vector.broadcast %cst_108 : f32 to vector<8x128xf32>
    %405 = arith.addf %404, %403 : vector<8x128xf32>
    %406 = arith.divf %404, %405 : vector<8x128xf32>
    %407 = arith.mulf %398, %342 : vector<8x128xf32>
    %408 = arith.mulf %392, %400 : vector<8x128xf32>
    %409 = arith.addf %407, %408 : vector<8x128xf32>
    %410 = math.tanh %409 : vector<8x128xf32>
    %411 = arith.mulf %406, %410 : vector<8x128xf32>
    %c6_i32 = arith.constant 6 : i32
    %c8_i32_109 = arith.constant 8 : i32
    %412 = arith.muli %c6_i32, %c8_i32_109 : i32
    %413 = tpu.assume_multiple %412, 8 : i32
    %c7_i32_110 = arith.constant 7 : i32
    %414 = arith.subi %c7_i32_110, %c6_i32 : i32
    %c8_i32_111 = arith.constant 8 : i32
    %415 = arith.muli %414, %c8_i32_111 : i32
    %416 = tpu.assume_multiple %415, 8 : i32
    %417 = arith.index_cast %413 : i32 to index
    %c0_112 = arith.constant 0 : index
    %418 = vector.load %arg9[%417, %c0_112] : memref<64x1024xf32, #tpu.memory_space<vmem>>, vector<8x512xf32>
    %419 = arith.index_cast %416 : i32 to index
    %c512_113 = arith.constant 512 : index
    %420 = vector.load %arg9[%419, %c512_113] : memref<64x1024xf32, #tpu.memory_space<vmem>>, vector<8x512xf32>
    %421 = arith.truncf %385 : vector<8x128xf32> to vector<8x128xbf16>
    %c0_114 = arith.constant 0 : index
    %c0_115 = arith.constant 0 : index
    %422 = vector.load %arg3[%c0_114, %c0_115] : memref<128x512xbf16, #tpu.memory_space<vmem>>, vector<128x512xbf16>
    %cst_116 = arith.constant dense<0.000000e+00> : vector<8x512xf32>
    %423 = tpu.matmul %421, %422, %cst_116 {dimension_numbers = #tpu.dot_dimension_numbers<[1], [0], [0], [1], [0, 0, 1, 1], [], []>} : vector<8x128xbf16>, vector<128x512xbf16>, vector<8x512xf32> -> vector<8x512xf32>
    %424 = arith.truncf %411 : vector<8x128xf32> to vector<8x128xbf16>
    %c0_117 = arith.constant 0 : index
    %c0_118 = arith.constant 0 : index
    %425 = vector.load %arg4[%c0_117, %c0_118] : memref<128x512xbf16, #tpu.memory_space<vmem>>, vector<128x512xbf16>
    %cst_119 = arith.constant dense<0.000000e+00> : vector<8x512xf32>
    %426 = tpu.matmul %424, %425, %cst_119 {dimension_numbers = #tpu.dot_dimension_numbers<[1], [0], [0], [1], [0, 0, 1, 1], [], []>} : vector<8x128xbf16>, vector<128x512xbf16>, vector<8x512xf32> -> vector<8x512xf32>
    %427 = arith.addf %418, %423 : vector<8x512xf32>
    %428 = vector.extract_strided_slice %427 {offsets = [0, 0], sizes = [8, 128], strides = [1, 1]} : vector<8x512xf32> to vector<8x128xf32>
    %429 = arith.negf %428 : vector<8x128xf32>
    %430 = math.exp %429 : vector<8x128xf32>
    %cst_120 = arith.constant 1.000000e+00 : f32
    %431 = vector.broadcast %cst_120 : f32 to vector<8x128xf32>
    %432 = arith.addf %431, %430 : vector<8x128xf32>
    %433 = arith.divf %431, %432 : vector<8x128xf32>
    %434 = vector.extract_strided_slice %427 {offsets = [0, 128], sizes = [8, 128], strides = [1, 1]} : vector<8x512xf32> to vector<8x128xf32>
    %435 = arith.negf %434 : vector<8x128xf32>
    %436 = math.exp %435 : vector<8x128xf32>
    %cst_121 = arith.constant 1.000000e+00 : f32
    %437 = vector.broadcast %cst_121 : f32 to vector<8x128xf32>
    %438 = arith.addf %437, %436 : vector<8x128xf32>
    %439 = arith.divf %437, %438 : vector<8x128xf32>
    %440 = vector.extract_strided_slice %427 {offsets = [0, 256], sizes = [8, 128], strides = [1, 1]} : vector<8x512xf32> to vector<8x128xf32>
    %441 = math.tanh %440 : vector<8x128xf32>
    %442 = vector.extract_strided_slice %427 {offsets = [0, 384], sizes = [8, 128], strides = [1, 1]} : vector<8x512xf32> to vector<8x128xf32>
    %443 = arith.negf %442 : vector<8x128xf32>
    %444 = math.exp %443 : vector<8x128xf32>
    %cst_122 = arith.constant 1.000000e+00 : f32
    %445 = vector.broadcast %cst_122 : f32 to vector<8x128xf32>
    %446 = arith.addf %445, %444 : vector<8x128xf32>
    %447 = arith.divf %445, %446 : vector<8x128xf32>
    %448 = arith.mulf %439, %383 : vector<8x128xf32>
    %449 = arith.mulf %433, %441 : vector<8x128xf32>
    %450 = arith.addf %448, %449 : vector<8x128xf32>
    %451 = math.tanh %450 : vector<8x128xf32>
    %452 = arith.mulf %447, %451 : vector<8x128xf32>
    %453 = arith.addf %420, %426 : vector<8x512xf32>
    %454 = vector.extract_strided_slice %453 {offsets = [0, 0], sizes = [8, 128], strides = [1, 1]} : vector<8x512xf32> to vector<8x128xf32>
    %455 = arith.negf %454 : vector<8x128xf32>
    %456 = math.exp %455 : vector<8x128xf32>
    %cst_123 = arith.constant 1.000000e+00 : f32
    %457 = vector.broadcast %cst_123 : f32 to vector<8x128xf32>
    %458 = arith.addf %457, %456 : vector<8x128xf32>
    %459 = arith.divf %457, %458 : vector<8x128xf32>
    %460 = vector.extract_strided_slice %453 {offsets = [0, 128], sizes = [8, 128], strides = [1, 1]} : vector<8x512xf32> to vector<8x128xf32>
    %461 = arith.negf %460 : vector<8x128xf32>
    %462 = math.exp %461 : vector<8x128xf32>
    %cst_124 = arith.constant 1.000000e+00 : f32
    %463 = vector.broadcast %cst_124 : f32 to vector<8x128xf32>
    %464 = arith.addf %463, %462 : vector<8x128xf32>
    %465 = arith.divf %463, %464 : vector<8x128xf32>
    %466 = vector.extract_strided_slice %453 {offsets = [0, 256], sizes = [8, 128], strides = [1, 1]} : vector<8x512xf32> to vector<8x128xf32>
    %467 = math.tanh %466 : vector<8x128xf32>
    %468 = vector.extract_strided_slice %453 {offsets = [0, 384], sizes = [8, 128], strides = [1, 1]} : vector<8x512xf32> to vector<8x128xf32>
    %469 = arith.negf %468 : vector<8x128xf32>
    %470 = math.exp %469 : vector<8x128xf32>
    %cst_125 = arith.constant 1.000000e+00 : f32
    %471 = vector.broadcast %cst_125 : f32 to vector<8x128xf32>
    %472 = arith.addf %471, %470 : vector<8x128xf32>
    %473 = arith.divf %471, %472 : vector<8x128xf32>
    %474 = arith.mulf %465, %409 : vector<8x128xf32>
    %475 = arith.mulf %459, %467 : vector<8x128xf32>
    %476 = arith.addf %474, %475 : vector<8x128xf32>
    %477 = math.tanh %476 : vector<8x128xf32>
    %478 = arith.mulf %473, %477 : vector<8x128xf32>
    %c7_i32_126 = arith.constant 7 : i32
    %c8_i32_127 = arith.constant 8 : i32
    %479 = arith.muli %c7_i32_126, %c8_i32_127 : i32
    %480 = tpu.assume_multiple %479, 8 : i32
    %c7_i32_128 = arith.constant 7 : i32
    %481 = arith.subi %c7_i32_128, %c7_i32_126 : i32
    %c8_i32_129 = arith.constant 8 : i32
    %482 = arith.muli %481, %c8_i32_129 : i32
    %483 = tpu.assume_multiple %482, 8 : i32
    %484 = arith.index_cast %480 : i32 to index
    %c0_130 = arith.constant 0 : index
    %485 = vector.load %arg9[%484, %c0_130] : memref<64x1024xf32, #tpu.memory_space<vmem>>, vector<8x512xf32>
    %486 = arith.index_cast %483 : i32 to index
    %c512_131 = arith.constant 512 : index
    %487 = vector.load %arg9[%486, %c512_131] : memref<64x1024xf32, #tpu.memory_space<vmem>>, vector<8x512xf32>
    %488 = arith.truncf %452 : vector<8x128xf32> to vector<8x128xbf16>
    %c0_132 = arith.constant 0 : index
    %c0_133 = arith.constant 0 : index
    %489 = vector.load %arg3[%c0_132, %c0_133] : memref<128x512xbf16, #tpu.memory_space<vmem>>, vector<128x512xbf16>
    %cst_134 = arith.constant dense<0.000000e+00> : vector<8x512xf32>
    %490 = tpu.matmul %488, %489, %cst_134 {dimension_numbers = #tpu.dot_dimension_numbers<[1], [0], [0], [1], [0, 0, 1, 1], [], []>} : vector<8x128xbf16>, vector<128x512xbf16>, vector<8x512xf32> -> vector<8x512xf32>
    %491 = arith.truncf %478 : vector<8x128xf32> to vector<8x128xbf16>
    %c0_135 = arith.constant 0 : index
    %c0_136 = arith.constant 0 : index
    %492 = vector.load %arg4[%c0_135, %c0_136] : memref<128x512xbf16, #tpu.memory_space<vmem>>, vector<128x512xbf16>
    %cst_137 = arith.constant dense<0.000000e+00> : vector<8x512xf32>
    %493 = tpu.matmul %491, %492, %cst_137 {dimension_numbers = #tpu.dot_dimension_numbers<[1], [0], [0], [1], [0, 0, 1, 1], [], []>} : vector<8x128xbf16>, vector<128x512xbf16>, vector<8x512xf32> -> vector<8x512xf32>
    %494 = arith.addf %485, %490 : vector<8x512xf32>
    %495 = vector.extract_strided_slice %494 {offsets = [0, 0], sizes = [8, 128], strides = [1, 1]} : vector<8x512xf32> to vector<8x128xf32>
    %496 = arith.negf %495 : vector<8x128xf32>
    %497 = math.exp %496 : vector<8x128xf32>
    %cst_138 = arith.constant 1.000000e+00 : f32
    %498 = vector.broadcast %cst_138 : f32 to vector<8x128xf32>
    %499 = arith.addf %498, %497 : vector<8x128xf32>
    %500 = arith.divf %498, %499 : vector<8x128xf32>
    %501 = vector.extract_strided_slice %494 {offsets = [0, 128], sizes = [8, 128], strides = [1, 1]} : vector<8x512xf32> to vector<8x128xf32>
    %502 = arith.negf %501 : vector<8x128xf32>
    %503 = math.exp %502 : vector<8x128xf32>
    %cst_139 = arith.constant 1.000000e+00 : f32
    %504 = vector.broadcast %cst_139 : f32 to vector<8x128xf32>
    %505 = arith.addf %504, %503 : vector<8x128xf32>
    %506 = arith.divf %504, %505 : vector<8x128xf32>
    %507 = vector.extract_strided_slice %494 {offsets = [0, 256], sizes = [8, 128], strides = [1, 1]} : vector<8x512xf32> to vector<8x128xf32>
    %508 = math.tanh %507 : vector<8x128xf32>
    %509 = vector.extract_strided_slice %494 {offsets = [0, 384], sizes = [8, 128], strides = [1, 1]} : vector<8x512xf32> to vector<8x128xf32>
    %510 = arith.negf %509 : vector<8x128xf32>
    %511 = math.exp %510 : vector<8x128xf32>
    %cst_140 = arith.constant 1.000000e+00 : f32
    %512 = vector.broadcast %cst_140 : f32 to vector<8x128xf32>
    %513 = arith.addf %512, %511 : vector<8x128xf32>
    %514 = arith.divf %512, %513 : vector<8x128xf32>
    %515 = arith.mulf %506, %450 : vector<8x128xf32>
    %516 = arith.mulf %500, %508 : vector<8x128xf32>
    %517 = arith.addf %515, %516 : vector<8x128xf32>
    %518 = math.tanh %517 : vector<8x128xf32>
    %519 = arith.mulf %514, %518 : vector<8x128xf32>
    %520 = arith.addf %487, %493 : vector<8x512xf32>
    %521 = vector.extract_strided_slice %520 {offsets = [0, 0], sizes = [8, 128], strides = [1, 1]} : vector<8x512xf32> to vector<8x128xf32>
    %522 = arith.negf %521 : vector<8x128xf32>
    %523 = math.exp %522 : vector<8x128xf32>
    %cst_141 = arith.constant 1.000000e+00 : f32
    %524 = vector.broadcast %cst_141 : f32 to vector<8x128xf32>
    %525 = arith.addf %524, %523 : vector<8x128xf32>
    %526 = arith.divf %524, %525 : vector<8x128xf32>
    %527 = vector.extract_strided_slice %520 {offsets = [0, 128], sizes = [8, 128], strides = [1, 1]} : vector<8x512xf32> to vector<8x128xf32>
    %528 = arith.negf %527 : vector<8x128xf32>
    %529 = math.exp %528 : vector<8x128xf32>
    %cst_142 = arith.constant 1.000000e+00 : f32
    %530 = vector.broadcast %cst_142 : f32 to vector<8x128xf32>
    %531 = arith.addf %530, %529 : vector<8x128xf32>
    %532 = arith.divf %530, %531 : vector<8x128xf32>
    %533 = vector.extract_strided_slice %520 {offsets = [0, 256], sizes = [8, 128], strides = [1, 1]} : vector<8x512xf32> to vector<8x128xf32>
    %534 = math.tanh %533 : vector<8x128xf32>
    %535 = vector.extract_strided_slice %520 {offsets = [0, 384], sizes = [8, 128], strides = [1, 1]} : vector<8x512xf32> to vector<8x128xf32>
    %536 = arith.negf %535 : vector<8x128xf32>
    %537 = math.exp %536 : vector<8x128xf32>
    %cst_143 = arith.constant 1.000000e+00 : f32
    %538 = vector.broadcast %cst_143 : f32 to vector<8x128xf32>
    %539 = arith.addf %538, %537 : vector<8x128xf32>
    %540 = arith.divf %538, %539 : vector<8x128xf32>
    %541 = arith.mulf %532, %476 : vector<8x128xf32>
    %542 = arith.mulf %526, %534 : vector<8x128xf32>
    %543 = arith.addf %541, %542 : vector<8x128xf32>
    %544 = math.tanh %543 : vector<8x128xf32>
    %545 = arith.mulf %540, %544 : vector<8x128xf32>
    %c8_i32_144 = arith.constant 8 : i32
    %546 = arith.addf %519, %545 : vector<8x128xf32>
    %547 = arith.truncf %546 : vector<8x128xf32> to vector<8x128xbf16>
    %c0_145 = arith.constant 0 : index
    %c0_146 = arith.constant 0 : index
    %548 = vector.load %arg6[%c0_145, %c0_146] : memref<128x128xbf16, #tpu.memory_space<vmem>>, vector<128x128xbf16>
    %cst_147 = arith.constant dense<0.000000e+00> : vector<8x128xf32>
    %549 = tpu.matmul %547, %548, %cst_147 {dimension_numbers = #tpu.dot_dimension_numbers<[1], [0], [0], [1], [0, 0, 1, 1], [], []>} : vector<8x128xbf16>, vector<128x128xbf16>, vector<8x128xf32> -> vector<8x128xf32>
    %c0_148 = arith.constant 0 : index
    %c0_149 = arith.constant 0 : index
    %550 = vector.load %arg7[%c0_148, %c0_149] : memref<1x128xf32, #tpu.memory_space<vmem>>, vector<1x128xf32>
    %551 = vector.broadcast %550 : vector<1x128xf32> to vector<8x128xf32>
    %552 = arith.addf %549, %551 : vector<8x128xf32>
    %cst_150 = arith.constant dense<0xFF800000> : vector<8xf32>
    %553 = vector.multi_reduction <maximumf>, %552, %cst_150 [1] : vector<8x128xf32> to vector<8xf32>
    %554 = vector.shape_cast %553 : vector<8xf32> to vector<8x1xf32>
    %555 = vector.broadcast %554 : vector<8x1xf32> to vector<8x128xf32>
    %556 = arith.subf %552, %555 : vector<8x128xf32>
    %557 = math.exp %556 : vector<8x128xf32>
    %cst_151 = arith.constant dense<0.000000e+00> : vector<8xf32>
    %558 = vector.multi_reduction <add>, %557, %cst_151 [1] : vector<8x128xf32> to vector<8xf32>
    %559 = vector.shape_cast %558 : vector<8xf32> to vector<8x1xf32>
    %560 = tpu.reciprocal %559 {approx = true} : vector<8x1xf32> -> vector<8x1xf32>
    %561 = vector.broadcast %560 : vector<8x1xf32> to vector<8x128xf32>
    %562 = arith.mulf %557, %561 : vector<8x128xf32>
    %c0_152 = arith.constant 0 : index
    %c0_153 = arith.constant 0 : index
    %563 = vector.load %arg8[%c0_152, %c0_153] : memref<8x128xf32, #tpu.memory_space<vmem>>, vector<8x128xf32>
    tpu.vector_store %arg8[%c0_152, %c0_153], %562 {strides = array<i32>} : memref<8x128xf32, #tpu.memory_space<vmem>>, vector<8x128xf32>,
    return
  }
  func.func @transform_0(%arg0: i32) -> (i32, i32, i32) {
    %c0_i32 = arith.constant 0 : i32
    %c0_i32_0 = arith.constant 0 : i32
    %c0_i32_1 = arith.constant 0 : i32
    return %arg0, %c0_i32, %c0_i32_0 : i32, i32, i32
  }
  func.func @transform_1(%arg0: i32) -> (i32, i32) {
    %c0_i32 = arith.constant 0 : i32
    %c0_i32_0 = arith.constant 0 : i32
    %c0_i32_1 = arith.constant 0 : i32
    return %c0_i32, %c0_i32_0 : i32, i32
  }
  func.func @transform_2(%arg0: i32) -> (i32, i32) {
    %c0_i32 = arith.constant 0 : i32
    %c0_i32_0 = arith.constant 0 : i32
    %c0_i32_1 = arith.constant 0 : i32
    return %c0_i32, %c0_i32_0 : i32, i32
  }
  func.func @transform_3(%arg0: i32) -> (i32, i32) {
    %c0_i32 = arith.constant 0 : i32
    %c0_i32_0 = arith.constant 0 : i32
    %c0_i32_1 = arith.constant 0 : i32
    return %c0_i32, %c0_i32_0 : i32, i32
  }
  func.func @transform_4(%arg0: i32) -> (i32, i32) {
    %c0_i32 = arith.constant 0 : i32
    %c0_i32_0 = arith.constant 0 : i32
    %c0_i32_1 = arith.constant 0 : i32
    return %c0_i32, %c0_i32_0 : i32, i32
  }
  func.func @transform_5(%arg0: i32) -> (i32, i32) {
    %c0_i32 = arith.constant 0 : i32
    %c0_i32_0 = arith.constant 0 : i32
    %c0_i32_1 = arith.constant 0 : i32
    return %c0_i32, %c0_i32_0 : i32, i32
  }
  func.func @transform_6(%arg0: i32) -> (i32, i32) {
    %c0_i32 = arith.constant 0 : i32
    %c0_i32_0 = arith.constant 0 : i32
    %c0_i32_1 = arith.constant 0 : i32
    return %c0_i32, %c0_i32_0 : i32, i32
  }
  func.func @transform_7(%arg0: i32) -> (i32, i32) {
    %c0_i32 = arith.constant 0 : i32
    %c0_i32_0 = arith.constant 0 : i32
    return %arg0, %c0_i32 : i32, i32
  }
}

</mosaic_0001>

<bundles_post_ra>
// kernel: bilstm_classification_forward.1
= control target key start
LH: loop header
LB: loop body
LE: loop exit
PB: predicated region body
PF: predicated region fallthrough
CT: control target
= control target key end

     0   :  { %v5486_v3 = vmov 0   ;;  %vm193_vm0 = vcmask 261120   ;;  %vm3633_vm1 = vmmov 0   ;;  %s5478_s1 = inlined_call_operand.vmem [shape: bf16[32,1024], index: 1, kind: input, shape index: {}]   ;;  %s5479_s0 = inlined_call_operand.vmem [shape: bf16[1,64,32], index: 0, kind: input, shape index: {}]   ;;  %s5480_s2 = inlined_call_operand.vmem [shape: bf16[128,512], index: 2, kind: input, shape index: {}]   ;;  %s5481_s3 = inlined_call_operand.vmem [shape: bf16[128,512], index: 3, kind: input, shape index: {}]   ;;  %s5482_s4 = inlined_call_operand.vmem [shape: f32[1,1024], index: 4, kind: input, shape index: {}]   ;;  %s5483_s5 = inlined_call_operand.vmem [shape: bf16[128,128], index: 5, kind: input, shape index: {}]   ;;  %s5484_s6 = inlined_call_operand.vmem [shape: f32[1,128], index: 6, kind: input, shape index: {}]   ;;  %s5485_s7 = inlined_call_operand.vmem [shape: f32[8,128], index: 7, kind: output, shape index: {}]  }
   0x1   :  { %v35_v0 = vld [vmem:[%s5478_s1] sm:$0xff]  ;;  %238 = vmatprep.mubr.bf16.mxu0 %v5486_v3  ;;  %258 = vmatprep.mubr.bf16.mxu1 %v5486_v3  ;;  %v36_v8 = vld [vmem:[%s5478_s1 + $0x8] sm:$0xff]  ;;  %v37_v11 = vld [vmem:[%s5478_s1 + $0x10] sm:$0xff] }
   0x2   :  { %v39_v1 = vld [vmem:[%s5478_s1 + $0x20] sm:$0xff]  ;;  %v40_v9 = vld [vmem:[%s5478_s1 + $0x28] sm:$0xff]  ;;  %v41_v12 = vld [vmem:[%s5478_s1 + $0x30] sm:$0xff] }
   0x3   :  { %v43_v2 = vld [vmem:[%s5478_s1 + $0x40] sm:$0xff]  ;;  %v2947_v4 = vcombine.high %v35_v0, %v39_v1  ;;  %v2946_v5 = vcombine.low %v35_v0, %v39_v1  ;;  %v2949_v13 = vcombine.high %v36_v8, %v40_v9  ;;  %v2951_v14 = vcombine.high %v37_v11, %v41_v12  ;;  %v44_v16 = vld [vmem:[%s5478_s1 + $0x48] sm:$0xff]  ;;  %v3711_v17 = vld [vmem:[%s5479_s0 + $0x10] sm:$0xff]  }
   0x4   :  { %v47_v6 = vld [vmem:[%s5478_s1 + $0x60] sm:$0xff]  ;;  %v48_v18 = vld [vmem:[%s5478_s1 + $0x68] sm:$0xff]  ;;  %v45_v19 = vld [vmem:[%s5478_s1 + $0x50] sm:$0xff]  ;;  %v2948_v20 = vcombine.low %v36_v8, %v40_v9  ;;  %v2950_v24 = vcombine.low %v37_v11, %v41_v12 }
   0x5   :  { %v2955_v7 = vcombine.high %v43_v2, %v47_v6  ;;  %206 = vmatprep.subr.bf16.mxu0 %v2947_v4  ;;  %3128 = vmatprep.subr.bf16.mxu1 %v2947_v4  ;;  %v2954_v10 = vcombine.low %v43_v2, %v47_v6  ;;  %v3703_v15 = vld [vmem:[%s5479_s0] sm:$0xff]   ;;  %v49_v21 = vld [vmem:[%s5478_s1 + $0x70] sm:$0xff]  ;;  %v2957_v22 = vcombine.high %v44_v16, %v48_v18  ;;  %v38_v23 = vld [vmem:[%s5478_s1 + $0x18] sm:$0xff] }
   0x6   :  { %207 = vmatpush1.bf16.msra.mxu0 %v2946_v5  ;;  %3130 = vmatpush1.bf16.msra.mxu1 %v2946_v5  ;;  %v42_v25 = vld [vmem:[%s5478_s1 + $0x38] sm:$0xff]  ;;  %v2959_v26 = vcombine.high %v45_v19, %v49_v21  ;;  %v2956_v27 = vcombine.low %v44_v16, %v48_v18  ;;  %v2958_v29 = vcombine.low %v45_v19, %v49_v21  ;;  %v3737_v30 = vld [vmem:[%s5479_s0 + $0x8] sm:$0xff]   ;;  %v3747_v32 = vld [vmem:[%s5480_s2 + $0x4] ss:$16 sps:$4 sm:$0xff]  }
   0x7   :  { %208 = vmatprep.subr.bf16.mxu0 %v2955_v7  ;;  %3129 = vmatprep.subr.bf16.mxu1 %v2955_v7  ;;  %v2953_v28 = vcombine.high %v38_v23, %v42_v25  ;;  %v3742_v31 = vld [vmem:[%s5479_s0 + $0x18] sm:$0xff]   ;;  %v2952_v35 = vcombine.low %v38_v23, %v42_v25  ;;  %v3765_v36 = vld [vmem:[%s5480_s2] ss:$16 sps:$4 sm:$0xff]   ;;  %v3770_v37 = vld [vmem:[%s5480_s2 + $0x24] ss:$16 sps:$4 sm:$0xff]  }
   0x8   :  { %v46_v33 = vld [vmem:[%s5478_s1 + $0x58] sm:$0xff]  ;;  %v3779_v39 = vld [vmem:[%s5480_s2 + $0x20] ss:$16 sps:$4 sm:$0xff]   ;;  %v3785_v40 = vld [vmem:[%s5480_s2 + $0x44] ss:$16 sps:$4 sm:$0xff]  }
   0x9   :  { %v50_v34 = vld [vmem:[%s5478_s1 + $0x78] sm:$0xff]  ;;  %5569 = vst [vmem:[#allocation3_spill] sm:$0xff] %v3785_v40  ;;  %v3799_v43 = vld [vmem:[%s5480_s2 + $0x40] ss:$16 sps:$4 sm:$0xff]   ;;  %v3805_v44 = vld [vmem:[%s5480_s2 + $0x64] ss:$16 sps:$4 sm:$0xff]  }
   0xa   :  { %209 = vmatpush1.bf16.msra.mxu0 %v2954_v10  ;;  %3131 = vmatpush1.bf16.msra.mxu1 %v2954_v10  ;;  %v2961_v38 = vcombine.high %v46_v33, %v50_v34  ;;  %v2960_v41 = vcombine.low %v46_v33, %v50_v34  ;;  %v3792_v42 = vld [vmem:[%s5480_s2 + $0xc] ss:$16 sps:$4 sm:$0xff]   ;;  %5570 = vst [vmem:[#allocation4_spill] sm:$0xff] %v3799_v43  ;;  %5571 = vst [vmem:[#allocation5_spill] sm:$0xff] %v3805_v44  ;;  %v3816_v45 = vld [vmem:[%s5480_s2 + $0x60] ss:$16 sps:$4 sm:$0xff]  }
   0xb   :  { %279 = vmatprep.subr.bf16.mxu1 %v2949_v13  ;;  %352 = vmatprep.subr.bf16.mxu0 %v2951_v14  ;;  %5572 = vst [vmem:[#allocation6_spill] sm:$0xff] %v3816_v45  ;;  %v3824_v46 = vld [vmem:[%s5480_s2 + $0x84] ss:$16 sps:$4 sm:$0xff]   ;;  %v3830_v47 = vld [vmem:[%s5480_s2 + $0x80] ss:$16 sps:$4 sm:$0xff]  }
   0xc   :  { %5573 = vst [vmem:[#allocation7_spill] sm:$0xff] %v3824_v46  ;;  %5574 = vst [vmem:[#allocation8_spill] sm:$0xff] %v3830_v47  ;;  %v3836_v48 = vld [vmem:[%s5480_s2 + $0xa4] ss:$16 sps:$4 sm:$0xff]   ;;  %v3846_v49 = vld [vmem:[%s5480_s2 + $0xa0] ss:$16 sps:$4 sm:$0xff]  }
   0xd   :  { %2962 = vmatmul.mubr.msk.bf16.vlgmr.msra.gmra.mrb[0].mxu0 %vm193_vm0, %v3703_v15  ;;  %2964 = vmatmul.mubr.msk.bf16.vlgmr.msra.gmra.mrb[0].mxu1 %vm193_vm0, %v3711_v17  ;;  %5575 = vst [vmem:[#allocation9_spill] sm:$0xff] %v3836_v48  ;;  %5576 = vst [vmem:[#allocation10_spill] sm:$0xff] %v3846_v49  ;;  %v3854_v50 = vld [vmem:[%s5480_s2 + $0xc4] ss:$16 sps:$4 sm:$0xff]   ;;  %v3860_v51 = vld [vmem:[%s5480_s2 + $0xc0] ss:$16 sps:$4 sm:$0xff]  }
   0xe   :  { %280 = vmatpush1.bf16.msra.mxu1 %v2948_v20  ;;  %248 = vmatprep.mubr.bf16.mxu0 %v5486_v3  ;;  %5577 = vst [vmem:[#allocation11_spill] sm:$0xff] %v3854_v50  ;;  %5578 = vst [vmem:[#allocation12_spill] sm:$0xff] %v3860_v51  ;;  %v3866_v52 = vld [vmem:[%s5480_s2 + $0xe4] ss:$16 sps:$4 sm:$0xff]   ;;  %v3876_v53 = vld [vmem:[%s5480_s2 + $0xe0] ss:$16 sps:$4 sm:$0xff]  }
   0xf   :  { %268 = vmatprep.mubr.bf16.mxu1 %v5486_v3  ;;  %281 = vmatprep.subr.bf16.mxu1 %v2957_v22  ;;  %5579 = vst [vmem:[#allocation13_spill] sm:$0xff] %v3866_v52  ;;  %5580 = vst [vmem:[#allocation14_spill] sm:$0xff] %v3876_v53  ;;  %v3884_v54 = vld [vmem:[%s5481_s3 + $0x4] ss:$16 sps:$4 sm:$0xff]   ;;  %v3890_v55 = vld [vmem:[%s5480_s2 + $0x8] ss:$16 sps:$4 sm:$0xff]  }
  0x10   :  { %353 = vmatpush1.bf16.msra.mxu0 %v2950_v24  ;;  %5581 = vst [vmem:[#allocation15_spill] sm:$0xff] %v3884_v54  ;;  %v3895_v56 = vld [vmem:[%s5481_s3] ss:$16 sps:$4 sm:$0xff]   ;;  %v3901_v57 = vld [vmem:[%s5480_s2 + $0x2c] ss:$16 sps:$4 sm:$0xff]  }
  0x11   :  { %354 = vmatprep.subr.bf16.mxu0 %v2959_v26  ;;  %v3906_v58 = vld [vmem:[%s5481_s3 + $0x24] ss:$16 sps:$4 sm:$0xff]   ;;  %v3916_v59 = vld [vmem:[%s5480_s2 + $0x28] ss:$16 sps:$4 sm:$0xff]   ;;  %v3921_v60 = vld [vmem:[%s5481_s3 + $0x20] ss:$16 sps:$4 sm:$0xff]  }
  0x12   :  { %282 = vmatpush1.bf16.msra.mxu1 %v2956_v27  ;;  %5582 = vst [vmem:[#allocation16_spill] sm:$0xff] %v3916_v59  ;;  %v3928_v61 = vld [vmem:[%s5480_s2 + $0x4c] ss:$16 sps:$4 sm:$0xff]   ;;  %v3933_v62 = vld [vmem:[%s5481_s3 + $0x44] ss:$16 sps:$4 sm:$0xff]  }
  0x13   :  { %425 = vmatprep.subr.bf16.mxu1 %v2953_v28  ;;  %5583 = vst [vmem:[#allocation17_spill] sm:$0xff] %v3928_v61  ;;  %v3942_v63 = vld [vmem:[%s5480_s2 + $0x48] ss:$16 sps:$4 sm:$0xff]   ;;  %v3947_v0 = vld [vmem:[%s5481_s3 + $0x40] ss:$16 sps:$4 sm:$0xff]  }
  0x14   :  { %355 = vmatpush1.bf16.msra.mxu0 %v2958_v29  ;;  %5584 = vst [vmem:[#allocation18_spill] sm:$0xff] %v3942_v63  ;;  %v3954_v1 = vld [vmem:[%s5480_s2 + $0x6c] ss:$16 sps:$4 sm:$0xff]   ;;  %v3959_v2 = vld [vmem:[%s5481_s3 + $0x64] ss:$16 sps:$4 sm:$0xff]  }
  0x15   :  { %2963 = vmatmul.mubr.msk.bf16.gmra.mrb[4].mxu0 %vm193_vm0, %v3737_v30  ;;  %2965 = vmatmul.mubr.msk.bf16.gmra.mrb[4].mxu1 %vm193_vm0, %v3742_v31  ;;  %5585 = vst [vmem:[#allocation19_spill] sm:$0xff] %v3954_v1  ;;  %v3968_v4 = vld [vmem:[%s5480_s2 + $0x68] ss:$16 sps:$4 sm:$0xff]   ;;  %v3973_v5 = vld [vmem:[%s5481_s3 + $0x60] ss:$16 sps:$4 sm:$0xff]  }
  0x16   :  { %311 = vmatprep.mubr.bf16.mxu1 %v5486_v3  ;;  %384 = vmatprep.mubr.bf16.mxu0 %v5486_v3  ;;  %5586 = vst [vmem:[#allocation20_spill] sm:$0xff] %v3968_v4  ;;  %v3980_v6 = vld [vmem:[%s5480_s2 + $0x8c] ss:$16 sps:$4 sm:$0xff]   ;;  %v3985_v7 = vld [vmem:[%s5481_s3 + $0x84] ss:$16 sps:$4 sm:$0xff]  }
  0x17   :  { %768 = vmatprep.subr.bf16.mxu0 %v3747_v32  ;;  %5587 = vst [vmem:[#allocation21_spill] sm:$0xff] %v3980_v6  ;;  %v3993_v8 = vld [vmem:[%s5480_s2 + $0x88] ss:$16 sps:$4 sm:$0xff]   ;;  %v3998_v9 = vld [vmem:[%s5481_s3 + $0x80] ss:$16 sps:$4 sm:$0xff]  }
  0x18   :  { %5588 = vst [vmem:[#allocation22_spill] sm:$0xff] %v3993_v8  ;;  %v4005_v10 = vld [vmem:[%s5480_s2 + $0xac] ss:$16 sps:$4 sm:$0xff]   ;;  %v4010_v11 = vld [vmem:[%s5481_s3 + $0xa4] ss:$16 sps:$4 sm:$0xff]  }
  0x19   :  { %5589 = vst [vmem:[#allocation23_spill] sm:$0xff] %v4005_v10  ;;  %v4019_v12 = vld [vmem:[%s5480_s2 + $0xa8] ss:$16 sps:$4 sm:$0xff]   ;;  %v4024_v13 = vld [vmem:[%s5481_s3 + $0xa0] ss:$16 sps:$4 sm:$0xff]  }
  0x1a   :  { %5590 = vst [vmem:[#allocation24_spill] sm:$0xff] %v4019_v12  ;;  %v4031_v14 = vld [vmem:[%s5480_s2 + $0xcc] ss:$16 sps:$4 sm:$0xff]   ;;  %v4044_v16 = vld [vmem:[%s5480_s2 + $0xc8] ss:$16 sps:$4 sm:$0xff]  }
  0x1b   :  { %5591 = vst [vmem:[#allocation25_spill] sm:$0xff] %v4031_v14  ;;  %5592 = vst [vmem:[#allocation26_spill] sm:$0xff] %v4044_v16  ;;  %v4056_v18 = vld [vmem:[%s5480_s2 + $0xec] ss:$16 sps:$4 sm:$0xff]   ;;  %v4061_v19 = vld [vmem:[%s5481_s3 + $0xe4] ss:$16 sps:$4 sm:$0xff]  }
  0x1c   :  { %5593 = vst [vmem:[#allocation27_spill] sm:$0xff] %v4056_v18  ;;  %v4070_v20 = vld [vmem:[%s5480_s2 + $0xe8] ss:$16 sps:$4 sm:$0xff]   ;;  %v4075_v21 = vld [vmem:[%s5481_s3 + $0xe0] ss:$16 sps:$4 sm:$0xff]  }
  0x1d   :  { %2966 = vmatmul.mubr.msk.bf16.vlgmr.msra.gmra.mrb[8].mxu1 %vm193_vm0, %v3703_v15  ;;  %2970 = vmatmul.mubr.msk.bf16.vlgmr.msra.gmra.mrb[8].mxu0 %vm193_vm0, %v3703_v15  ;;  %5594 = vst [vmem:[#allocation28_spill] sm:$0xff] %v4070_v20  ;;  %v4082_v22 = vld [vmem:[%s5481_s3 + $0xc] ss:$16 sps:$4 sm:$0xff]   ;;  %v4090_v23 = vld [vmem:[%s5481_s3 + $0x8] ss:$16 sps:$4 sm:$0xff]  }
  0x1e   :  { %769 = vmatpush1.bf16.msra.mxu0 %v3765_v36  ;;  %426 = vmatpush1.bf16.msra.mxu1 %v2952_v35  ;;  %5595 = vst [vmem:[#allocation29_spill] sm:$0xff] %v4082_v22  ;;  %v4096_v24 = vld [vmem:[%s5481_s3 + $0x2c] ss:$16 sps:$4 sm:$0xff]   ;;  %v4105_v25 = vld [vmem:[%s5481_s3 + $0x28] ss:$16 sps:$4 sm:$0xff]  }
  0x1f   :  { %770 = vmatprep.subr.bf16.mxu0 %v3770_v37  ;;  %321 = vmatprep.mubr.bf16.mxu1 %v5486_v3  ;;  %v4112_v26 = vld [vmem:[%s5481_s3 + $0x4c] ss:$16 sps:$4 sm:$0xff]   ;;  %v4121_v27 = vld [vmem:[%s5481_s3 + $0x48] ss:$16 sps:$4 sm:$0xff]  }
  0x20   :  { %394 = vmatprep.mubr.bf16.mxu0 %v5486_v3  ;;  %427 = vmatprep.subr.bf16.mxu1 %v2961_v38  ;;  %v4127_v28 = vld [vmem:[%s5481_s3 + $0x6c] ss:$16 sps:$4 sm:$0xff]   ;;  %v4135_v29 = vld [vmem:[%s5481_s3 + $0x68] ss:$16 sps:$4 sm:$0xff]  }
  0x21   :  { %v4163_v33 = vld [vmem:[%s5481_s3 + $0xa8] ss:$16 sps:$4 sm:$0xff]   ;;  %v4169_v34 = vld [vmem:[%s5481_s3 + $0xcc] ss:$16 sps:$4 sm:$0xff]  }
  0x22   :  { %771 = vmatpush1.bf16.msra.mxu0 %v3779_v39  ;;  %428 = vmatpush1.bf16.msra.mxu1 %v2960_v41  ;;  %v4177_v35 = vld [vmem:[%s5481_s3 + $0xc8] ss:$16 sps:$4 sm:$0xff]   ;;  %v4183_v38 = vld [vmem:[%s5481_s3 + $0xec] ss:$16 sps:$4 sm:$0xff]  }
  0x23   :  { %772 = vmatprep.subr.bf16.mxu0 %v3785_v40  ;;  %809 = vmatprep.subr.bf16.mxu1 %v3792_v42  ;;  %v4191_v41 = vld [vmem:[%s5481_s3 + $0xe8] ss:$16 sps:$4 sm:$0xff]  }
  0x25   :  { %2967 = vmatmul.mubr.msk.bf16.gmra.mrb[12].mxu1 %vm193_vm0, %v3737_v30  ;;  %2971 = vmatmul.mubr.msk.bf16.gmra.mrb[12].mxu0 %vm193_vm0, %v3737_v30 }
  0x26   :  { %773 = vmatpush1.bf16.msra.mxu0 %v3799_v43  ;;  %331 = vmatprep.mubr.bf16.mxu1 %v5486_v3 }
  0x27   :  { %774 = vmatprep.subr.bf16.mxu0 %v3805_v44  ;;  %404 = vmatprep.mubr.bf16.mxu0 %v5486_v3 }
  0x2a   :  { %775 = vmatpush1.bf16.msra.mxu0 %v3816_v45 }
  0x2b   :  { %776 = vmatprep.subr.bf16.mxu0 %v3824_v46 }
  0x2d   :  { %2968 = vmatmul.mubr.msk.bf16.gmra.mrb[16].mxu1 %vm193_vm0, %v3711_v17  ;;  %2972 = vmatmul.mubr.msk.bf16.gmra.mrb[16].mxu0 %vm193_vm0, %v3711_v17 }
  0x2e   :  { %777 = vmatpush1.bf16.msra.mxu0 %v3830_v47  ;;  %341 = vmatprep.mubr.bf16.mxu1 %v5486_v3 }
  0x2f   :  { %778 = vmatprep.subr.bf16.mxu0 %v3836_v48  ;;  %414 = vmatprep.mubr.bf16.mxu0 %v5486_v3 }
  0x32   :  { %779 = vmatpush1.bf16.msra.mxu0 %v3846_v49 }
  0x33   :  { %780 = vmatprep.subr.bf16.mxu0 %v3854_v50 }
  0x35   :  { %2969 = vmatmul.mubr.msk.bf16.gmra.mrb[20].mxu1 %vm193_vm0, %v3742_v31  ;;  %2973 = vmatmul.mubr.msk.bf16.gmra.mrb[20].mxu0 %vm193_vm0, %v3742_v31 }
  0x36   :  { %781 = vmatpush1.bf16.msra.mxu0 %v3860_v51  ;;  %457 = vmatprep.mubr.bf16.mxu1 %v5486_v3 }
  0x37   :  { %782 = vmatprep.subr.bf16.mxu0 %v3866_v52  ;;  %800 = vmatprep.mubr.bf16.mxu0 %v5486_v3 }
  0x3a   :  { %783 = vmatpush1.bf16.msra.mxu0 %v3876_v53 }
  0x3b   :  { %1042 = vmatprep.subr.bf16.mxu0 %v3884_v54 }
  0x3d   :  { %2974 = vmatmul.mubr.msk.bf16.vlgmr.msra.gmra.mrb[24].mxu1 %vm193_vm0, %v3703_v15  ;;  %801 = vmatmul.mubr.bf16.vlgmr.msra.gmra.mrb[24].mxu0 %v5486_v3  ;;  %v4036_v15 = vld [vmem:[%s5481_s3 + $0xc4] ss:$16 sps:$4 sm:$0xff]  }
  0x3e   :  { %810 = vmatpush1.bf16.msra.mxu1 %v3890_v55  ;;  %1043 = vmatpush1.bf16.msra.mxu0 %v3895_v56 }
  0x3f   :  { %811 = vmatprep.subr.bf16.mxu1 %v3901_v57  ;;  %1044 = vmatprep.subr.bf16.mxu0 %v3906_v58 }
  0x40   :  { %467 = vmatprep.mubr.bf16.mxu1 %v5486_v3  ;;  %1074 = vmatprep.mubr.bf16.mxu0 %v5486_v3 }
  0x42   :  { %812 = vmatpush1.bf16.msra.mxu1 %v3916_v59  ;;  %1045 = vmatpush1.bf16.msra.mxu0 %v3921_v60 }
  0x43   :  { %813 = vmatprep.subr.bf16.mxu1 %v3928_v61  ;;  %1046 = vmatprep.subr.bf16.mxu0 %v3933_v62 }
  0x45   :  { %2975 = vmatmul.mubr.msk.bf16.gmra.mrb[28].mxu1 %vm193_vm0, %v3737_v30  ;;  %v4141_v30 = vld [vmem:[%s5481_s3 + $0x8c] ss:$16 sps:$4 sm:$0xff]  }
  0x46   :  { %814 = vmatpush1.bf16.msra.mxu1 %v3942_v63  ;;  %1047 = vmatpush1.bf16.msra.mxu0 %v3947_v0 }
  0x47   :  { %815 = vmatprep.subr.bf16.mxu1 %v3954_v1  ;;  %1048 = vmatprep.subr.bf16.mxu0 %v3959_v2 }
  0x48   :  { %477 = vmatprep.mubr.bf16.mxu1 %v5486_v3 }
  0x4a   :  { %816 = vmatpush1.bf16.msra.mxu1 %v3968_v4  ;;  %1049 = vmatpush1.bf16.msra.mxu0 %v3973_v5 }
  0x4b   :  { %817 = vmatprep.subr.bf16.mxu1 %v3980_v6  ;;  %1050 = vmatprep.subr.bf16.mxu0 %v3985_v7 }
  0x4d   :  { %2976 = vmatmul.mubr.msk.bf16.gmra.mrb[32].mxu1 %vm193_vm0, %v3711_v17  ;;  %v4049_v17 = vld [vmem:[%s5481_s3 + $0xc0] ss:$16 sps:$4 sm:$0xff]  }
  0x4e   :  { %818 = vmatpush1.bf16.msra.mxu1 %v3993_v8  ;;  %1051 = vmatpush1.bf16.msra.mxu0 %v3998_v9 }
  0x4f   :  { %819 = vmatprep.subr.bf16.mxu1 %v4005_v10  ;;  %1052 = vmatprep.subr.bf16.mxu0 %v4010_v11 }
  0x50   :  { %487 = vmatprep.mubr.bf16.mxu1 %v5486_v3 }
  0x52   :  { %820 = vmatpush1.bf16.msra.mxu1 %v4019_v12  ;;  %1053 = vmatpush1.bf16.msra.mxu0 %v4024_v13 }
  0x53   :  { %821 = vmatprep.subr.bf16.mxu1 %v4031_v14  ;;  %1054 = vmatprep.subr.bf16.mxu0 %v4036_v15 }
  0x55   :  { %2977 = vmatmul.mubr.msk.bf16.gmra.mrb[36].mxu1 %vm193_vm0, %v3742_v31  ;;  %v4149_v31 = vld [vmem:[%s5481_s3 + $0x88] ss:$16 sps:$4 sm:$0xff]  }
  0x56   :  { %822 = vmatpush1.bf16.msra.mxu1 %v4044_v16  ;;  %1055 = vmatpush1.bf16.msra.mxu0 %v4049_v17 }
  0x57   :  { %823 = vmatprep.subr.bf16.mxu1 %v4056_v18  ;;  %1056 = vmatprep.subr.bf16.mxu0 %v4061_v19 }
  0x58   :  { %841 = vmatprep.mubr.bf16.mxu1 %v5486_v3 }
  0x5a   :  { %824 = vmatpush1.bf16.msra.mxu1 %v4070_v20  ;;  %1057 = vmatpush1.bf16.msra.mxu0 %v4075_v21 }
  0x5b   :  { %1083 = vmatprep.subr.bf16.mxu1 %v4082_v22  ;;  %1195 = vmatprep.subr.bf16.mxu0 %v3747_v32  ;;  %v4155_v32 = vld [vmem:[%s5481_s3 + $0xac] ss:$16 sps:$4 sm:$0xff]  }
  0x5d   :  { %1075 = vmatmul.mubr.bf16.vlgmr.msra.gmra.mrb[28].mxu0 %v5486_v3  ;;  %842 = vmatmul.mubr.bf16.vlgmr.msra.gmra.mrb[40].mxu1 %v5486_v3 }
  0x5e   :  { %1084 = vmatpush1.bf16.msra.mxu1 %v4090_v23  ;;  %1115 = vmatprep.mubr.bf16.mxu1 %v5486_v3 }
  0x5f   :  { %1085 = vmatprep.subr.bf16.mxu1 %v4096_v24  ;;  %1196 = vmatpush1.bf16.msra.mxu0 %v3765_v36 }
  0x60   :  { %1197 = vmatprep.subr.bf16.mxu0 %v3770_v37  ;;  %1227 = vmatprep.mubr.bf16.mxu0 %v5486_v3 }
  0x62   :  { %1086 = vmatpush1.bf16.msra.mxu1 %v4105_v25 }
  0x63   :  { %1087 = vmatprep.subr.bf16.mxu1 %v4112_v26  ;;  %1198 = vmatpush1.bf16.msra.mxu0 %v3779_v39 }
  0x64   :  { %1199 = vmatprep.subr.bf16.mxu0 %v3785_v40 }
  0x66   :  { %1088 = vmatpush1.bf16.msra.mxu1 %v4121_v27 }
  0x67   :  { %1089 = vmatprep.subr.bf16.mxu1 %v4127_v28  ;;  %1200 = vmatpush1.bf16.msra.mxu0 %v3799_v43 }
  0x68   :  { %1201 = vmatprep.subr.bf16.mxu0 %v3805_v44 }
  0x6a   :  { %1090 = vmatpush1.bf16.msra.mxu1 %v4135_v29 }
  0x6b   :  { %1091 = vmatprep.subr.bf16.mxu1 %v4141_v30  ;;  %1202 = vmatpush1.bf16.msra.mxu0 %v3816_v45 }
  0x6c   :  { %1203 = vmatprep.subr.bf16.mxu0 %v3824_v46 }
  0x6e   :  { %1092 = vmatpush1.bf16.msra.mxu1 %v4149_v31 }
  0x6f   :  { %1093 = vmatprep.subr.bf16.mxu1 %v4155_v32  ;;  %1204 = vmatpush1.bf16.msra.mxu0 %v3830_v47 }
  0x70   :  { %1205 = vmatprep.subr.bf16.mxu0 %v3836_v48 }
  0x72   :  { %1094 = vmatpush1.bf16.msra.mxu1 %v4163_v33 }
  0x73   :  { %1095 = vmatprep.subr.bf16.mxu1 %v4169_v34  ;;  %1206 = vmatpush1.bf16.msra.mxu0 %v3846_v49 }
  0x74   :  { %1207 = vmatprep.subr.bf16.mxu0 %v3854_v50 }
  0x76   :  { %1096 = vmatpush1.bf16.msra.mxu1 %v4177_v35 }
  0x77   :  { %1097 = vmatprep.subr.bf16.mxu1 %v4183_v38  ;;  %1208 = vmatpush1.bf16.msra.mxu0 %v3860_v51 }
  0x78   :  { %1209 = vmatprep.subr.bf16.mxu0 %v3866_v52  ;;  %v4224_v52 = vld [vmem:[%s5482_s4] sm:$0xff] }
  0x7a   :  { %1098 = vmatpush1.bf16.msra.mxu1 %v4191_v41 }
  0x7b   :  { %1236 = vmatprep.subr.bf16.mxu1 %v3792_v42  ;;  %1210 = vmatpush1.bf16.msra.mxu0 %v3876_v53 }
  0x7c   :  { %1278 = vmatprep.subr.bf16.mxu0 %v3884_v54 }
  0x7d   :  { %1116 = vmatmul.mubr.bf16.vlgmr.msra.gmra.mrb[44].mxu1 %v5486_v3 }
  0x7e   :  { %1237 = vmatpush1.bf16.msra.mxu1 %v3890_v55  ;;  %1268 = vmatprep.mubr.bf16.mxu1 %v5486_v3  ;;  %v53_v3 = vlaneseq }
  0x7f   :  { %1238 = vmatprep.subr.bf16.mxu1 %v3901_v57 }
  0x80   :  { %v4218_v54 = vshrl.u32 %v53_v3, 7 }
  0x82   :  { %1239 = vmatpush1.bf16.msra.mxu1 %v3916_v59  ;;  %v55_v53 = vsub.s32 0, %v4218_v54  ;;  %v59_v51 = vsub.s32 1, %v4218_v54 }
  0x83   :  { %1240 = vmatprep.subr.bf16.mxu1 %v3928_v61 }
  0x86   :  { %1241 = vmatpush1.bf16.msra.mxu1 %v3942_v63 }
  0x87   :  { %1242 = vmatprep.subr.bf16.mxu1 %v3954_v1 }
  0x8a   :  { %1243 = vmatpush1.bf16.msra.mxu1 %v3968_v4 }
  0x8b   :  { %1244 = vmatprep.subr.bf16.mxu1 %v3980_v6 }
  0x8e   :  { %1245 = vmatpush1.bf16.msra.mxu1 %v3993_v8 }
  0x8f   :  { %1246 = vmatprep.subr.bf16.mxu1 %v4005_v10 }
  0x92   :  { %1247 = vmatpush1.bf16.msra.mxu1 %v4019_v12 }
  0x93   :  { %1248 = vmatprep.subr.bf16.mxu1 %v4031_v14 }
  0x96   :  { %1249 = vmatpush1.bf16.msra.mxu1 %v4044_v16  ;;  %v4228_v16 = vrot.slane %v4224_v52, %v55_v53 }
  0x97   :  { %1250 = vmatprep.subr.bf16.mxu1 %v4056_v18  ;;  %v4231_v18 = vrot.slane %v4224_v52, %v59_v51 }
  0x9a   :  { %1251 = vmatpush1.bf16.msra.mxu1 %v4070_v20 }
  0x9b   :  { %1319 = vmatprep.subr.bf16.mxu1 %v4082_v22 }
  0xe0   :  { %v260_v20 = vpop.f32.mrb[0].mxu1  ;;  %v4233_v22 = vpop.f32.mrb[0].mxu0 }
  0xe1   :  { %v4236_v3 = vadd.f32 %v260_v20, %v4228_v16  ;;  %v262_v14 = vpop.f32.mrb[1].mxu1  ;;  %v4238_v50 = vpop.f32.mrb[1].mxu0 }
  0xe2   :  { %v4241_v12 = vadd.f32 %v262_v14, %v4231_v18  ;;  %v264_v49 = vpop.f32.mrb[2].mxu1  ;;  %v244_v10 = vpop.f32.mrb[2].mxu0 }
  0xe3   :  { %5596 = vst [vmem:[#allocation30_spill] sm:$0xff] %v4236_v3  ;;  %v4244_v53 = vadd.f32 %v264_v49, %v4228_v16  ;;  %v266_v48 = vpop.f32.mrb[3].mxu1  ;;  %v4247_v51 = vadd.f32 %v244_v10, %v4228_v16  ;;  %v246_v8 = vpop.f32.mrb[3].mxu0  ;;  %v71_v10 = vsub.s32 4, %v4218_v54 }
  0xe4   :  { %5597 = vst [vmem:[#allocation31_spill] sm:$0xff] %v4241_v12  ;;  %v4250_v47 = vadd.f32 %v266_v48, %v4231_v18  ;;  %v4253_v20 = vadd.f32 %v246_v8, %v4231_v18 }
  0xe5   :  { %5598 = vst [vmem:[#allocation32_spill] sm:$0xff] %v4244_v53  ;;  %5599 = vst [vmem:[#allocation33_spill] sm:$0xff] %v4247_v51 }
  0xe6   :  { %5600 = vst [vmem:[#allocation34_spill] sm:$0xff] %v4250_v47  ;;  %5601 = vst [vmem:[#allocation35_spill] sm:$0xff] %v4253_v20  ;;  %v75_v20 = vsub.s32 5, %v4218_v54 }
  0xe8   :  { %v270_v3 = vpop.f32.mrb[4].mxu1  ;;  %v250_v6 = vpop.f32.mrb[4].mxu0 }
  0xe9   :  { %v4256_v14 = vadd.f32 %v270_v3, %v4228_v16  ;;  %v272_v12 = vpop.f32.mrb[5].mxu1  ;;  %v4259_v49 = vadd.f32 %v250_v6, %v4228_v16  ;;  %v252_v53 = vpop.f32.mrb[5].mxu0 }
  0xea   :  { %v4263_v51 = vadd.f32 %v272_v12, %v4231_v18  ;;  %v274_v48 = vpop.f32.mrb[6].mxu1  ;;  %v4266_v47 = vadd.f32 %v252_v53, %v4231_v18  ;;  %v254_v8 = vpop.f32.mrb[6].mxu0  ;;  %v63_v53 = vsub.s32 2, %v4218_v54 }
  0xeb   :  { %5602 = vst [vmem:[#allocation36_spill] sm:$0xff] %v4256_v14  ;;  %5603 = vst [vmem:[#allocation37_spill] sm:$0xff] %v4259_v49  ;;  %v4270_v3 = vadd.f32 %v274_v48, %v4228_v16  ;;  %v276_v14 = vpop.f32.mrb[7].mxu1  ;;  %v4273_v6 = vadd.f32 %v254_v8, %v4228_v16  ;;  %v256_v49 = vpop.f32.mrb[7].mxu0  ;;  %v4287_v48 = vrot.slane %v4224_v52, %v75_v20 }
  0xec   :  { %5604 = vst [vmem:[#allocation38_spill] sm:$0xff] %v4263_v51  ;;  %5605 = vst [vmem:[#allocation39_spill] sm:$0xff] %v4266_v47  ;;  %v4276_v46 = vadd.f32 %v276_v14, %v4231_v18  ;;  %v4279_v12 = vadd.f32 %v256_v49, %v4231_v18  ;;  %v4283_v51 = vrot.slane %v4224_v52, %v71_v10  ;;  %v67_v47 = vsub.s32 3, %v4218_v54 }
  0xed   :  { %5606 = vst [vmem:[#allocation40_spill] sm:$0xff] %v4270_v3  ;;  %5607 = vst [vmem:[#allocation41_spill] sm:$0xff] %v4273_v6  ;;  %v4292_v6 = vrot.slane %v4224_v52, %v63_v53 }
  0xee   :  { %5608 = vst [vmem:[#allocation42_spill] sm:$0xff] %v4276_v46  ;;  %5609 = vst [vmem:[#allocation43_spill] sm:$0xff] %v4279_v12  ;;  %v4300_v10 = vrot.slane %v4224_v52, %v67_v47 }
  0xf0   :  { %v4289_v3 = vpop.f32.mrb[8].mxu1  ;;  %v386_v8 = vpop.f32.mrb[8].mxu0 }
  0xf1   :  { %v4294_v14 = vpop.f32.mrb[9].mxu1  ;;  %v4297_v49 = vadd.f32 %v386_v8, %v4283_v51  ;;  %v388_v46 = vpop.f32.mrb[9].mxu0 }
  0xf2   :  { %v317_v12 = vpop.f32.mrb[10].mxu1  ;;  %v4303_v4 = vadd.f32 %v388_v46, %v4287_v48  ;;  %v390_v20 = vpop.f32.mrb[10].mxu0 }
  0xf3   :  { %5610 = vst [vmem:[#allocation44_spill] sm:$0xff] %v4297_v49  ;;  %v4306_v45 = vadd.f32 %v317_v12, %v4292_v6  ;;  %v319_v1 = vpop.f32.mrb[11].mxu1  ;;  %v4309_v53 = vadd.f32 %v390_v20, %v4283_v51  ;;  %v392_v44 = vpop.f32.mrb[11].mxu0 }
  0xf4   :  { %5611 = vst [vmem:[#allocation45_spill] sm:$0xff] %v4303_v4  ;;  %v4312_v8 = vadd.f32 %v319_v1, %v4300_v10  ;;  %v4315_v49 = vadd.f32 %v392_v44, %v4287_v48 }
  0xf5   :  { %5612 = vst [vmem:[#allocation46_spill] sm:$0xff] %v4306_v45  ;;  %5613 = vst [vmem:[#allocation47_spill] sm:$0xff] %v4309_v53 }
  0xf6   :  { %5614 = vst [vmem:[#allocation48_spill] sm:$0xff] %v4312_v8  ;;  %5615 = vst [vmem:[#allocation49_spill] sm:$0xff] %v4315_v49 }
  0xf8   :  { %v323_v47 = vpop.f32.mrb[12].mxu1  ;;  %v396_v63 = vpop.f32.mrb[12].mxu0 }
  0xf9   :  { %v4318_v46 = vadd.f32 %v323_v47, %v4292_v6  ;;  %v325_v4 = vpop.f32.mrb[13].mxu1  ;;  %v4321_v12 = vadd.f32 %v396_v63, %v4283_v51  ;;  %v398_v45 = vpop.f32.mrb[13].mxu0 }
  0xfa   :  { %v4324_v20 = vadd.f32 %v325_v4, %v4300_v10  ;;  %v327_v53 = vpop.f32.mrb[14].mxu1  ;;  %v4327_v1 = vadd.f32 %v398_v45, %v4287_v48  ;;  %v400_v8 = vpop.f32.mrb[14].mxu0 }
  0xfb   :  { %5616 = vst [vmem:[#allocation50_spill] sm:$0xff] %v4318_v46  ;;  %5617 = vst [vmem:[#allocation51_spill] sm:$0xff] %v4321_v12  ;;  %v4330_v44 = vadd.f32 %v327_v53, %v4292_v6  ;;  %v329_v49 = vpop.f32.mrb[15].mxu1  ;;  %v4333_v47 = vadd.f32 %v400_v8, %v4283_v51  ;;  %v402_v46 = vpop.f32.mrb[15].mxu0 }
  0xfc   :  { %5618 = vst [vmem:[#allocation52_spill] sm:$0xff] %v4324_v20  ;;  %5619 = vst [vmem:[#allocation53_spill] sm:$0xff] %v4327_v1  ;;  %v4336_v63 = vadd.f32 %v329_v49, %v4300_v10  ;;  %v4339_v12 = vadd.f32 %v402_v46, %v4287_v48 }
  0xfd   :  { %5620 = vst [vmem:[#allocation54_spill] sm:$0xff] %v4330_v44  ;;  %5621 = vst [vmem:[#allocation55_spill] sm:$0xff] %v4333_v47 }
  0xfe   :  { %5622 = vst [vmem:[#allocation56_spill] sm:$0xff] %v4336_v63  ;;  %5623 = vst [vmem:[#allocation57_spill] sm:$0xff] %v4339_v12 }
 0x100   :  { %v333_v4 = vpop.f32.mrb[16].mxu1  ;;  %v406_v20 = vpop.f32.mrb[16].mxu0 }
 0x101   :  { %v4342_v45 = vadd.f32 %v333_v4, %v4292_v6  ;;  %v335_v1 = vpop.f32.mrb[17].mxu1  ;;  %v4345_v53 = vadd.f32 %v406_v20, %v4283_v51  ;;  %v408_v44 = vpop.f32.mrb[17].mxu0 }
 0x102   :  { %v4348_v8 = vadd.f32 %v335_v1, %v4300_v10  ;;  %v337_v47 = vpop.f32.mrb[18].mxu1  ;;  %v4351_v49 = vadd.f32 %v408_v44, %v4287_v48  ;;  %v410_v63 = vpop.f32.mrb[18].mxu0 }
 0x103   :  { %5624 = vst [vmem:[#allocation58_spill] sm:$0xff] %v4342_v45  ;;  %5625 = vst [vmem:[#allocation59_spill] sm:$0xff] %v4345_v53  ;;  %v4354_v46 = vadd.f32 %v337_v47, %v4292_v6  ;;  %v339_v12 = vpop.f32.mrb[19].mxu1  ;;  %v4357_v4 = vadd.f32 %v410_v63, %v4283_v51  ;;  %v412_v45 = vpop.f32.mrb[19].mxu0  ;;  %v79_v63 = vsub.s32 6, %v4218_v54 }
 0x104   :  { %5626 = vst [vmem:[#allocation60_spill] sm:$0xff] %v4348_v8  ;;  %5627 = vst [vmem:[#allocation61_spill] sm:$0xff] %v4351_v49  ;;  %v4360_v20 = vadd.f32 %v339_v12, %v4300_v10  ;;  %v4363_v53 = vadd.f32 %v412_v45, %v4287_v48 }
 0x105   :  { %5628 = vst [vmem:[#allocation62_spill] sm:$0xff] %v4354_v46  ;;  %5629 = vst [vmem:[#allocation63_spill] sm:$0xff] %v4357_v4 }
 0x106   :  { %5630 = vst [vmem:[#allocation64_spill] sm:$0xff] %v4360_v20  ;;  %5631 = vst [vmem:[#allocation65_spill] sm:$0xff] %v4363_v53  ;;  %v83_v53 = vsub.s32 7, %v4218_v54  ;;  %v243_v54 = vadd.f32 %v4238_v50, %v4231_v18 }
 0x108   :  { %v343_v1 = vpop.f32.mrb[20].mxu1  ;;  %v416_v8 = vpop.f32.mrb[20].mxu0 }
 0x109   :  { %v4366_v44 = vadd.f32 %v343_v1, %v4292_v6  ;;  %v345_v49 = vpop.f32.mrb[21].mxu1  ;;  %v4369_v47 = vadd.f32 %v416_v8, %v4283_v51  ;;  %v418_v46 = vpop.f32.mrb[21].mxu0 }
 0x10a   :  { %v4373_v4 = vadd.f32 %v345_v49, %v4300_v10  ;;  %v347_v12 = vpop.f32.mrb[22].mxu1  ;;  %v4376_v20 = vadd.f32 %v418_v46, %v4287_v48  ;;  %v420_v45 = vpop.f32.mrb[22].mxu0  ;;  %v4389_v49 = vrot.slane %v4224_v52, %v83_v53  ;;  %v241_v46 = vadd.f32 %v4233_v22, %v4228_v16 }
 0x10b   :  { %5632 = vst [vmem:[#allocation66_spill] sm:$0xff] %v4366_v44  ;;  %5633 = vst [vmem:[#allocation67_spill] sm:$0xff] %v4369_v47  ;;  %v4380_v1 = vadd.f32 %v347_v12, %v4292_v6  ;;  %v349_v44 = vpop.f32.mrb[23].mxu1  ;;  %v422_v43 = vpop.f32.mrb[23].mxu0  ;;  %v4386_v47 = vrot.slane %v4224_v52, %v79_v63 }
 0x10c   :  { %5634 = vst [vmem:[#allocation68_spill] sm:$0xff] %v4373_v4  ;;  %5635 = vst [vmem:[#allocation69_spill] sm:$0xff] %v4376_v20  ;;  %v4383_v8 = vadd.f32 %v349_v44, %v4300_v10 }
 0x10d   :  { %5636 = vst [vmem:[#allocation70_spill] sm:$0xff] %v4380_v1 }
 0x10e   :  { %5637 = vst [vmem:[#allocation71_spill] sm:$0xff] %v4383_v8 }
 0x110   :  { %v459_v4 = vpop.f32.mrb[24].mxu1  ;;  %v802_v12 = vpop.f32.mrb[24].mxu0 }
 0x111   :  { %v4396_v1 = vadd.f32 %v459_v4, %v4386_v47  ;;  %v1124_v20 = vadd.f32 %v802_v12, %v241_v46  ;;  %v461_v44 = vpop.f32.mrb[25].mxu1  ;;  %v804_v8 = vpop.f32.mrb[25].mxu0 }
 0x112   :  { %v4399_v63 = vadd.f32 %v461_v44, %v4389_v49  ;;  %v1125_v61 = vadd.f32 %v804_v8, %v243_v54  ;;  %v463_v52 = vpop.f32.mrb[26].mxu1  ;;  %v806_v53 = vpop.f32.mrb[26].mxu0 }
 0x113   :  { %5638 = vst [vmem:[#allocation72_spill] sm:$0xff] %v4396_v1  ;;  %v4402_v40 = vadd.f32 %v463_v52, %v4386_v47  ;;  %v465_v16 = vpop.f32.mrb[27].mxu1  ;;  %v807_v22 = vpop.f32.mrb[27].mxu0 }
 0x114   :  { %5639 = vst [vmem:[#allocation73_spill] sm:$0xff] %v4399_v63  ;;  %v4405_v50 = vadd.f32 %v465_v16, %v4389_v49  ;;  %v3043_v52 = vmul.f32 -1.442695, %v1125_v61  ;;  %v3042_v22 = vmul.f32 -1.442695, %v1124_v20 }
 0x115   :  { %5640 = vst [vmem:[#allocation74_spill] sm:$0xff] %v4402_v40 }
 0x116   :  { %5641 = vst [vmem:[#allocation75_spill] sm:$0xff] %v4405_v50  ;;  %3243 = vpow2.f32 %v3043_v52 }
 0x117   :  { %3245 = vpow2.f32 %v3042_v22 }
 0x118   :  { %v469_v18 = vpop.f32.mrb[28].mxu1 }
 0x119   :  { %v4408_v4 = vadd.f32 %v469_v18, %v4386_v47  ;;  %v471_v46 = vpop.f32.mrb[29].mxu1 }
 0x11a   :  { %v4411_v12 = vadd.f32 %v471_v46, %v4389_v49  ;;  %v473_v44 = vpop.f32.mrb[30].mxu1 }
 0x11b   :  { %5642 = vst [vmem:[#allocation76_spill] sm:$0xff] %v4408_v4  ;;  %v4414_v8 = vadd.f32 %v473_v44, %v4386_v47  ;;  %v475_v54 = vpop.f32.mrb[31].mxu1 }
 0x11c   :  { %5643 = vst [vmem:[#allocation77_spill] sm:$0xff] %v4411_v12  ;;  %v4417_v53 = vadd.f32 %v475_v54, %v4389_v49 }
 0x11d   :  { %5644 = vst [vmem:[#allocation78_spill] sm:$0xff] %v4414_v8  ;;  %v316_v8 = vadd.f32 %v4294_v14, %v4300_v10 }
 0x11e   :  { %5645 = vst [vmem:[#allocation79_spill] sm:$0xff] %v4417_v53 }
 0x120   :  { %v479_v16 = vpop.f32.mrb[32].mxu1  ;;  %v3244_v22 = vpop.eup %3243 }
 0x121   :  { %v4420_v18 = vadd.f32 %v479_v16, %v4386_v47  ;;  %v481_v63 = vpop.f32.mrb[33].mxu1  ;;  %v1137_v4 = vadd.f32 1.0, %v3244_v22 }
 0x122   :  { %v4423_v46 = vadd.f32 %v481_v63, %v4389_v49  ;;  %v483_v1 = vpop.f32.mrb[34].mxu1  ;;  %v3246_v63 = vpop.eup %3245 }
 0x123   :  { %5646 = vst [vmem:[#allocation80_spill] sm:$0xff] %v4420_v18  ;;  %v4426_v44 = vadd.f32 %v483_v1, %v4386_v47  ;;  %v485_v50 = vpop.f32.mrb[35].mxu1  ;;  %v1131_v53 = vadd.f32 1.0, %v3246_v63  ;;  %v314_v1 = vadd.f32 %v4289_v3, %v4292_v6  ;;  %3247 = vrcp.f32 %v1137_v4 }
 0x124   :  { %5647 = vst [vmem:[#allocation81_spill] sm:$0xff] %v4423_v46  ;;  %v4429_v61 = vadd.f32 %v485_v50, %v4389_v49  ;;  %v421_v50 = vadd.f32 %v420_v45, %v4283_v51 }
 0x125   :  { %5648 = vst [vmem:[#allocation82_spill] sm:$0xff] %v4426_v44  ;;  %3249 = vrcp.f32 %v1131_v53 }
 0x126   :  { %5649 = vst [vmem:[#allocation83_spill] sm:$0xff] %v4429_v61 }
 0x128   :  { %v489_v54 = vpop.f32.mrb[36].mxu1 }
 0x129   :  { %v4432_v20 = vadd.f32 %v489_v54, %v4386_v47  ;;  %v491_v52 = vpop.f32.mrb[37].mxu1  ;;  %v423_v54 = vadd.f32 %v422_v43, %v4287_v48 }
 0x12a   :  { %v4435_v16 = vadd.f32 %v491_v52, %v4389_v49  ;;  %v493_v40 = vpop.f32.mrb[38].mxu1 }
 0x12b   :  { %5650 = vst [vmem:[#allocation84_spill] sm:$0xff] %v4432_v20  ;;  %v495_v12 = vpop.f32.mrb[39].mxu1 }
 0x12c   :  { %5651 = vst [vmem:[#allocation85_spill] sm:$0xff] %v4435_v16 }
 0x12d   :  { %v3248_v14 = vpop.eup %3247 }
 0x12e   :  { %v1147_v4 = vmul.f32 0.0, %v3248_v14 }
 0x12f   :  { %v3250_v10 = vpop.eup %3249 }
 0x130   :  { %v1076_v46 = vpop.f32.mrb[28].mxu0  ;;  %v843_v18 = vpop.f32.mrb[40].mxu1 }
 0x131   :  { %v1152_v52 = vadd.f32 %v1076_v46, %v421_v50  ;;  %v1126_v61 = vadd.f32 %v843_v18, %v314_v1  ;;  %v1078_v44 = vpop.f32.mrb[29].mxu0  ;;  %v845_v16 = vpop.f32.mrb[41].mxu1  ;;  %v494_v50 = vadd.f32 %v493_v40, %v4386_v47  ;;  %v5652_v40 = vmov 0  }
 0x132   :  { %v1153_v22 = vadd.f32 %v1078_v44, %v423_v54  ;;  %v1127_v63 = vadd.f32 %v845_v16, %v316_v8  ;;  %v847_v20 = vpop.f32.mrb[42].mxu1  ;;  %v1080_v59 = vpop.f32.mrb[30].mxu0  ;;  %v496_v54 = vadd.f32 %v495_v12, %v4389_v49 }
 0x133   :  { %3251 = vtanh.f32 %v1126_v61  ;;  %v848_v3 = vpop.f32.mrb[43].mxu1  ;;  %v1081_v51 = vpop.f32.mrb[31].mxu0  ;;  %v3045_v45 = vmul.f32 -1.442695, %v1152_v52 }
 0x134   :  { %v3044_v6 = vmul.f32 -1.442695, %v1127_v63  ;;  %v3046_v43 = vmul.f32 -1.442695, %v1153_v22 }
 0x136   :  { %3253 = vpow2.f32 %v3044_v6 }
 0x137   :  { %3255 = vpow2.f32 %v3046_v43 }
 0x138   :  { %3257 = vpow2.f32 %v3045_v45 }
 0x13d   :  { %v3252_v48 = vpop.eup %3251 }
 0x13e   :  { %v1148_v46 = vmul.f32 %v3252_v48, %v3250_v10 }
 0x140   :  { %v4443_v18 = vadd.f32 %v1148_v46, %v1147_v4  ;;  %v3254_v53 = vpop.eup %3253 }
 0x141   :  { %v1144_v8 = vadd.f32 1.0, %v3254_v53  ;;  %v3256_v59 = vpop.eup %3255 }
 0x142   :  { %3259 = vtanh.f32 %v4443_v18  ;;  %v3258_v44 = vpop.eup %3257  ;;  %v1165_v20 = vadd.f32 1.0, %v3256_v59 }
 0x143   :  { %3261 = vrcp.f32 %v1144_v8  ;;  %v1159_v16 = vadd.f32 1.0, %v3258_v44 }
 0x144   :  { %3263 = vrcp.f32 %v1165_v20  ;;  %v4486_v20 = vld [vmem:[%s5480_s2 + $0x4] ss:$16 sps:$4 sm:$0xff]  }
 0x145   :  { %3265 = vrcp.f32 %v1159_v16  ;;  %v5653_v16 = vld [vmem:[#allocation16_spill] sm:$0xff] }
 0x14c   :  { %v3260_v61 = vpop.eup %3259 }
 0x14d   :  { %v3262_v1 = vpop.eup %3261 }
 0x14e   :  { %v1151_v22 = vmul.f32 %v3262_v1, %v3260_v61  ;;  %v3264_v47 = vpop.eup %3263  ;;  %v5654_v1 = vld [vmem:[#allocation3_spill] sm:$0xff] }
 0x14f   :  { %v3266_v49 = vpop.eup %3265  ;;  %v1175_v48 = vmul.f32 0.0, %v3264_v47  ;;  %v5672_v47 = vld [vmem:[#allocation12_spill] sm:$0xff] }
 0x150   :  { %v1117_v52 = vpop.f32.mrb[44].mxu1  ;;  %v1194_v14 = vpack.c.bf16 %v1151_v22, %v1151_v22  ;;  %v5664_v22 = vld [vmem:[#allocation8_spill] sm:$0xff] }
 0x151   :  { %v1154_v63 = vadd.f32 %v1117_v52, %v494_v50  ;;  %v1119_v3 = vpop.f32.mrb[45].mxu1  ;;  %v5656_v50 = vld [vmem:[#allocation4_spill] sm:$0xff]  ;;  %v5662_v52 = vld [vmem:[#allocation7_spill] sm:$0xff] }
 0x152   :  { %v1155_v51 = vadd.f32 %v1119_v3, %v496_v54  ;;  %v1121_v6 = vpop.f32.mrb[46].mxu1  ;;  %1228 = vmatmul.mubr.bf16.vlgmr.msra.gmra.mrb[32].mxu0 %v1194_v14  ;;  %1269 = vmatmul.mubr.bf16.vlgmr.msra.gmra.mrb[48].mxu1 %v1194_v14  ;;  %v5661_v54 = vld [vmem:[#allocation20_spill] sm:$0xff]  ;;  %v5666_v3 = vld [vmem:[#allocation9_spill] sm:$0xff] }
 0x153   :  { %3267 = vtanh.f32 %v1154_v63  ;;  %v1122_v10 = vpop.f32.mrb[47].mxu1  ;;  %1279 = vmatpush1.bf16.msra.mxu0 %v3895_v56  ;;  %1320 = vmatpush1.bf16.msra.mxu1 %v4090_v23  ;;  %v5665_v63 = vld [vmem:[#allocation22_spill] sm:$0xff]  ;;  %v5669_v14 = vld [vmem:[#allocation24_spill] sm:$0xff] }
 0x154   :  { %v3047_v43 = vmul.f32 -1.442695, %v1155_v51  ;;  %1280 = vmatprep.subr.bf16.mxu0 %v3906_v58  ;;  %1321 = vmatprep.subr.bf16.mxu1 %v4096_v24  ;;  %v5667_v51 = vld [vmem:[#allocation23_spill] sm:$0xff]  ;;  %v5668_v6 = vld [vmem:[#allocation10_spill] sm:$0xff] }
 0x155   :  { %1310 = vmatprep.mubr.bf16.mxu0 %v5652_v40  ;;  %1351 = vmatprep.mubr.bf16.mxu1 %v5652_v40  ;;  %v5670_v10 = vld [vmem:[#allocation11_spill] sm:$0xff] }
 0x156   :  { %3269 = vpow2.f32 %v3047_v43  ;;  %v5671_v43 = vld [vmem:[#allocation25_spill] sm:$0xff] }
 0x157   :  { %1281 = vmatpush1.bf16.msra.mxu0 %v3921_v60  ;;  %1322 = vmatpush1.bf16.msra.mxu1 %v4105_v25 }
 0x158   :  { %1282 = vmatprep.subr.bf16.mxu0 %v3933_v62  ;;  %1323 = vmatprep.subr.bf16.mxu1 %v4112_v26 }
 0x15b   :  { %1283 = vmatpush1.bf16.msra.mxu0 %v3947_v0  ;;  %1324 = vmatpush1.bf16.msra.mxu1 %v4121_v27 }
 0x15c   :  { %1284 = vmatprep.subr.bf16.mxu0 %v3959_v2  ;;  %1325 = vmatprep.subr.bf16.mxu1 %v4127_v28 }
 0x15d   :  { %v3268_v12 = vpop.eup %3267 }
 0x15e   :  { %v1176_v45 = vmul.f32 %v3268_v12, %v3266_v49  ;;  %v5673_v49 = vld [vmem:[#allocation26_spill] sm:$0xff]  ;;  %v5674_v12 = vld [vmem:[#allocation13_spill] sm:$0xff] }
 0x15f   :  { %1285 = vmatpush1.bf16.msra.mxu0 %v3973_v5  ;;  %1326 = vmatpush1.bf16.msra.mxu1 %v4135_v29 }
 0x160   :  { %v3270_v4 = vpop.eup %3269  ;;  %v4462_v46 = vadd.f32 %v1176_v45, %v1175_v48  ;;  %1286 = vmatprep.subr.bf16.mxu0 %v3985_v7  ;;  %1327 = vmatprep.subr.bf16.mxu1 %v4141_v30  ;;  %v5675_v48 = vld [vmem:[#allocation27_spill] sm:$0xff]  ;;  %v5676_v45 = vld [vmem:[#allocation14_spill] sm:$0xff] }
 0x161   :  { %v1172_v53 = vadd.f32 1.0, %v3270_v4  ;;  %v5677_v4 = vld [vmem:[#allocation28_spill] sm:$0xff] }
 0x162   :  { %3271 = vtanh.f32 %v4462_v46 }
 0x163   :  { %3273 = vrcp.f32 %v1172_v53  ;;  %1287 = vmatpush1.bf16.msra.mxu0 %v3998_v9  ;;  %1328 = vmatpush1.bf16.msra.mxu1 %v4149_v31  ;;  %v5678_v53 = vld [vmem:[#allocation15_spill] sm:$0xff] }
 0x164   :  { %1288 = vmatprep.subr.bf16.mxu0 %v4010_v11  ;;  %1329 = vmatprep.subr.bf16.mxu1 %v4155_v32 }
 0x167   :  { %1289 = vmatpush1.bf16.msra.mxu0 %v4024_v13  ;;  %1330 = vmatpush1.bf16.msra.mxu1 %v4163_v33 }
 0x168   :  { %1290 = vmatprep.subr.bf16.mxu0 %v4036_v15  ;;  %1331 = vmatprep.subr.bf16.mxu1 %v4169_v34 }
 0x16b   :  { %1291 = vmatpush1.bf16.msra.mxu0 %v4049_v17  ;;  %1332 = vmatpush1.bf16.msra.mxu1 %v4177_v35 }
 0x16c   :  { %v3272_v8 = vpop.eup %3271  ;;  %1292 = vmatprep.subr.bf16.mxu0 %v4061_v19  ;;  %1333 = vmatprep.subr.bf16.mxu1 %v4183_v38 }
 0x16d   :  { %v3274_v59 = vpop.eup %3273 }
 0x16e   :  { %v1179_v44 = vmul.f32 %v3274_v59, %v3272_v8  ;;  %v5679_v8 = vld [vmem:[#allocation29_spill] sm:$0xff] }
 0x16f   :  { %1293 = vmatpush1.bf16.msra.mxu0 %v4075_v21  ;;  %1334 = vmatpush1.bf16.msra.mxu1 %v4191_v41 }
 0x170   :  { %v1277_v61 = vpack.c.bf16 %v1179_v44, %v1179_v44  ;;  %1431 = vmatprep.subr.bf16.mxu0 %v4486_v20  ;;  %1472 = vmatprep.subr.bf16.mxu1 %v3792_v42  ;;  %v5655_v42 = vld [vmem:[#allocation17_spill] sm:$0xff] }
 0x172   :  { %1311 = vmatmul.mubr.bf16.vlgmr.msra.gmra.mrb[36].mxu0 %v1277_v61  ;;  %1352 = vmatmul.mubr.bf16.vlgmr.msra.gmra.mrb[52].mxu1 %v1277_v61  ;;  %v5680_v61 = vld [vmem:[#allocation33_spill] sm:$0xff] }
 0x173   :  { %1432 = vmatpush1.bf16.msra.mxu0 %v3765_v36  ;;  %1473 = vmatpush1.bf16.msra.mxu1 %v3890_v55  ;;  %v5657_v36 = vld [vmem:[#allocation18_spill] sm:$0xff]  ;;  %v5658_v55 = vld [vmem:[#allocation5_spill] sm:$0xff] }
 0x174   :  { %1433 = vmatprep.subr.bf16.mxu0 %v3770_v37  ;;  %1474 = vmatprep.subr.bf16.mxu1 %v3901_v57  ;;  %v5659_v37 = vld [vmem:[#allocation19_spill] sm:$0xff]  ;;  %v5660_v57 = vld [vmem:[#allocation6_spill] sm:$0xff] }
 0x175   :  { %1463 = vmatprep.mubr.bf16.mxu0 %v5652_v40  ;;  %1504 = vmatprep.mubr.bf16.mxu1 %v5652_v40 }
 0x177   :  { %1434 = vmatpush1.bf16.msra.mxu0 %v3779_v39  ;;  %1475 = vmatpush1.bf16.msra.mxu1 %v5653_v16  ;;  %v5663_v39 = vld [vmem:[#allocation21_spill] sm:$0xff] }
 0x178   :  { %1435 = vmatprep.subr.bf16.mxu0 %v5654_v1  ;;  %1476 = vmatprep.subr.bf16.mxu1 %v5655_v42  ;;  %v5681_v1 = vld [vmem:[#allocation46_spill] sm:$0xff] }
 0x17b   :  { %1436 = vmatpush1.bf16.msra.mxu0 %v5656_v50  ;;  %1477 = vmatpush1.bf16.msra.mxu1 %v5657_v36 }
 0x17c   :  { %1437 = vmatprep.subr.bf16.mxu0 %v5658_v55  ;;  %1478 = vmatprep.subr.bf16.mxu1 %v5659_v37  ;;  %v5682_v55 = vld [vmem:[#allocation35_spill] sm:$0xff] }
 0x17f   :  { %1438 = vmatpush1.bf16.msra.mxu0 %v5660_v57  ;;  %1479 = vmatpush1.bf16.msra.mxu1 %v5661_v54  ;;  %v5683_v57 = vld [vmem:[#allocation48_spill] sm:$0xff] }
 0x180   :  { %1439 = vmatprep.subr.bf16.mxu0 %v5662_v52  ;;  %1480 = vmatprep.subr.bf16.mxu1 %v5663_v39 }
 0x183   :  { %1440 = vmatpush1.bf16.msra.mxu0 %v5664_v22  ;;  %1481 = vmatpush1.bf16.msra.mxu1 %v5665_v63 }
 0x184   :  { %1441 = vmatprep.subr.bf16.mxu0 %v5666_v3  ;;  %1482 = vmatprep.subr.bf16.mxu1 %v5667_v51 }
 0x187   :  { %1442 = vmatpush1.bf16.msra.mxu0 %v5668_v6  ;;  %1483 = vmatpush1.bf16.msra.mxu1 %v5669_v14 }
 0x188   :  { %1443 = vmatprep.subr.bf16.mxu0 %v5670_v10  ;;  %1484 = vmatprep.subr.bf16.mxu1 %v5671_v43 }
 0x18b   :  { %1444 = vmatpush1.bf16.msra.mxu0 %v5672_v47  ;;  %1485 = vmatpush1.bf16.msra.mxu1 %v5673_v49 }
 0x18c   :  { %1445 = vmatprep.subr.bf16.mxu0 %v5674_v12  ;;  %1486 = vmatprep.subr.bf16.mxu1 %v5675_v48 }
 0x18f   :  { %1446 = vmatpush1.bf16.msra.mxu0 %v5676_v45  ;;  %1487 = vmatpush1.bf16.msra.mxu1 %v5677_v4 }
 0x190   :  { %1514 = vmatprep.subr.bf16.mxu0 %v5678_v53  ;;  %1555 = vmatprep.subr.bf16.mxu1 %v5679_v8 }
 0x225   :  { %v1229_v59 = vpop.f32.mrb[32].mxu0  ;;  %v1270_v44 = vpop.f32.mrb[48].mxu1 }
 0x226   :  { %v1360_v16 = vadd.f32 %v1229_v59, %v5680_v61  ;;  %v1362_v42 = vadd.f32 %v1270_v44, %v5681_v1  ;;  %v1231_v50 = vpop.f32.mrb[33].mxu0  ;;  %v1272_v36 = vpop.f32.mrb[49].mxu1 }
 0x227   :  { %v1361_v37 = vadd.f32 %v1231_v50, %v5682_v55  ;;  %v1363_v54 = vadd.f32 %v1272_v36, %v5683_v57  ;;  %v1233_v52 = vpop.f32.mrb[34].mxu0  ;;  %v1274_v39 = vpop.f32.mrb[50].mxu1  ;;  %v5685_v50 = vld [vmem:[#allocation84_spill] sm:$0xff] }
 0x228   :  { %v3048_v22 = vmul.f32 -1.442695, %v1360_v16  ;;  %v1234_v63 = vpop.f32.mrb[35].mxu0  ;;  %v1275_v3 = vpop.f32.mrb[51].mxu1  ;;  %v5684_v16 = vld [vmem:[#allocation67_spill] sm:$0xff] }
 0x229   :  { %v3049_v51 = vmul.f32 -1.442695, %v1361_v37  ;;  %v3050_v6 = vmul.f32 -1.442695, %v1363_v54  ;;  %v5686_v37 = vld [vmem:[#allocation69_spill] sm:$0xff] }
 0x22a   :  { %3275 = vpow2.f32 %v3048_v22  ;;  %v5687_v54 = vld [vmem:[#allocation85_spill] sm:$0xff] }
 0x22b   :  { %3277 = vpow2.f32 %v3049_v51 }
 0x22c   :  { %3279 = vpow2.f32 %v3050_v6 }
 0x22d   :  { %3281 = vtanh.f32 %v1362_v42 }
 0x234   :  { %v3276_v14 = vpop.eup %3275 }
 0x235   :  { %v3278_v10 = vpop.eup %3277  ;;  %v1367_v43 = vadd.f32 1.0, %v3276_v14 }
 0x236   :  { %v1373_v47 = vadd.f32 1.0, %v3278_v10  ;;  %v3280_v49 = vpop.eup %3279 }
 0x237   :  { %3283 = vrcp.f32 %v1367_v43  ;;  %v3282_v12 = vpop.eup %3281  ;;  %v1380_v53 = vadd.f32 1.0, %v3280_v49 }
 0x238   :  { %3285 = vrcp.f32 %v1373_v47 }
 0x239   :  { %3287 = vrcp.f32 %v1380_v53  ;;  %v4698_v53 = vld [vmem:[%s5480_s2 + $0xac] ss:$16 sps:$4 sm:$0xff]  }
 0x23a   :  { %5698 = vst [vmem:[#allocation21_spill] sm:$0xff] %v4698_v53 }
 0x241   :  { %v3284_v48 = vpop.eup %3283 }
 0x242   :  { %v3286_v45 = vpop.eup %3285  ;;  %v1384_v4 = vmul.f32 %v3284_v48, %v3282_v12 }
 0x243   :  { %v1383_v8 = vmul.f32 %v3286_v45, %v4443_v18  ;;  %v3288_v6 = vpop.eup %3287 }
 0x245   :  { %v4529_v59 = vadd.f32 %v1384_v4, %v1383_v8  ;;  %v1312_v44 = vpop.f32.mrb[36].mxu0  ;;  %v1353_v61 = vpop.f32.mrb[52].mxu1  ;;  %v4704_v8 = vld [vmem:[%s5480_s2 + $0xa0] ss:$16 sps:$4 sm:$0xff]  }
 0x246   :  { %v1388_v1 = vadd.f32 %v1312_v44, %v5684_v16  ;;  %v1390_v42 = vadd.f32 %v1353_v61, %v5685_v50  ;;  %v1314_v36 = vpop.f32.mrb[37].mxu0  ;;  %v1355_v55 = vpop.f32.mrb[53].mxu1  ;;  %5699 = vst [vmem:[#allocation8_spill] sm:$0xff] %v4704_v8  ;;  %v4710_v44 = vld [vmem:[%s5480_s2 + $0xa8] ss:$16 sps:$4 sm:$0xff]  }
 0x247   :  { %v1389_v57 = vadd.f32 %v1314_v36, %v5686_v37  ;;  %v1391_v52 = vadd.f32 %v1355_v55, %v5687_v54  ;;  %v1316_v39 = vpop.f32.mrb[38].mxu0  ;;  %v1357_v22 = vpop.f32.mrb[54].mxu1  ;;  %3289 = vtanh.f32 %v4529_v59  ;;  %5700 = vst [vmem:[#allocation22_spill] sm:$0xff] %v4710_v44  ;;  %v4716_v61 = vld [vmem:[%s5480_s2 + $0xc4] ss:$16 sps:$4 sm:$0xff]  }
 0x248   :  { %v3051_v18 = vmul.f32 -1.442695, %v1388_v1  ;;  %v1317_v63 = vpop.f32.mrb[39].mxu0  ;;  %v1358_v3 = vpop.f32.mrb[55].mxu1  ;;  %5701 = vst [vmem:[#allocation9_spill] sm:$0xff] %v4716_v61  ;;  %v5711_v22 = vld [vmem:[#allocation37_spill] sm:$0xff] }
 0x249   :  { %v3052_v51 = vmul.f32 -1.442695, %v1389_v57  ;;  %v3053_v10 = vmul.f32 -1.442695, %v1391_v52  ;;  %v4722_v16 = vld [vmem:[%s5480_s2 + $0xcc] ss:$16 sps:$4 sm:$0xff]  }
 0x24a   :  { %3291 = vpow2.f32 %v3051_v18  ;;  %5702 = vst [vmem:[#allocation23_spill] sm:$0xff] %v4722_v16  ;;  %v4728_v1 = vld [vmem:[%s5480_s2 + $0xc0] ss:$16 sps:$4 sm:$0xff]   ;;  %v4734_v50 = vld [vmem:[%s5480_s2 + $0xc8] ss:$16 sps:$4 sm:$0xff]  }
 0x24b   :  { %3293 = vpow2.f32 %v3052_v51  ;;  %5703 = vst [vmem:[#allocation10_spill] sm:$0xff] %v4728_v1  ;;  %5704 = vst [vmem:[#allocation24_spill] sm:$0xff] %v4734_v50  ;;  %v4746_v36 = vld [vmem:[%s5480_s2 + $0xec] ss:$16 sps:$4 sm:$0xff]   ;;  %v4752_v55 = vld [vmem:[%s5480_s2 + $0xe0] ss:$16 sps:$4 sm:$0xff]  }
 0x24c   :  { %3295 = vpow2.f32 %v3053_v10  ;;  %5706 = vst [vmem:[#allocation25_spill] sm:$0xff] %v4746_v36  ;;  %5707 = vst [vmem:[#allocation12_spill] sm:$0xff] %v4752_v55  ;;  %v4758_v37 = vld [vmem:[%s5480_s2 + $0xe8] ss:$16 sps:$4 sm:$0xff]   ;;  %v4764_v57 = vld [vmem:[%s5481_s3 + $0x4] ss:$16 sps:$4 sm:$0xff]  }
 0x24d   :  { %3297 = vtanh.f32 %v1390_v42  ;;  %v4740_v42 = vld [vmem:[%s5480_s2 + $0xe4] ss:$16 sps:$4 sm:$0xff]   ;;  %5708 = vst [vmem:[#allocation26_spill] sm:$0xff] %v4758_v37  ;;  %5709 = vst [vmem:[#allocation13_spill] sm:$0xff] %v4764_v57  ;;  %v4770_v54 = vld [vmem:[%s5481_s3 + $0xc] ss:$16 sps:$4 sm:$0xff]  }
 0x24e   :  { %5705 = vst [vmem:[#allocation11_spill] sm:$0xff] %v4740_v42  ;;  %5710 = vst [vmem:[#allocation27_spill] sm:$0xff] %v4770_v54  ;;  %v5712_v63 = vld [vmem:[#allocation50_spill] sm:$0xff] }
 0x251   :  { %v3290_v14 = vpop.eup %3289 }
 0x252   :  { %v1387_v43 = vmul.f32 %v3290_v14, %v3288_v6  ;;  %v5713_v14 = vld [vmem:[#allocation39_spill] sm:$0xff] }
 0x254   :  { %v3292_v47 = vpop.eup %3291  ;;  %v1430_v49 = vpack.c.bf16 %v1387_v43, %v1387_v43  ;;  %v5714_v43 = vld [vmem:[#allocation52_spill] sm:$0xff] }
 0x255   :  { %v3294_v12 = vpop.eup %3293  ;;  %v1395_v48 = vadd.f32 1.0, %v3292_v47 }
 0x256   :  { %v1401_v45 = vadd.f32 1.0, %v3294_v12  ;;  %1464 = vmatmul.mubr.bf16.vlgmr.msra.gmra.mrb[40].mxu0 %v1430_v49  ;;  %1505 = vmatmul.mubr.bf16.vlgmr.msra.gmra.mrb[56].mxu1 %v1430_v49 }
 0x257   :  { %3299 = vrcp.f32 %v1395_v48  ;;  %1515 = vmatpush1.bf16.msra.mxu0 %v3895_v56  ;;  %1556 = vmatpush1.bf16.msra.mxu1 %v4090_v23  ;;  %v3296_v56 = vpop.eup %3295 }
 0x258   :  { %3301 = vrcp.f32 %v1401_v45  ;;  %1516 = vmatprep.subr.bf16.mxu0 %v3906_v58  ;;  %1557 = vmatprep.subr.bf16.mxu1 %v4096_v24  ;;  %v3298_v58 = vpop.eup %3297 }
 0x259   :  { %1546 = vmatprep.mubr.bf16.mxu0 %v5652_v40  ;;  %1587 = vmatprep.mubr.bf16.mxu1 %v5652_v40 }
 0x25b   :  { %1517 = vmatpush1.bf16.msra.mxu0 %v3921_v60  ;;  %1558 = vmatpush1.bf16.msra.mxu1 %v4105_v25  ;;  %v1408_v60 = vadd.f32 1.0, %v3296_v56 }
 0x25c   :  { %1518 = vmatprep.subr.bf16.mxu0 %v3933_v62  ;;  %1559 = vmatprep.subr.bf16.mxu1 %v4112_v26  ;;  %v4620_v26 = vld [vmem:[%s5480_s2 + $0x44] ss:$16 sps:$4 sm:$0xff]  }
 0x25d   :  { %3303 = vrcp.f32 %v1408_v60 }
 0x25f   :  { %1519 = vmatpush1.bf16.msra.mxu0 %v3947_v0  ;;  %1560 = vmatpush1.bf16.msra.mxu1 %v4121_v27  ;;  %v4626_v27 = vld [vmem:[%s5480_s2 + $0x4c] ss:$16 sps:$4 sm:$0xff]  }
 0x260   :  { %1520 = vmatprep.subr.bf16.mxu0 %v3959_v2  ;;  %1561 = vmatprep.subr.bf16.mxu1 %v4127_v28  ;;  %v4632_v28 = vld [vmem:[%s5480_s2 + $0x40] ss:$16 sps:$4 sm:$0xff]  }
 0x261   :  { %v3300_v23 = vpop.eup %3299 }
 0x262   :  { %v3302_v24 = vpop.eup %3301  ;;  %v1412_v4 = vmul.f32 %v3300_v23, %v3298_v58 }
 0x263   :  { %v1411_v25 = vmul.f32 %v3302_v24, %v4462_v46  ;;  %1521 = vmatpush1.bf16.msra.mxu0 %v3973_v5  ;;  %1562 = vmatpush1.bf16.msra.mxu1 %v4135_v29  ;;  %v4638_v29 = vld [vmem:[%s5480_s2 + $0x48] ss:$16 sps:$4 sm:$0xff]   ;;  %v4692_v46 = vld [vmem:[%s5480_s2 + $0xa4] ss:$16 sps:$4 sm:$0xff]  }
 0x264   :  { %1522 = vmatprep.subr.bf16.mxu0 %v3985_v7  ;;  %1563 = vmatprep.subr.bf16.mxu1 %v4141_v30  ;;  %5688 = vst [vmem:[#allocation16_spill] sm:$0xff] %v4638_v29  ;;  %v4644_v30 = vld [vmem:[%s5480_s2 + $0x64] ss:$16 sps:$4 sm:$0xff]   ;;  %5697 = vst [vmem:[#allocation7_spill] sm:$0xff] %v4692_v46 }
 0x265   :  { %v4555_v62 = vadd.f32 %v1412_v4, %v1411_v25  ;;  %5689 = vst [vmem:[#allocation3_spill] sm:$0xff] %v4644_v30 }
 0x267   :  { %1523 = vmatpush1.bf16.msra.mxu0 %v3998_v9  ;;  %1564 = vmatpush1.bf16.msra.mxu1 %v4149_v31  ;;  %3305 = vtanh.f32 %v4555_v62  ;;  %v3304_v0 = vpop.eup %3303  ;;  %v4576_v9 = vld [vmem:[%s5480_s2 + $0xc] ss:$16 sps:$4 sm:$0xff]  }
 0x268   :  { %1524 = vmatprep.subr.bf16.mxu0 %v4010_v11  ;;  %1565 = vmatprep.subr.bf16.mxu1 %v4155_v32  ;;  %v4582_v11 = vld [vmem:[%s5480_s2] ss:$16 sps:$4 sm:$0xff]   ;;  %v4650_v31 = vld [vmem:[%s5480_s2 + $0x6c] ss:$16 sps:$4 sm:$0xff]  }
 0x269   :  { %5690 = vst [vmem:[#allocation17_spill] sm:$0xff] %v4650_v31  ;;  %v4656_v32 = vld [vmem:[%s5480_s2 + $0x60] ss:$16 sps:$4 sm:$0xff]  }
 0x26a   :  { %5691 = vst [vmem:[#allocation4_spill] sm:$0xff] %v4656_v32 }
 0x26b   :  { %1525 = vmatpush1.bf16.msra.mxu0 %v4024_v13  ;;  %1566 = vmatpush1.bf16.msra.mxu1 %v4163_v33  ;;  %v4588_v13 = vld [vmem:[%s5480_s2 + $0x8] ss:$16 sps:$4 sm:$0xff]  }
 0x26c   :  { %1526 = vmatprep.subr.bf16.mxu0 %v4036_v15  ;;  %1567 = vmatprep.subr.bf16.mxu1 %v4169_v34  ;;  %v4594_v15 = vld [vmem:[%s5480_s2 + $0x24] ss:$16 sps:$4 sm:$0xff]   ;;  %v4662_v33 = vld [vmem:[%s5480_s2 + $0x68] ss:$16 sps:$4 sm:$0xff]  }
 0x26d   :  { %5692 = vst [vmem:[#allocation18_spill] sm:$0xff] %v4662_v33  ;;  %v4668_v34 = vld [vmem:[%s5480_s2 + $0x84] ss:$16 sps:$4 sm:$0xff]  }
 0x26e   :  { %5693 = vst [vmem:[#allocation5_spill] sm:$0xff] %v4668_v34 }
 0x26f   :  { %1527 = vmatpush1.bf16.msra.mxu0 %v4049_v17  ;;  %1568 = vmatpush1.bf16.msra.mxu1 %v4177_v35  ;;  %v4600_v17 = vld [vmem:[%s5480_s2 + $0x2c] ss:$16 sps:$4 sm:$0xff]  }
 0x270   :  { %1528 = vmatprep.subr.bf16.mxu0 %v4061_v19  ;;  %1569 = vmatprep.subr.bf16.mxu1 %v4183_v38  ;;  %v4608_v19 = vld [vmem:[%s5480_s2 + $0x20] ss:$16 sps:$4 sm:$0xff]   ;;  %v4674_v35 = vld [vmem:[%s5480_s2 + $0x8c] ss:$16 sps:$4 sm:$0xff]  }
 0x271   :  { %v3306_v2 = vpop.eup %3305  ;;  %5694 = vst [vmem:[#allocation19_spill] sm:$0xff] %v4674_v35  ;;  %v4680_v38 = vld [vmem:[%s5480_s2 + $0x80] ss:$16 sps:$4 sm:$0xff]  }
 0x272   :  { %v1415_v5 = vmul.f32 %v3306_v2, %v3304_v0  ;;  %5695 = vst [vmem:[#allocation6_spill] sm:$0xff] %v4680_v38 }
 0x273   :  { %1529 = vmatpush1.bf16.msra.mxu0 %v4075_v21  ;;  %1570 = vmatpush1.bf16.msra.mxu1 %v4191_v41  ;;  %v4614_v21 = vld [vmem:[%s5480_s2 + $0x28] ss:$16 sps:$4 sm:$0xff]  }
 0x274   :  { %v1513_v7 = vpack.c.bf16 %v1415_v5, %v1415_v5  ;;  %1667 = vmatprep.subr.bf16.mxu0 %v4486_v20  ;;  %1708 = vmatprep.subr.bf16.mxu1 %v4576_v9  ;;  %v4686_v41 = vld [vmem:[%s5480_s2 + $0x88] ss:$16 sps:$4 sm:$0xff]  }
 0x275   :  { %5696 = vst [vmem:[#allocation20_spill] sm:$0xff] %v4686_v41 }
 0x276   :  { %1547 = vmatmul.mubr.bf16.vlgmr.msra.gmra.mrb[44].mxu0 %v1513_v7  ;;  %1588 = vmatmul.mubr.bf16.vlgmr.msra.gmra.mrb[60].mxu1 %v1513_v7 }
 0x277   :  { %1668 = vmatpush1.bf16.msra.mxu0 %v4582_v11  ;;  %1709 = vmatpush1.bf16.msra.mxu1 %v4588_v13 }
 0x278   :  { %1669 = vmatprep.subr.bf16.mxu0 %v4594_v15  ;;  %1710 = vmatprep.subr.bf16.mxu1 %v4600_v17 }
 0x279   :  { %1699 = vmatprep.mubr.bf16.mxu0 %v5652_v40  ;;  %1740 = vmatprep.mubr.bf16.mxu1 %v5652_v40 }
 0x27b   :  { %1670 = vmatpush1.bf16.msra.mxu0 %v4608_v19  ;;  %1711 = vmatpush1.bf16.msra.mxu1 %v4614_v21 }
 0x27c   :  { %1671 = vmatprep.subr.bf16.mxu0 %v4620_v26  ;;  %1712 = vmatprep.subr.bf16.mxu1 %v4626_v27 }
 0x27f   :  { %1672 = vmatpush1.bf16.msra.mxu0 %v4632_v28  ;;  %1713 = vmatpush1.bf16.msra.mxu1 %v4638_v29 }
 0x280   :  { %1673 = vmatprep.subr.bf16.mxu0 %v4644_v30  ;;  %1714 = vmatprep.subr.bf16.mxu1 %v4650_v31 }
 0x283   :  { %1674 = vmatpush1.bf16.msra.mxu0 %v4656_v32  ;;  %1715 = vmatpush1.bf16.msra.mxu1 %v4662_v33 }
 0x284   :  { %1675 = vmatprep.subr.bf16.mxu0 %v4668_v34  ;;  %1716 = vmatprep.subr.bf16.mxu1 %v4674_v35 }
 0x287   :  { %1676 = vmatpush1.bf16.msra.mxu0 %v4680_v38  ;;  %1717 = vmatpush1.bf16.msra.mxu1 %v4686_v41 }
 0x288   :  { %1677 = vmatprep.subr.bf16.mxu0 %v4692_v46  ;;  %1718 = vmatprep.subr.bf16.mxu1 %v4698_v53 }
 0x28b   :  { %1678 = vmatpush1.bf16.msra.mxu0 %v4704_v8  ;;  %1719 = vmatpush1.bf16.msra.mxu1 %v4710_v44 }
 0x28c   :  { %1679 = vmatprep.subr.bf16.mxu0 %v4716_v61  ;;  %1720 = vmatprep.subr.bf16.mxu1 %v4722_v16 }
 0x28f   :  { %1680 = vmatpush1.bf16.msra.mxu0 %v4728_v1  ;;  %1721 = vmatpush1.bf16.msra.mxu1 %v4734_v50 }
 0x290   :  { %1681 = vmatprep.subr.bf16.mxu0 %v4740_v42  ;;  %1722 = vmatprep.subr.bf16.mxu1 %v4746_v36 }
 0x293   :  { %1682 = vmatpush1.bf16.msra.mxu0 %v4752_v55  ;;  %1723 = vmatpush1.bf16.msra.mxu1 %v4758_v37 }
 0x294   :  { %1750 = vmatprep.subr.bf16.mxu0 %v4764_v57  ;;  %1791 = vmatprep.subr.bf16.mxu1 %v4770_v54 }
 0x329   :  { %v1465_v52 = vpop.f32.mrb[40].mxu0  ;;  %v1506_v39 = vpop.f32.mrb[56].mxu1 }
 0x32a   :  { %v1596_v18 = vadd.f32 %v1465_v52, %v5711_v22  ;;  %v1598_v3 = vadd.f32 %v1506_v39, %v5712_v63  ;;  %v1467_v51 = vpop.f32.mrb[41].mxu0  ;;  %v1508_v6 = vpop.f32.mrb[57].mxu1 }
 0x32b   :  { %v1597_v10 = vadd.f32 %v1467_v51, %v5713_v14  ;;  %v1599_v47 = vadd.f32 %v1508_v6, %v5714_v43  ;;  %v1469_v49 = vpop.f32.mrb[42].mxu0  ;;  %v1510_v12 = vpop.f32.mrb[58].mxu1  ;;  %v5715_v6 = vld [vmem:[#allocation63_spill] sm:$0xff] }
 0x32c   :  { %v3054_v48 = vmul.f32 -1.442695, %v1596_v18  ;;  %v1470_v45 = vpop.f32.mrb[43].mxu0  ;;  %v1511_v56 = vpop.f32.mrb[59].mxu1  ;;  %v5717_v49 = vld [vmem:[#allocation65_spill] sm:$0xff] }
 0x32d   :  { %v3055_v58 = vmul.f32 -1.442695, %v1597_v10  ;;  %v3056_v23 = vmul.f32 -1.442695, %v1599_v47  ;;  %v5716_v10 = vld [vmem:[#allocation82_spill] sm:$0xff] }
 0x32e   :  { %3307 = vpow2.f32 %v3054_v48  ;;  %v5718_v48 = vld [vmem:[#allocation83_spill] sm:$0xff] }
 0x32f   :  { %3309 = vpow2.f32 %v3055_v58 }
 0x330   :  { %3311 = vpow2.f32 %v3056_v23 }
 0x331   :  { %3313 = vtanh.f32 %v1598_v3 }
 0x338   :  { %v3308_v24 = vpop.eup %3307 }
 0x339   :  { %v3310_v4 = vpop.eup %3309  ;;  %v1603_v60 = vadd.f32 1.0, %v3308_v24 }
 0x33a   :  { %v1609_v25 = vadd.f32 1.0, %v3310_v4  ;;  %v3312_v0 = vpop.eup %3311 }
 0x33b   :  { %3315 = vrcp.f32 %v1603_v60  ;;  %v3314_v2 = vpop.eup %3313  ;;  %v1616_v39 = vadd.f32 1.0, %v3312_v0 }
 0x33c   :  { %3317 = vrcp.f32 %v1609_v25 }
 0x33d   :  { %3319 = vrcp.f32 %v1616_v39 }
 0x345   :  { %v3316_v5 = vpop.eup %3315 }
 0x346   :  { %v3318_v7 = vpop.eup %3317  ;;  %v1620_v52 = vmul.f32 %v3316_v5, %v3314_v2 }
 0x347   :  { %v1619_v22 = vmul.f32 %v3318_v7, %v4529_v59  ;;  %v3320_v60 = vpop.eup %3319 }
 0x349   :  { %v4778_v18 = vadd.f32 %v1620_v52, %v1619_v22  ;;  %v1548_v63 = vpop.f32.mrb[44].mxu0  ;;  %v1589_v51 = vpop.f32.mrb[60].mxu1 }
 0x34a   :  { %v1624_v14 = vadd.f32 %v1548_v63, %v5715_v6  ;;  %v1626_v3 = vadd.f32 %v1589_v51, %v5716_v10  ;;  %v1550_v43 = vpop.f32.mrb[45].mxu0  ;;  %v1591_v47 = vpop.f32.mrb[61].mxu1  ;;  %v4788_v63 = vld [vmem:[%s5481_s3] ss:$16 sps:$4 sm:$0xff]   ;;  %v4794_v51 = vld [vmem:[%s5481_s3 + $0x8] ss:$16 sps:$4 sm:$0xff]  }
 0x34b   :  { %v1625_v12 = vadd.f32 %v1550_v43, %v5717_v49  ;;  %v1627_v45 = vadd.f32 %v1591_v47, %v5718_v48  ;;  %v1552_v56 = vpop.f32.mrb[46].mxu0  ;;  %v1593_v58 = vpop.f32.mrb[62].mxu1  ;;  %3321 = vtanh.f32 %v4778_v18  ;;  %v4800_v6 = vld [vmem:[%s5481_s3 + $0x24] ss:$16 sps:$4 sm:$0xff]   ;;  %v4814_v10 = vld [vmem:[%s5481_s3 + $0x20] ss:$16 sps:$4 sm:$0xff]  }
 0x34c   :  { %v3057_v59 = vmul.f32 -1.442695, %v1624_v14  ;;  %v1553_v23 = vpop.f32.mrb[47].mxu0  ;;  %v1594_v24 = vpop.f32.mrb[63].mxu1  ;;  %v4806_v14 = vld [vmem:[%s5481_s3 + $0x2c] ss:$16 sps:$4 sm:$0xff]  }
 0x34d   :  { %v3058_v4 = vmul.f32 -1.442695, %v1625_v12  ;;  %v3059_v0 = vmul.f32 -1.442695, %v1627_v45  ;;  %v4826_v43 = vld [vmem:[%s5481_s3 + $0x44] ss:$16 sps:$4 sm:$0xff]  }
 0x34e   :  { %3323 = vpow2.f32 %v3057_v59  ;;  %v4832_v47 = vld [vmem:[%s5481_s3 + $0x4c] ss:$16 sps:$4 sm:$0xff]   ;;  %v4838_v12 = vld [vmem:[%s5481_s3 + $0x40] ss:$16 sps:$4 sm:$0xff]   ;;  %v4844_v48 = vld [vmem:[%s5481_s3 + $0x48] ss:$16 sps:$4 sm:$0xff]  }
 0x34f   :  { %3325 = vpow2.f32 %v3058_v4  ;;  %v4850_v56 = vld [vmem:[%s5481_s3 + $0x64] ss:$16 sps:$4 sm:$0xff]   ;;  %v4856_v58 = vld [vmem:[%s5481_s3 + $0x6c] ss:$16 sps:$4 sm:$0xff]  }
 0x350   :  { %3327 = vpow2.f32 %v3059_v0  ;;  %v4869_v0 = vld [vmem:[%s5481_s3 + $0x68] ss:$16 sps:$4 sm:$0xff]  }
 0x351   :  { %3329 = vtanh.f32 %v1626_v3  ;;  %v4820_v3 = vld [vmem:[%s5481_s3 + $0x28] ss:$16 sps:$4 sm:$0xff]  }
 0x355   :  { %v3322_v25 = vpop.eup %3321 }
 0x356   :  { %v1623_v2 = vmul.f32 %v3322_v25, %v3320_v60  ;;  %v4863_v25 = vld [vmem:[%s5481_s3 + $0x60] ss:$16 sps:$4 sm:$0xff]  }
 0x358   :  { %v3324_v5 = vpop.eup %3323  ;;  %v1666_v7 = vpack.c.bf16 %v1623_v2, %v1623_v2  ;;  %v4875_v2 = vld [vmem:[%s5481_s3 + $0x84] ss:$16 sps:$4 sm:$0xff]  }
 0x359   :  { %v3326_v52 = vpop.eup %3325  ;;  %v1631_v39 = vadd.f32 1.0, %v3324_v5 }
 0x35a   :  { %v1637_v22 = vadd.f32 1.0, %v3326_v52  ;;  %1700 = vmatmul.mubr.bf16.vlgmr.msra.gmra.mrb[48].mxu0 %v1666_v7  ;;  %1741 = vmatmul.mubr.bf16.vlgmr.msra.gmra.mrb[64].mxu1 %v1666_v7  ;;  %v3328_v49 = vpop.eup %3327  ;;  %v4889_v7 = vld [vmem:[%s5481_s3 + $0x80] ss:$16 sps:$4 sm:$0xff]   ;;  %v4895_v52 = vld [vmem:[%s5481_s3 + $0x88] ss:$16 sps:$4 sm:$0xff]  }
 0x35b   :  { %3331 = vrcp.f32 %v1631_v39  ;;  %1751 = vmatpush1.bf16.msra.mxu0 %v4788_v63  ;;  %1792 = vmatpush1.bf16.msra.mxu1 %v4794_v51  ;;  %v3330_v45 = vpop.eup %3329  ;;  %v1644_v4 = vadd.f32 1.0, %v3328_v49  ;;  %v4902_v39 = vld [vmem:[%s5481_s3 + $0xa4] ss:$16 sps:$4 sm:$0xff]   ;;  %v4914_v49 = vld [vmem:[%s5481_s3 + $0xa0] ss:$16 sps:$4 sm:$0xff]  }
 0x35c   :  { %3333 = vrcp.f32 %v1637_v22  ;;  %1752 = vmatprep.subr.bf16.mxu0 %v4800_v6  ;;  %1793 = vmatprep.subr.bf16.mxu1 %v4806_v14  ;;  %v4908_v22 = vld [vmem:[%s5481_s3 + $0xac] ss:$16 sps:$4 sm:$0xff]   ;;  %5719 = vst [vmem:[#allocation14_spill] sm:$0xff] %v4914_v49 }
 0x35d   :  { %1782 = vmatprep.mubr.bf16.mxu0 %v5652_v40  ;;  %1823 = vmatprep.mubr.bf16.mxu1 %v5652_v40  ;;  %3335 = vrcp.f32 %v1644_v4  ;;  %v4944_v4 = vld [vmem:[%s5481_s3 + $0xc8] ss:$16 sps:$4 sm:$0xff]  }
 0x35e   :  { %5724 = vst [vmem:[#allocation46_spill] sm:$0xff] %v4944_v4 }
 0x35f   :  { %1753 = vmatpush1.bf16.msra.mxu0 %v4814_v10  ;;  %1794 = vmatpush1.bf16.msra.mxu1 %v4820_v3 }
 0x360   :  { %1754 = vmatprep.subr.bf16.mxu0 %v4826_v43  ;;  %1795 = vmatprep.subr.bf16.mxu1 %v4832_v47 }
 0x363   :  { %1755 = vmatpush1.bf16.msra.mxu0 %v4838_v12  ;;  %1796 = vmatpush1.bf16.msra.mxu1 %v4844_v48 }
 0x364   :  { %1756 = vmatprep.subr.bf16.mxu0 %v4850_v56  ;;  %1797 = vmatprep.subr.bf16.mxu1 %v4856_v58 }
 0x365   :  { %v3332_v59 = vpop.eup %3331 }
 0x366   :  { %v3334_v23 = vpop.eup %3333  ;;  %v1648_v24 = vmul.f32 %v3332_v59, %v3330_v45  ;;  %v4920_v45 = vld [vmem:[%s5481_s3 + $0xa8] ss:$16 sps:$4 sm:$0xff]   ;;  %v4926_v59 = vld [vmem:[%s5481_s3 + $0xc4] ss:$16 sps:$4 sm:$0xff]  }
 0x367   :  { %v1647_v60 = vmul.f32 %v3334_v23, %v4555_v62  ;;  %1757 = vmatpush1.bf16.msra.mxu0 %v4863_v25  ;;  %1798 = vmatpush1.bf16.msra.mxu1 %v4869_v0  ;;  %v4881_v62 = vld [vmem:[%s5481_s3 + $0x8c] ss:$16 sps:$4 sm:$0xff]   ;;  %5720 = vst [vmem:[#allocation28_spill] sm:$0xff] %v4920_v45  ;;  %5721 = vst [vmem:[#allocation15_spill] sm:$0xff] %v4926_v59 }
 0x368   :  { %1758 = vmatprep.subr.bf16.mxu0 %v4875_v2  ;;  %1799 = vmatprep.subr.bf16.mxu1 %v4881_v62  ;;  %v4932_v23 = vld [vmem:[%s5481_s3 + $0xcc] ss:$16 sps:$4 sm:$0xff]  }
 0x369   :  { %v4884_v5 = vadd.f32 %v1648_v24, %v1647_v60  ;;  %5722 = vst [vmem:[#allocation29_spill] sm:$0xff] %v4932_v23  ;;  %v4938_v24 = vld [vmem:[%s5481_s3 + $0xc0] ss:$16 sps:$4 sm:$0xff]   ;;  %v3336_v60 = vpop.eup %3335 }
 0x36a   :  { %5723 = vst [vmem:[#allocation33_spill] sm:$0xff] %v4938_v24 }
 0x36b   :  { %1759 = vmatpush1.bf16.msra.mxu0 %v4889_v7  ;;  %1800 = vmatpush1.bf16.msra.mxu1 %v4895_v52  ;;  %3337 = vtanh.f32 %v4884_v5 }
 0x36c   :  { %1760 = vmatprep.subr.bf16.mxu0 %v4902_v39  ;;  %1801 = vmatprep.subr.bf16.mxu1 %v4908_v22 }
 0x36f   :  { %1761 = vmatpush1.bf16.msra.mxu0 %v4914_v49  ;;  %1802 = vmatpush1.bf16.msra.mxu1 %v4920_v45 }
 0x370   :  { %1762 = vmatprep.subr.bf16.mxu0 %v4926_v59  ;;  %1803 = vmatprep.subr.bf16.mxu1 %v4932_v23  ;;  %v4950_v59 = vld [vmem:[%s5481_s3 + $0xe4] ss:$16 sps:$4 sm:$0xff]   ;;  %v4956_v23 = vld [vmem:[%s5481_s3 + $0xec] ss:$16 sps:$4 sm:$0xff]  }
 0x371   :  { %5725 = vst [vmem:[#allocation35_spill] sm:$0xff] %v4950_v59 }
 0x373   :  { %1763 = vmatpush1.bf16.msra.mxu0 %v4938_v24  ;;  %1804 = vmatpush1.bf16.msra.mxu1 %v4944_v4  ;;  %v4962_v4 = vld [vmem:[%s5481_s3 + $0xe0] ss:$16 sps:$4 sm:$0xff]  }
 0x374   :  { %1764 = vmatprep.subr.bf16.mxu0 %v4950_v59  ;;  %1805 = vmatprep.subr.bf16.mxu1 %v4956_v23  ;;  %v4968_v59 = vld [vmem:[%s5481_s3 + $0xe8] ss:$16 sps:$4 sm:$0xff]  }
 0x375   :  { %v3338_v24 = vpop.eup %3337 }
 0x376   :  { %v1651_v45 = vmul.f32 %v3338_v24, %v3336_v60  ;;  %v5726_v24 = vld [vmem:[#allocation41_spill] sm:$0xff] }
 0x377   :  { %1765 = vmatpush1.bf16.msra.mxu0 %v4962_v4  ;;  %1806 = vmatpush1.bf16.msra.mxu1 %v4968_v59 }
 0x378   :  { %v1749_v49 = vpack.c.bf16 %v1651_v45, %v1651_v45  ;;  %1897 = vmatprep.subr.bf16.mxu0 %v4486_v20  ;;  %1938 = vmatprep.subr.bf16.mxu1 %v4576_v9 }
 0x37a   :  { %1783 = vmatmul.mubr.bf16.vlgmr.msra.gmra.mrb[52].mxu0 %v1749_v49  ;;  %1824 = vmatmul.mubr.bf16.vlgmr.msra.gmra.mrb[68].mxu1 %v1749_v49 }
 0x37b   :  { %1898 = vmatpush1.bf16.msra.mxu0 %v4582_v11  ;;  %1939 = vmatpush1.bf16.msra.mxu1 %v4588_v13 }
 0x37c   :  { %1899 = vmatprep.subr.bf16.mxu0 %v4594_v15  ;;  %1940 = vmatprep.subr.bf16.mxu1 %v4600_v17 }
 0x37d   :  { %1929 = vmatprep.mubr.bf16.mxu0 %v5652_v40  ;;  %1970 = vmatprep.mubr.bf16.mxu1 %v5652_v40 }
 0x37f   :  { %1900 = vmatpush1.bf16.msra.mxu0 %v4608_v19  ;;  %1941 = vmatpush1.bf16.msra.mxu1 %v4614_v21 }
 0x380   :  { %1901 = vmatprep.subr.bf16.mxu0 %v4620_v26  ;;  %1942 = vmatprep.subr.bf16.mxu1 %v4626_v27 }
 0x383   :  { %1902 = vmatpush1.bf16.msra.mxu0 %v4632_v28  ;;  %1943 = vmatpush1.bf16.msra.mxu1 %v4638_v29 }
 0x384   :  { %1903 = vmatprep.subr.bf16.mxu0 %v4644_v30  ;;  %1944 = vmatprep.subr.bf16.mxu1 %v4650_v31 }
 0x387   :  { %1904 = vmatpush1.bf16.msra.mxu0 %v4656_v32  ;;  %1945 = vmatpush1.bf16.msra.mxu1 %v4662_v33 }
 0x388   :  { %1905 = vmatprep.subr.bf16.mxu0 %v4668_v34  ;;  %1946 = vmatprep.subr.bf16.mxu1 %v4674_v35 }
 0x38b   :  { %1906 = vmatpush1.bf16.msra.mxu0 %v4680_v38  ;;  %1947 = vmatpush1.bf16.msra.mxu1 %v4686_v41 }
 0x38c   :  { %1907 = vmatprep.subr.bf16.mxu0 %v4692_v46  ;;  %1948 = vmatprep.subr.bf16.mxu1 %v4698_v53 }
 0x38f   :  { %1908 = vmatpush1.bf16.msra.mxu0 %v4704_v8  ;;  %1949 = vmatpush1.bf16.msra.mxu1 %v4710_v44  ;;  %v5728_v44 = vld [vmem:[#allocation43_spill] sm:$0xff]  ;;  %v5729_v8 = vld [vmem:[#allocation56_spill] sm:$0xff] }
 0x390   :  { %1909 = vmatprep.subr.bf16.mxu0 %v4716_v61  ;;  %1950 = vmatprep.subr.bf16.mxu1 %v4722_v16  ;;  %v5727_v16 = vld [vmem:[#allocation54_spill] sm:$0xff] }
 0x393   :  { %1910 = vmatpush1.bf16.msra.mxu0 %v4728_v1  ;;  %1951 = vmatpush1.bf16.msra.mxu1 %v4734_v50 }
 0x394   :  { %1911 = vmatprep.subr.bf16.mxu0 %v4740_v42  ;;  %1952 = vmatprep.subr.bf16.mxu1 %v4746_v36 }
 0x397   :  { %1912 = vmatpush1.bf16.msra.mxu0 %v4752_v55  ;;  %1953 = vmatpush1.bf16.msra.mxu1 %v4758_v37 }
 0x398   :  { %1980 = vmatprep.subr.bf16.mxu0 %v4764_v57  ;;  %2021 = vmatprep.subr.bf16.mxu1 %v4770_v54 }
 0x42d   :  { %v1701_v49 = vpop.f32.mrb[48].mxu0  ;;  %v1742_v45 = vpop.f32.mrb[64].mxu1 }
 0x42e   :  { %v1832_v60 = vadd.f32 %v1701_v49, %v5726_v24  ;;  %v1834_v1 = vadd.f32 %v1742_v45, %v5727_v16  ;;  %v1703_v61 = vpop.f32.mrb[49].mxu0  ;;  %v1744_v50 = vpop.f32.mrb[65].mxu1  ;;  %v5732_v45 = vld [vmem:[#allocation61_spill] sm:$0xff] }
 0x42f   :  { %v1833_v42 = vadd.f32 %v1703_v61, %v5728_v44  ;;  %v1835_v36 = vadd.f32 %v1744_v50, %v5729_v8  ;;  %v1705_v53 = vpop.f32.mrb[50].mxu0  ;;  %v1746_v55 = vpop.f32.mrb[66].mxu1 }
 0x430   :  { %v3060_v46 = vmul.f32 -1.442695, %v1832_v60  ;;  %v1706_v37 = vpop.f32.mrb[51].mxu0  ;;  %v1747_v41 = vpop.f32.mrb[67].mxu1  ;;  %v5733_v60 = vld [vmem:[#allocation81_spill] sm:$0xff] }
 0x431   :  { %v3061_v57 = vmul.f32 -1.442695, %v1833_v42  ;;  %v3062_v54 = vmul.f32 -1.442695, %v1835_v36  ;;  %v5730_v37 = vld [vmem:[#allocation59_spill] sm:$0xff] }
 0x432   :  { %3339 = vpow2.f32 %v3060_v46 }
 0x433   :  { %3341 = vpow2.f32 %v3061_v57  ;;  %v5731_v57 = vld [vmem:[#allocation80_spill] sm:$0xff] }
 0x434   :  { %3343 = vpow2.f32 %v3062_v54 }
 0x435   :  { %3345 = vtanh.f32 %v1834_v1 }
 0x43c   :  { %v3340_v38 = vpop.eup %3339 }
 0x43d   :  { %v3342_v35 = vpop.eup %3341  ;;  %v1839_v49 = vadd.f32 1.0, %v3340_v38 }
 0x43e   :  { %v1845_v16 = vadd.f32 1.0, %v3342_v35  ;;  %v3344_v44 = vpop.eup %3343 }
 0x43f   :  { %3347 = vrcp.f32 %v1839_v49  ;;  %v3346_v61 = vpop.eup %3345  ;;  %v1852_v55 = vadd.f32 1.0, %v3344_v44 }
 0x440   :  { %3349 = vrcp.f32 %v1845_v16 }
 0x441   :  { %3351 = vrcp.f32 %v1852_v55 }
 0x449   :  { %v3348_v8 = vpop.eup %3347 }
 0x44a   :  { %v3350_v53 = vpop.eup %3349  ;;  %v1856_v50 = vmul.f32 %v3348_v8, %v3346_v61 }
 0x44b   :  { %v1855_v41 = vmul.f32 %v3350_v53, %v4778_v18 }
 0x44d   :  { %v5012_v42 = vadd.f32 %v1856_v50, %v1855_v41  ;;  %v1784_v46 = vpop.f32.mrb[52].mxu0  ;;  %v1825_v36 = vpop.f32.mrb[68].mxu1 }
 0x44e   :  { %v1860_v38 = vadd.f32 %v1784_v46, %v5730_v37  ;;  %v1862_v1 = vadd.f32 %v1825_v36, %v5731_v57  ;;  %v1786_v35 = vpop.f32.mrb[53].mxu0  ;;  %v1827_v54 = vpop.f32.mrb[69].mxu1 }
 0x44f   :  { %v1861_v24 = vadd.f32 %v1786_v35, %v5732_v45  ;;  %v1863_v49 = vadd.f32 %v1827_v54, %v5733_v60  ;;  %v1788_v16 = vpop.f32.mrb[54].mxu0  ;;  %v1829_v61 = vpop.f32.mrb[70].mxu1  ;;  %3353 = vtanh.f32 %v5012_v42 }
 0x450   :  { %v3063_v18 = vmul.f32 -1.442695, %v1860_v38  ;;  %v1789_v44 = vpop.f32.mrb[55].mxu0  ;;  %v1830_v8 = vpop.f32.mrb[71].mxu1 }
 0x451   :  { %v3064_v53 = vmul.f32 -1.442695, %v1861_v24  ;;  %v3352_v50 = vpop.eup %3351  ;;  %v3065_v41 = vmul.f32 -1.442695, %v1863_v49  ;;  %v5736_v44 = vld [vmem:[#allocation15_spill] sm:$0xff]  ;;  %v5737_v8 = vld [vmem:[#allocation29_spill] sm:$0xff] }
 0x452   :  { %3355 = vpow2.f32 %v3063_v18  ;;  %v5735_v18 = vld [vmem:[#allocation28_spill] sm:$0xff] }
 0x453   :  { %3357 = vpow2.f32 %v3064_v53  ;;  %v5738_v53 = vld [vmem:[#allocation33_spill] sm:$0xff] }
 0x454   :  { %3359 = vpow2.f32 %v3065_v41  ;;  %v5740_v41 = vld [vmem:[#allocation35_spill] sm:$0xff] }
 0x455   :  { %3361 = vtanh.f32 %v1862_v1 }
 0x459   :  { %v3354_v55 = vpop.eup %3353 }
 0x45a   :  { %v1859_v46 = vmul.f32 %v3354_v55, %v3352_v50  ;;  %v5739_v50 = vld [vmem:[#allocation46_spill] sm:$0xff] }
 0x45c   :  { %v3356_v36 = vpop.eup %3355  ;;  %v1896_v37 = vpack.c.bf16 %v1859_v46, %v1859_v46 }
 0x45d   :  { %v3358_v57 = vpop.eup %3357  ;;  %v1867_v35 = vadd.f32 1.0, %v3356_v36 }
 0x45e   :  { %v1873_v54 = vadd.f32 1.0, %v3358_v57  ;;  %1930 = vmatmul.mubr.bf16.vlgmr.msra.gmra.mrb[56].mxu0 %v1896_v37  ;;  %1971 = vmatmul.mubr.bf16.vlgmr.msra.gmra.mrb[72].mxu1 %v1896_v37  ;;  %v3360_v38 = vpop.eup %3359  ;;  %v5742_v57 = vld [vmem:[#allocation6_spill] sm:$0xff] }
 0x45f   :  { %3363 = vrcp.f32 %v1867_v35  ;;  %1981 = vmatpush1.bf16.msra.mxu0 %v4788_v63  ;;  %2022 = vmatpush1.bf16.msra.mxu1 %v4794_v51  ;;  %v3362_v1 = vpop.eup %3361  ;;  %v1880_v49 = vadd.f32 1.0, %v3360_v38  ;;  %v5743_v35 = vld [vmem:[#allocation20_spill] sm:$0xff]  ;;  %v5745_v38 = vld [vmem:[#allocation21_spill] sm:$0xff] }
 0x460   :  { %3365 = vrcp.f32 %v1873_v54  ;;  %1982 = vmatprep.subr.bf16.mxu0 %v4800_v6  ;;  %2023 = vmatprep.subr.bf16.mxu1 %v4806_v14  ;;  %v5744_v54 = vld [vmem:[#allocation7_spill] sm:$0xff] }
 0x461   :  { %2012 = vmatprep.mubr.bf16.mxu0 %v5652_v40  ;;  %2053 = vmatprep.mubr.bf16.mxu1 %v5652_v40  ;;  %3367 = vrcp.f32 %v1880_v49  ;;  %v5750_v49 = vld [vmem:[#allocation10_spill] sm:$0xff] }
 0x463   :  { %1983 = vmatpush1.bf16.msra.mxu0 %v4814_v10  ;;  %2024 = vmatpush1.bf16.msra.mxu1 %v4820_v3 }
 0x464   :  { %1984 = vmatprep.subr.bf16.mxu0 %v4826_v43  ;;  %2025 = vmatprep.subr.bf16.mxu1 %v4832_v47 }
 0x467   :  { %1985 = vmatpush1.bf16.msra.mxu0 %v4838_v12  ;;  %2026 = vmatpush1.bf16.msra.mxu1 %v4844_v48 }
 0x468   :  { %1986 = vmatprep.subr.bf16.mxu0 %v4850_v56  ;;  %2027 = vmatprep.subr.bf16.mxu1 %v4856_v58 }
 0x469   :  { %v3364_v45 = vpop.eup %3363 }
 0x46a   :  { %v3366_v24 = vpop.eup %3365  ;;  %v1884_v60 = vmul.f32 %v3364_v45, %v3362_v1  ;;  %v5746_v1 = vld [vmem:[#allocation8_spill] sm:$0xff]  ;;  %v5747_v45 = vld [vmem:[#allocation22_spill] sm:$0xff] }
 0x46b   :  { %v1883_v16 = vmul.f32 %v3366_v24, %v4884_v5  ;;  %1987 = vmatpush1.bf16.msra.mxu0 %v4863_v25  ;;  %2028 = vmatpush1.bf16.msra.mxu1 %v4869_v0  ;;  %v5734_v5 = vld [vmem:[#allocation14_spill] sm:$0xff]  ;;  %v3368_v55 = vpop.eup %3367  ;;  %v5748_v24 = vld [vmem:[#allocation9_spill] sm:$0xff] }
 0x46c   :  { %1988 = vmatprep.subr.bf16.mxu0 %v4875_v2  ;;  %2029 = vmatprep.subr.bf16.mxu1 %v4881_v62 }
 0x46d   :  { %v5038_v61 = vadd.f32 %v1884_v60, %v1883_v16  ;;  %v5749_v60 = vld [vmem:[#allocation23_spill] sm:$0xff]  ;;  %v5751_v16 = vld [vmem:[#allocation24_spill] sm:$0xff] }
 0x46f   :  { %1989 = vmatpush1.bf16.msra.mxu0 %v4889_v7  ;;  %2030 = vmatpush1.bf16.msra.mxu1 %v4895_v52  ;;  %3369 = vtanh.f32 %v5038_v61 }
 0x470   :  { %1990 = vmatprep.subr.bf16.mxu0 %v4902_v39  ;;  %2031 = vmatprep.subr.bf16.mxu1 %v4908_v22 }
 0x473   :  { %1991 = vmatpush1.bf16.msra.mxu0 %v5734_v5  ;;  %2032 = vmatpush1.bf16.msra.mxu1 %v5735_v18 }
 0x474   :  { %1992 = vmatprep.subr.bf16.mxu0 %v5736_v44  ;;  %2033 = vmatprep.subr.bf16.mxu1 %v5737_v8 }
 0x477   :  { %1993 = vmatpush1.bf16.msra.mxu0 %v5738_v53  ;;  %2034 = vmatpush1.bf16.msra.mxu1 %v5739_v50 }
 0x478   :  { %1994 = vmatprep.subr.bf16.mxu0 %v5740_v41  ;;  %2035 = vmatprep.subr.bf16.mxu1 %v4956_v23 }
 0x479   :  { %v3370_v46 = vpop.eup %3369 }
 0x47a   :  { %v1887_v36 = vmul.f32 %v3370_v46, %v3368_v55  ;;  %v5752_v55 = vld [vmem:[#allocation11_spill] sm:$0xff]  ;;  %v5753_v46 = vld [vmem:[#allocation25_spill] sm:$0xff] }
 0x47b   :  { %1995 = vmatpush1.bf16.msra.mxu0 %v4962_v4  ;;  %2036 = vmatpush1.bf16.msra.mxu1 %v4968_v59 }
 0x47c   :  { %v1979_v37 = vpack.c.bf16 %v1887_v36, %v1887_v36  ;;  %2127 = vmatprep.subr.bf16.mxu0 %v4486_v20  ;;  %2168 = vmatprep.subr.bf16.mxu1 %v4576_v9  ;;  %v5741_v20 = vld [vmem:[#allocation19_spill] sm:$0xff]  ;;  %v5754_v36 = vld [vmem:[#allocation12_spill] sm:$0xff] }
 0x47e   :  { %2013 = vmatmul.mubr.bf16.vlgmr.msra.gmra.mrb[60].mxu0 %v1979_v37  ;;  %2054 = vmatmul.mubr.bf16.vlgmr.msra.gmra.mrb[76].mxu1 %v1979_v37  ;;  %v5755_v37 = vld [vmem:[#allocation26_spill] sm:$0xff] }
 0x47f   :  { %2128 = vmatpush1.bf16.msra.mxu0 %v4582_v11  ;;  %2169 = vmatpush1.bf16.msra.mxu1 %v4588_v13 }
 0x480   :  { %2129 = vmatprep.subr.bf16.mxu0 %v4594_v15  ;;  %2170 = vmatprep.subr.bf16.mxu1 %v4600_v17 }
 0x481   :  { %2159 = vmatprep.mubr.bf16.mxu0 %v5652_v40  ;;  %2200 = vmatprep.mubr.bf16.mxu1 %v5652_v40 }
 0x483   :  { %2130 = vmatpush1.bf16.msra.mxu0 %v4608_v19  ;;  %2171 = vmatpush1.bf16.msra.mxu1 %v4614_v21 }
 0x484   :  { %2131 = vmatprep.subr.bf16.mxu0 %v4620_v26  ;;  %2172 = vmatprep.subr.bf16.mxu1 %v4626_v27 }
 0x487   :  { %2132 = vmatpush1.bf16.msra.mxu0 %v4632_v28  ;;  %2173 = vmatpush1.bf16.msra.mxu1 %v4638_v29 }
 0x488   :  { %2133 = vmatprep.subr.bf16.mxu0 %v4644_v30  ;;  %2174 = vmatprep.subr.bf16.mxu1 %v4650_v31 }
 0x48b   :  { %2134 = vmatpush1.bf16.msra.mxu0 %v4656_v32  ;;  %2175 = vmatpush1.bf16.msra.mxu1 %v4662_v33 }
 0x48c   :  { %2135 = vmatprep.subr.bf16.mxu0 %v4668_v34  ;;  %2176 = vmatprep.subr.bf16.mxu1 %v5741_v20  ;;  %v5760_v20 = vld [vmem:[#allocation31_spill] sm:$0xff]  ;;  %v5761_v34 = vld [vmem:[#allocation60_spill] sm:$0xff] }
 0x48f   :  { %2136 = vmatpush1.bf16.msra.mxu0 %v5742_v57  ;;  %2177 = vmatpush1.bf16.msra.mxu1 %v5743_v35  ;;  %v5759_v35 = vld [vmem:[#allocation58_spill] sm:$0xff] }
 0x490   :  { %2137 = vmatprep.subr.bf16.mxu0 %v5744_v54  ;;  %2178 = vmatprep.subr.bf16.mxu1 %v5745_v38  ;;  %v5756_v38 = vld [vmem:[#allocation13_spill] sm:$0xff]  ;;  %v5758_v54 = vld [vmem:[#allocation30_spill] sm:$0xff] }
 0x493   :  { %2138 = vmatpush1.bf16.msra.mxu0 %v5746_v1  ;;  %2179 = vmatpush1.bf16.msra.mxu1 %v5747_v45  ;;  %v5757_v1 = vld [vmem:[#allocation27_spill] sm:$0xff] }
 0x494   :  { %2139 = vmatprep.subr.bf16.mxu0 %v5748_v24  ;;  %2180 = vmatprep.subr.bf16.mxu1 %v5749_v60 }
 0x497   :  { %2140 = vmatpush1.bf16.msra.mxu0 %v5750_v49  ;;  %2181 = vmatpush1.bf16.msra.mxu1 %v5751_v16 }
 0x498   :  { %2141 = vmatprep.subr.bf16.mxu0 %v5752_v55  ;;  %2182 = vmatprep.subr.bf16.mxu1 %v5753_v46 }
 0x49b   :  { %2142 = vmatpush1.bf16.msra.mxu0 %v5754_v36  ;;  %2183 = vmatpush1.bf16.msra.mxu1 %v5755_v37 }
 0x49c   :  { %2210 = vmatprep.subr.bf16.mxu0 %v5756_v38  ;;  %2251 = vmatprep.subr.bf16.mxu1 %v5757_v1 }
 0x531   :  { %v1931_v45 = vpop.f32.mrb[56].mxu0  ;;  %v1972_v24 = vpop.f32.mrb[72].mxu1 }
 0x532   :  { %v2062_v60 = vadd.f32 %v1931_v45, %v5758_v54  ;;  %v2064_v49 = vadd.f32 %v1972_v24, %v5759_v35  ;;  %v1933_v57 = vpop.f32.mrb[57].mxu0  ;;  %v1974_v16 = vpop.f32.mrb[73].mxu1 }
 0x533   :  { %v2063_v55 = vadd.f32 %v1933_v57, %v5760_v20  ;;  %v2065_v46 = vadd.f32 %v1974_v16, %v5761_v34  ;;  %v1935_v33 = vpop.f32.mrb[58].mxu0  ;;  %v1976_v36 = vpop.f32.mrb[74].mxu1  ;;  %v5762_v16 = vld [vmem:[#allocation55_spill] sm:$0xff] }
 0x534   :  { %v3066_v32 = vmul.f32 -1.442695, %v2062_v60  ;;  %v1936_v37 = vpop.f32.mrb[59].mxu0  ;;  %v1977_v31 = vpop.f32.mrb[75].mxu1 }
 0x535   :  { %v3067_v38 = vmul.f32 -1.442695, %v2063_v55  ;;  %v3068_v1 = vmul.f32 -1.442695, %v2065_v46  ;;  %v5764_v46 = vld [vmem:[#allocation57_spill] sm:$0xff]  ;;  %v5765_v37 = vld [vmem:[#allocation79_spill] sm:$0xff] }
 0x536   :  { %3371 = vpow2.f32 %v3066_v32 }
 0x537   :  { %3373 = vpow2.f32 %v3067_v38 }
 0x538   :  { %3375 = vpow2.f32 %v3068_v1  ;;  %v5763_v1 = vld [vmem:[#allocation78_spill] sm:$0xff] }
 0x539   :  { %3377 = vtanh.f32 %v2064_v49 }
 0x540   :  { %v3372_v30 = vpop.eup %3371 }
 0x541   :  { %v3374_v29 = vpop.eup %3373  ;;  %v2069_v54 = vadd.f32 1.0, %v3372_v30 }
 0x542   :  { %v2075_v35 = vadd.f32 1.0, %v3374_v29  ;;  %v3376_v20 = vpop.eup %3375 }
 0x543   :  { %3379 = vrcp.f32 %v2069_v54  ;;  %v3378_v57 = vpop.eup %3377  ;;  %v2082_v24 = vadd.f32 1.0, %v3376_v20 }
 0x544   :  { %3381 = vrcp.f32 %v2075_v35 }
 0x545   :  { %3383 = vrcp.f32 %v2082_v24 }
 0x54d   :  { %v3380_v34 = vpop.eup %3379 }
 0x54e   :  { %v3382_v33 = vpop.eup %3381  ;;  %v2086_v45 = vmul.f32 %v3380_v34, %v3378_v57 }
 0x54f   :  { %v2085_v31 = vmul.f32 %v3382_v33, %v5012_v42 }
 0x551   :  { %v5096_v60 = vadd.f32 %v2086_v45, %v2085_v31  ;;  %v2014_v32 = vpop.f32.mrb[60].mxu0  ;;  %v2055_v38 = vpop.f32.mrb[76].mxu1 }
 0x552   :  { %v2090_v30 = vadd.f32 %v2014_v32, %v5762_v16  ;;  %v2092_v49 = vadd.f32 %v2055_v38, %v5763_v1  ;;  %v2016_v29 = vpop.f32.mrb[61].mxu0  ;;  %v2057_v55 = vpop.f32.mrb[77].mxu1 }
 0x553   :  { %v2091_v36 = vadd.f32 %v2016_v29, %v5764_v46  ;;  %v2093_v54 = vadd.f32 %v2057_v55, %v5765_v37  ;;  %v2018_v35 = vpop.f32.mrb[62].mxu0  ;;  %v2059_v57 = vpop.f32.mrb[78].mxu1  ;;  %3385 = vtanh.f32 %v5096_v60 }
 0x554   :  { %v3069_v42 = vmul.f32 -1.442695, %v2090_v30  ;;  %v2019_v20 = vpop.f32.mrb[63].mxu0  ;;  %v2060_v34 = vpop.f32.mrb[79].mxu1 }
 0x555   :  { %v3070_v33 = vmul.f32 -1.442695, %v2091_v36  ;;  %v3384_v45 = vpop.eup %3383  ;;  %v3071_v31 = vmul.f32 -1.442695, %v2093_v54 }
 0x556   :  { %3387 = vpow2.f32 %v3069_v42 }
 0x557   :  { %3389 = vpow2.f32 %v3070_v33  ;;  %v5142_v33 = vld [vmem:[%s5480_s2 + $0x4] ss:$16 sps:$4 sm:$0xff]  }
 0x558   :  { %3391 = vpow2.f32 %v3071_v31  ;;  %v5778_v31 = vld [vmem:[#allocation22_spill] sm:$0xff] }
 0x559   :  { %3393 = vtanh.f32 %v2092_v49 }
 0x55d   :  { %v3386_v24 = vpop.eup %3385 }
 0x55e   :  { %v2089_v32 = vmul.f32 %v3386_v24, %v3384_v45  ;;  %v5771_v45 = vld [vmem:[#allocation5_spill] sm:$0xff]  ;;  %v5777_v24 = vld [vmem:[#allocation8_spill] sm:$0xff] }
 0x560   :  { %v3388_v38 = vpop.eup %3387  ;;  %v2126_v16 = vpack.c.bf16 %v2089_v32, %v2089_v32  ;;  %v5779_v32 = vld [vmem:[#allocation9_spill] sm:$0xff] }
 0x561   :  { %v3390_v1 = vpop.eup %3389  ;;  %v2097_v29 = vadd.f32 1.0, %v3388_v38  ;;  %v5780_v38 = vld [vmem:[#allocation23_spill] sm:$0xff] }
 0x562   :  { %v2103_v55 = vadd.f32 1.0, %v3390_v1  ;;  %2160 = vmatmul.mubr.bf16.vlgmr.msra.gmra.mrb[64].mxu0 %v2126_v16  ;;  %2201 = vmatmul.mubr.bf16.vlgmr.msra.gmra.mrb[80].mxu1 %v2126_v16  ;;  %v3392_v30 = vpop.eup %3391  ;;  %v5781_v16 = vld [vmem:[#allocation10_spill] sm:$0xff]  ;;  %v5782_v1 = vld [vmem:[#allocation24_spill] sm:$0xff] }
 0x563   :  { %3395 = vrcp.f32 %v2097_v29  ;;  %2211 = vmatpush1.bf16.msra.mxu0 %v4788_v63  ;;  %2252 = vmatpush1.bf16.msra.mxu1 %v4794_v51  ;;  %v3394_v49 = vpop.eup %3393  ;;  %v2110_v54 = vadd.f32 1.0, %v3392_v30  ;;  %v5783_v29 = vld [vmem:[#allocation11_spill] sm:$0xff]  ;;  %v5785_v30 = vld [vmem:[#allocation12_spill] sm:$0xff] }
 0x564   :  { %3397 = vrcp.f32 %v2103_v55  ;;  %2212 = vmatprep.subr.bf16.mxu0 %v4800_v6  ;;  %2253 = vmatprep.subr.bf16.mxu1 %v4806_v14  ;;  %v5784_v55 = vld [vmem:[#allocation25_spill] sm:$0xff] }
 0x565   :  { %2242 = vmatprep.mubr.bf16.mxu0 %v5652_v40  ;;  %2283 = vmatprep.mubr.bf16.mxu1 %v5652_v40  ;;  %3399 = vrcp.f32 %v2110_v54 }
 0x567   :  { %2213 = vmatpush1.bf16.msra.mxu0 %v4814_v10  ;;  %2254 = vmatpush1.bf16.msra.mxu1 %v4820_v3 }
 0x568   :  { %2214 = vmatprep.subr.bf16.mxu0 %v4826_v43  ;;  %2255 = vmatprep.subr.bf16.mxu1 %v4832_v47 }
 0x56b   :  { %2215 = vmatpush1.bf16.msra.mxu0 %v4838_v12  ;;  %2256 = vmatpush1.bf16.msra.mxu1 %v4844_v48 }
 0x56c   :  { %2216 = vmatprep.subr.bf16.mxu0 %v4850_v56  ;;  %2257 = vmatprep.subr.bf16.mxu1 %v4856_v58 }
 0x56d   :  { %v3396_v46 = vpop.eup %3395 }
 0x56e   :  { %v3398_v36 = vpop.eup %3397  ;;  %v2114_v37 = vmul.f32 %v3396_v46, %v3394_v49  ;;  %v5786_v49 = vld [vmem:[#allocation26_spill] sm:$0xff]  ;;  %v5787_v46 = vld [vmem:[#allocation13_spill] sm:$0xff] }
 0x56f   :  { %v2113_v35 = vmul.f32 %v3398_v36, %v5038_v61  ;;  %2217 = vmatpush1.bf16.msra.mxu0 %v4863_v25  ;;  %2258 = vmatpush1.bf16.msra.mxu1 %v4869_v0  ;;  %v3400_v61 = vpop.eup %3399  ;;  %v5788_v36 = vld [vmem:[#allocation27_spill] sm:$0xff] }
 0x570   :  { %2218 = vmatprep.subr.bf16.mxu0 %v4875_v2  ;;  %2259 = vmatprep.subr.bf16.mxu1 %v4881_v62 }
 0x571   :  { %v5122_v57 = vadd.f32 %v2114_v37, %v2113_v35  ;;  %v5789_v35 = vld [vmem:[#allocation32_spill] sm:$0xff] }
 0x573   :  { %2219 = vmatpush1.bf16.msra.mxu0 %v4889_v7  ;;  %2260 = vmatpush1.bf16.msra.mxu1 %v4895_v52  ;;  %3401 = vtanh.f32 %v5122_v57 }
 0x574   :  { %2220 = vmatprep.subr.bf16.mxu0 %v4902_v39  ;;  %2261 = vmatprep.subr.bf16.mxu1 %v4908_v22 }
 0x577   :  { %2221 = vmatpush1.bf16.msra.mxu0 %v5734_v5  ;;  %2262 = vmatpush1.bf16.msra.mxu1 %v5735_v18 }
 0x578   :  { %2222 = vmatprep.subr.bf16.mxu0 %v5736_v44  ;;  %2263 = vmatprep.subr.bf16.mxu1 %v5737_v8 }
 0x57b   :  { %2223 = vmatpush1.bf16.msra.mxu0 %v5738_v53  ;;  %2264 = vmatpush1.bf16.msra.mxu1 %v5739_v50 }
 0x57c   :  { %2224 = vmatprep.subr.bf16.mxu0 %v5740_v41  ;;  %2265 = vmatprep.subr.bf16.mxu1 %v4956_v23 }
 0x57d   :  { %v3402_v42 = vpop.eup %3401 }
 0x57e   :  { %v2117_v20 = vmul.f32 %v3402_v42, %v3400_v61  ;;  %v5790_v42 = vld [vmem:[#allocation62_spill] sm:$0xff] }
 0x57f   :  { %2225 = vmatpush1.bf16.msra.mxu0 %v4962_v4  ;;  %2266 = vmatpush1.bf16.msra.mxu1 %v4968_v59 }
 0x580   :  { %v2209_v34 = vpack.c.bf16 %v2117_v20, %v2117_v20  ;;  %2357 = vmatprep.subr.bf16.mxu0 %v5142_v33  ;;  %2398 = vmatprep.subr.bf16.mxu1 %v4576_v9  ;;  %v5766_v9 = vld [vmem:[#allocation16_spill] sm:$0xff] }
 0x582   :  { %2243 = vmatmul.mubr.bf16.vlgmr.msra.gmra.mrb[68].mxu0 %v2209_v34  ;;  %2284 = vmatmul.mubr.bf16.vlgmr.msra.gmra.mrb[84].mxu1 %v2209_v34 }
 0x583   :  { %2358 = vmatpush1.bf16.msra.mxu0 %v4582_v11  ;;  %2399 = vmatpush1.bf16.msra.mxu1 %v4588_v13  ;;  %v5767_v11 = vld [vmem:[#allocation3_spill] sm:$0xff]  ;;  %v5768_v13 = vld [vmem:[#allocation17_spill] sm:$0xff] }
 0x584   :  { %2359 = vmatprep.subr.bf16.mxu0 %v4594_v15  ;;  %2400 = vmatprep.subr.bf16.mxu1 %v4600_v17  ;;  %v5769_v15 = vld [vmem:[#allocation4_spill] sm:$0xff]  ;;  %v5770_v17 = vld [vmem:[#allocation18_spill] sm:$0xff] }
 0x585   :  { %2389 = vmatprep.mubr.bf16.mxu0 %v5652_v40  ;;  %2430 = vmatprep.mubr.bf16.mxu1 %v5652_v40 }
 0x587   :  { %2360 = vmatpush1.bf16.msra.mxu0 %v4608_v19  ;;  %2401 = vmatpush1.bf16.msra.mxu1 %v4614_v21  ;;  %v5772_v19 = vld [vmem:[#allocation19_spill] sm:$0xff]  ;;  %v5773_v21 = vld [vmem:[#allocation6_spill] sm:$0xff] }
 0x588   :  { %2361 = vmatprep.subr.bf16.mxu0 %v4620_v26  ;;  %2402 = vmatprep.subr.bf16.mxu1 %v4626_v27  ;;  %v5774_v26 = vld [vmem:[#allocation20_spill] sm:$0xff]  ;;  %v5775_v27 = vld [vmem:[#allocation7_spill] sm:$0xff] }
 0x58b   :  { %2362 = vmatpush1.bf16.msra.mxu0 %v4632_v28  ;;  %2403 = vmatpush1.bf16.msra.mxu1 %v5766_v9  ;;  %v5776_v28 = vld [vmem:[#allocation21_spill] sm:$0xff] }
 0x58c   :  { %2363 = vmatprep.subr.bf16.mxu0 %v5767_v11  ;;  %2404 = vmatprep.subr.bf16.mxu1 %v5768_v13  ;;  %v5791_v11 = vld [vmem:[#allocation34_spill] sm:$0xff] }
 0x58f   :  { %2364 = vmatpush1.bf16.msra.mxu0 %v5769_v15  ;;  %2405 = vmatpush1.bf16.msra.mxu1 %v5770_v17  ;;  %v5792_v15 = vld [vmem:[#allocation64_spill] sm:$0xff] }
 0x590   :  { %2365 = vmatprep.subr.bf16.mxu0 %v5771_v45  ;;  %2406 = vmatprep.subr.bf16.mxu1 %v5772_v19 }
 0x593   :  { %2366 = vmatpush1.bf16.msra.mxu0 %v5773_v21  ;;  %2407 = vmatpush1.bf16.msra.mxu1 %v5774_v26 }
 0x594   :  { %2367 = vmatprep.subr.bf16.mxu0 %v5775_v27  ;;  %2408 = vmatprep.subr.bf16.mxu1 %v5776_v28 }
 0x597   :  { %2368 = vmatpush1.bf16.msra.mxu0 %v5777_v24  ;;  %2409 = vmatpush1.bf16.msra.mxu1 %v5778_v31 }
 0x598   :  { %2369 = vmatprep.subr.bf16.mxu0 %v5779_v32  ;;  %2410 = vmatprep.subr.bf16.mxu1 %v5780_v38 }
 0x59b   :  { %2370 = vmatpush1.bf16.msra.mxu0 %v5781_v16  ;;  %2411 = vmatpush1.bf16.msra.mxu1 %v5782_v1 }
 0x59c   :  { %2371 = vmatprep.subr.bf16.mxu0 %v5783_v29  ;;  %2412 = vmatprep.subr.bf16.mxu1 %v5784_v55 }
 0x59f   :  { %2372 = vmatpush1.bf16.msra.mxu0 %v5785_v30  ;;  %2413 = vmatpush1.bf16.msra.mxu1 %v5786_v49 }
 0x5a0   :  { %2440 = vmatprep.subr.bf16.mxu0 %v5787_v46  ;;  %2481 = vmatprep.subr.bf16.mxu1 %v5788_v36 }
 0x635   :  { %v2161_v37 = vpop.f32.mrb[64].mxu0  ;;  %v2202_v54 = vpop.f32.mrb[80].mxu1 }
 0x636   :  { %v2292_v61 = vadd.f32 %v2161_v37, %v5789_v35  ;;  %v2294_v20 = vadd.f32 %v2202_v54, %v5790_v42  ;;  %v2163_v34 = vpop.f32.mrb[65].mxu0  ;;  %v2204_v9 = vpop.f32.mrb[81].mxu1 }
 0x637   :  { %v2293_v13 = vadd.f32 %v2163_v34, %v5791_v11  ;;  %v2295_v17 = vadd.f32 %v2204_v9, %v5792_v15  ;;  %v2165_v45 = vpop.f32.mrb[66].mxu0  ;;  %v2206_v19 = vpop.f32.mrb[82].mxu1  ;;  %v5794_v34 = vld [vmem:[#allocation76_spill] sm:$0xff] }
 0x638   :  { %v3072_v21 = vmul.f32 -1.442695, %v2292_v61  ;;  %v2166_v26 = vpop.f32.mrb[67].mxu0  ;;  %v2207_v27 = vpop.f32.mrb[83].mxu1  ;;  %v5793_v61 = vld [vmem:[#allocation51_spill] sm:$0xff] }
 0x639   :  { %v3073_v28 = vmul.f32 -1.442695, %v2293_v13  ;;  %v3074_v24 = vmul.f32 -1.442695, %v2295_v17  ;;  %v5795_v13 = vld [vmem:[#allocation53_spill] sm:$0xff] }
 0x63a   :  { %3403 = vpow2.f32 %v3072_v21  ;;  %v5796_v17 = vld [vmem:[#allocation77_spill] sm:$0xff] }
 0x63b   :  { %3405 = vpow2.f32 %v3073_v28 }
 0x63c   :  { %3407 = vpow2.f32 %v3074_v24 }
 0x63d   :  { %3409 = vtanh.f32 %v2294_v20 }
 0x644   :  { %v3404_v31 = vpop.eup %3403 }
 0x645   :  { %v3406_v32 = vpop.eup %3405  ;;  %v2299_v38 = vadd.f32 1.0, %v3404_v31 }
 0x646   :  { %v2305_v16 = vadd.f32 1.0, %v3406_v32  ;;  %v3408_v1 = vpop.eup %3407 }
 0x647   :  { %3411 = vrcp.f32 %v2299_v38  ;;  %v3410_v29 = vpop.eup %3409  ;;  %v2312_v46 = vadd.f32 1.0, %v3408_v1 }
 0x648   :  { %3413 = vrcp.f32 %v2305_v16 }
 0x649   :  { %3415 = vrcp.f32 %v2312_v46  ;;  %v3589_v46 = vld [vmem:[%s5480_s2 + $0xa0] ss:$16 sps:$4 sm:$0xff]  }
 0x651   :  { %v3412_v55 = vpop.eup %3411 }
 0x652   :  { %v3414_v30 = vpop.eup %3413  ;;  %v2316_v49 = vmul.f32 %v3412_v55, %v3410_v29 }
 0x653   :  { %v2315_v36 = vmul.f32 %v3414_v30, %v5096_v60  ;;  %v3416_v24 = vpop.eup %3415 }
 0x655   :  { %v5185_v37 = vadd.f32 %v2316_v49, %v2315_v36  ;;  %v2244_v54 = vpop.f32.mrb[68].mxu0  ;;  %v2285_v35 = vpop.f32.mrb[84].mxu1  ;;  %v3590_v36 = vld [vmem:[%s5480_s2 + $0xa8] ss:$16 sps:$4 sm:$0xff]  }
 0x656   :  { %v2320_v42 = vadd.f32 %v2244_v54, %v5793_v61  ;;  %v2322_v20 = vadd.f32 %v2285_v35, %v5794_v34  ;;  %v2246_v9 = vpop.f32.mrb[69].mxu0  ;;  %v2287_v11 = vpop.f32.mrb[85].mxu1  ;;  %v3591_v54 = vld [vmem:[%s5480_s2 + $0xc4] ss:$16 sps:$4 sm:$0xff]   ;;  %v3592_v35 = vld [vmem:[%s5480_s2 + $0xcc] ss:$16 sps:$4 sm:$0xff]  }
 0x657   :  { %v2321_v15 = vadd.f32 %v2246_v9, %v5795_v13  ;;  %v2323_v45 = vadd.f32 %v2287_v11, %v5796_v17  ;;  %v2248_v19 = vpop.f32.mrb[70].mxu0  ;;  %v2289_v21 = vpop.f32.mrb[86].mxu1  ;;  %3417 = vtanh.f32 %v5185_v37  ;;  %v3593_v61 = vld [vmem:[%s5480_s2 + $0xc0] ss:$16 sps:$4 sm:$0xff]   ;;  %v3595_v34 = vld [vmem:[%s5480_s2 + $0xe4] ss:$16 sps:$4 sm:$0xff]  }
 0x658   :  { %v3075_v60 = vmul.f32 -1.442695, %v2320_v42  ;;  %v2249_v26 = vpop.f32.mrb[71].mxu0  ;;  %v2290_v27 = vpop.f32.mrb[87].mxu1  ;;  %v3594_v42 = vld [vmem:[%s5480_s2 + $0xc8] ss:$16 sps:$4 sm:$0xff]  }
 0x659   :  { %v3076_v28 = vmul.f32 -1.442695, %v2321_v15  ;;  %v3077_v32 = vmul.f32 -1.442695, %v2323_v45  ;;  %v3597_v9 = vld [vmem:[%s5480_s2 + $0xe0] ss:$16 sps:$4 sm:$0xff]  }
 0x65a   :  { %3419 = vpow2.f32 %v3075_v60  ;;  %v3598_v11 = vld [vmem:[%s5480_s2 + $0xe8] ss:$16 sps:$4 sm:$0xff]   ;;  %v3599_v13 = vld [vmem:[%s5481_s3 + $0x4] ss:$16 sps:$4 sm:$0xff]   ;;  %v3600_v15 = vld [vmem:[%s5481_s3 + $0xc] ss:$16 sps:$4 sm:$0xff]  }
 0x65b   :  { %3421 = vpow2.f32 %v3076_v28  ;;  %v5797_v19 = vld [vmem:[#allocation36_spill] sm:$0xff]  ;;  %v5798_v60 = vld [vmem:[#allocation66_spill] sm:$0xff] }
 0x65c   :  { %3423 = vpow2.f32 %v3077_v32  ;;  %v5800_v32 = vld [vmem:[#allocation68_spill] sm:$0xff] }
 0x65d   :  { %3425 = vtanh.f32 %v2322_v20  ;;  %v3596_v20 = vld [vmem:[%s5480_s2 + $0xec] ss:$16 sps:$4 sm:$0xff]  }
 0x661   :  { %v3418_v31 = vpop.eup %3417 }
 0x662   :  { %v2319_v38 = vmul.f32 %v3418_v31, %v3416_v24  ;;  %v5799_v24 = vld [vmem:[#allocation38_spill] sm:$0xff] }
 0x664   :  { %v3420_v16 = vpop.eup %3419  ;;  %v2356_v1 = vpack.c.bf16 %v2319_v38, %v2319_v38 }
 0x665   :  { %v3422_v29 = vpop.eup %3421  ;;  %v2327_v55 = vadd.f32 1.0, %v3420_v16 }
 0x666   :  { %v2333_v30 = vadd.f32 1.0, %v3422_v29  ;;  %2390 = vmatmul.mubr.bf16.vlgmr.msra.gmra.mrb[72].mxu0 %v2356_v1  ;;  %2431 = vmatmul.mubr.bf16.vlgmr.msra.gmra.mrb[88].mxu1 %v2356_v1 }
 0x667   :  { %3427 = vrcp.f32 %v2327_v55  ;;  %2441 = vmatpush1.bf16.msra.mxu0 %v4788_v63  ;;  %2482 = vmatpush1.bf16.msra.mxu1 %v4794_v51  ;;  %v3424_v63 = vpop.eup %3423 }
 0x668   :  { %3429 = vrcp.f32 %v2333_v30  ;;  %2442 = vmatprep.subr.bf16.mxu0 %v4800_v6  ;;  %2483 = vmatprep.subr.bf16.mxu1 %v4806_v14  ;;  %v3426_v51 = vpop.eup %3425 }
 0x669   :  { %2472 = vmatprep.mubr.bf16.mxu0 %v5652_v40  ;;  %2513 = vmatprep.mubr.bf16.mxu1 %v5652_v40 }
 0x66b   :  { %2443 = vmatpush1.bf16.msra.mxu0 %v4814_v10  ;;  %2484 = vmatpush1.bf16.msra.mxu1 %v4820_v3  ;;  %v2340_v10 = vadd.f32 1.0, %v3424_v63 }
 0x66c   :  { %2444 = vmatprep.subr.bf16.mxu0 %v4826_v43  ;;  %2485 = vmatprep.subr.bf16.mxu1 %v4832_v47 }
 0x66d   :  { %3431 = vrcp.f32 %v2340_v10 }
 0x66f   :  { %2445 = vmatpush1.bf16.msra.mxu0 %v4838_v12  ;;  %2486 = vmatpush1.bf16.msra.mxu1 %v4844_v48 }
 0x670   :  { %2446 = vmatprep.subr.bf16.mxu0 %v4850_v56  ;;  %2487 = vmatprep.subr.bf16.mxu1 %v4856_v58  ;;  %v3568_v58 = vld [vmem:[%s5480_s2 + $0xc] ss:$16 sps:$4 sm:$0xff]  }
 0x671   :  { %v3428_v6 = vpop.eup %3427 }
 0x672   :  { %v3430_v14 = vpop.eup %3429  ;;  %v2344_v49 = vmul.f32 %v3428_v6, %v3426_v51 }
 0x673   :  { %v2343_v3 = vmul.f32 %v3430_v14, %v5122_v57  ;;  %2447 = vmatpush1.bf16.msra.mxu0 %v4863_v25  ;;  %2488 = vmatpush1.bf16.msra.mxu1 %v4869_v0  ;;  %v3569_v25 = vld [vmem:[%s5480_s2] ss:$16 sps:$4 sm:$0xff]   ;;  %v3570_v0 = vld [vmem:[%s5480_s2 + $0x8] ss:$16 sps:$4 sm:$0xff]   ;;  %v3587_v57 = vld [vmem:[%s5480_s2 + $0xa4] ss:$16 sps:$4 sm:$0xff]  }
 0x674   :  { %2448 = vmatprep.subr.bf16.mxu0 %v4875_v2  ;;  %2489 = vmatprep.subr.bf16.mxu1 %v4881_v62  ;;  %v3571_v2 = vld [vmem:[%s5480_s2 + $0x24] ss:$16 sps:$4 sm:$0xff]   ;;  %v3572_v62 = vld [vmem:[%s5480_s2 + $0x2c] ss:$16 sps:$4 sm:$0xff]  }
 0x675   :  { %v5211_v43 = vadd.f32 %v2344_v49, %v2343_v3 }
 0x677   :  { %2449 = vmatpush1.bf16.msra.mxu0 %v4889_v7  ;;  %2490 = vmatpush1.bf16.msra.mxu1 %v4895_v52  ;;  %3433 = vtanh.f32 %v5211_v43  ;;  %v3432_v47 = vpop.eup %3431  ;;  %v3573_v7 = vld [vmem:[%s5480_s2 + $0x20] ss:$16 sps:$4 sm:$0xff]   ;;  %v3574_v52 = vld [vmem:[%s5480_s2 + $0x28] ss:$16 sps:$4 sm:$0xff]  }
 0x678   :  { %2450 = vmatprep.subr.bf16.mxu0 %v4902_v39  ;;  %2491 = vmatprep.subr.bf16.mxu1 %v4908_v22  ;;  %v3575_v39 = vld [vmem:[%s5480_s2 + $0x44] ss:$16 sps:$4 sm:$0xff]   ;;  %v3576_v22 = vld [vmem:[%s5480_s2 + $0x4c] ss:$16 sps:$4 sm:$0xff]  }
 0x67b   :  { %2451 = vmatpush1.bf16.msra.mxu0 %v5734_v5  ;;  %2492 = vmatpush1.bf16.msra.mxu1 %v5735_v18  ;;  %v3580_v5 = vld [vmem:[%s5480_s2 + $0x6c] ss:$16 sps:$4 sm:$0xff]   ;;  %v3581_v18 = vld [vmem:[%s5480_s2 + $0x60] ss:$16 sps:$4 sm:$0xff]  }
 0x67c   :  { %2452 = vmatprep.subr.bf16.mxu0 %v5736_v44  ;;  %2493 = vmatprep.subr.bf16.mxu1 %v5737_v8  ;;  %v3582_v44 = vld [vmem:[%s5480_s2 + $0x68] ss:$16 sps:$4 sm:$0xff]   ;;  %v3583_v8 = vld [vmem:[%s5480_s2 + $0x84] ss:$16 sps:$4 sm:$0xff]  }
 0x67f   :  { %2453 = vmatpush1.bf16.msra.mxu0 %v5738_v53  ;;  %2494 = vmatpush1.bf16.msra.mxu1 %v5739_v50  ;;  %v3584_v53 = vld [vmem:[%s5480_s2 + $0x8c] ss:$16 sps:$4 sm:$0xff]   ;;  %v3585_v50 = vld [vmem:[%s5480_s2 + $0x80] ss:$16 sps:$4 sm:$0xff]  }
 0x680   :  { %2454 = vmatprep.subr.bf16.mxu0 %v5740_v41  ;;  %2495 = vmatprep.subr.bf16.mxu1 %v4956_v23  ;;  %v3578_v23 = vld [vmem:[%s5480_s2 + $0x48] ss:$16 sps:$4 sm:$0xff]  }
 0x681   :  { %v3434_v12 = vpop.eup %3433  ;;  %v3586_v41 = vld [vmem:[%s5480_s2 + $0x88] ss:$16 sps:$4 sm:$0xff]  }
 0x682   :  { %v2347_v48 = vmul.f32 %v3434_v12, %v3432_v47 }
 0x683   :  { %2455 = vmatpush1.bf16.msra.mxu0 %v4962_v4  ;;  %2496 = vmatpush1.bf16.msra.mxu1 %v4968_v59  ;;  %v3577_v59 = vld [vmem:[%s5480_s2 + $0x40] ss:$16 sps:$4 sm:$0xff]   ;;  %v3579_v4 = vld [vmem:[%s5480_s2 + $0x64] ss:$16 sps:$4 sm:$0xff]  }
 0x684   :  { %v2439_v56 = vpack.c.bf16 %v2347_v48, %v2347_v48  ;;  %2587 = vmatprep.subr.bf16.mxu0 %v5142_v33  ;;  %2628 = vmatprep.subr.bf16.mxu1 %v3568_v58  ;;  %v3588_v33 = vld [vmem:[%s5480_s2 + $0xac] ss:$16 sps:$4 sm:$0xff]  }
 0x686   :  { %2473 = vmatmul.mubr.bf16.vlgmr.msra.gmra.mrb[76].mxu0 %v2439_v56  ;;  %2514 = vmatmul.mubr.bf16.vlgmr.msra.gmra.mrb[92].mxu1 %v2439_v56 }
 0x687   :  { %2588 = vmatpush1.bf16.msra.mxu0 %v3569_v25  ;;  %2629 = vmatpush1.bf16.msra.mxu1 %v3570_v0 }
 0x688   :  { %2589 = vmatprep.subr.bf16.mxu0 %v3571_v2  ;;  %2630 = vmatprep.subr.bf16.mxu1 %v3572_v62 }
 0x689   :  { %2619 = vmatprep.mubr.bf16.mxu0 %v5652_v40  ;;  %2660 = vmatprep.mubr.bf16.mxu1 %v5652_v40 }
 0x68b   :  { %2590 = vmatpush1.bf16.msra.mxu0 %v3573_v7  ;;  %2631 = vmatpush1.bf16.msra.mxu1 %v3574_v52  ;;  %v5801_v7 = vld [vmem:[#allocation47_spill] sm:$0xff] }
 0x68c   :  { %2591 = vmatprep.subr.bf16.mxu0 %v3575_v39  ;;  %2632 = vmatprep.subr.bf16.mxu1 %v3576_v22  ;;  %v5802_v39 = vld [vmem:[#allocation74_spill] sm:$0xff] }
 0x68f   :  { %2592 = vmatpush1.bf16.msra.mxu0 %v3577_v59  ;;  %2633 = vmatpush1.bf16.msra.mxu1 %v3578_v23 }
 0x690   :  { %2593 = vmatprep.subr.bf16.mxu0 %v3579_v4  ;;  %2634 = vmatprep.subr.bf16.mxu1 %v3580_v5  ;;  %v5803_v4 = vld [vmem:[#allocation49_spill] sm:$0xff] }
 0x693   :  { %2594 = vmatpush1.bf16.msra.mxu0 %v3581_v18  ;;  %2635 = vmatpush1.bf16.msra.mxu1 %v3582_v44  ;;  %v5804_v18 = vld [vmem:[#allocation75_spill] sm:$0xff] }
 0x694   :  { %2595 = vmatprep.subr.bf16.mxu0 %v3583_v8  ;;  %2636 = vmatprep.subr.bf16.mxu1 %v3584_v53 }
 0x697   :  { %2596 = vmatpush1.bf16.msra.mxu0 %v3585_v50  ;;  %2637 = vmatpush1.bf16.msra.mxu1 %v3586_v41 }
 0x698   :  { %2597 = vmatprep.subr.bf16.mxu0 %v3587_v57  ;;  %2638 = vmatprep.subr.bf16.mxu1 %v3588_v33 }
 0x69b   :  { %2598 = vmatpush1.bf16.msra.mxu0 %v3589_v46  ;;  %2639 = vmatpush1.bf16.msra.mxu1 %v3590_v36 }
 0x69c   :  { %2599 = vmatprep.subr.bf16.mxu0 %v3591_v54  ;;  %2640 = vmatprep.subr.bf16.mxu1 %v3592_v35 }
 0x69f   :  { %2600 = vmatpush1.bf16.msra.mxu0 %v3593_v61  ;;  %2641 = vmatpush1.bf16.msra.mxu1 %v3594_v42 }
 0x6a0   :  { %2601 = vmatprep.subr.bf16.mxu0 %v3595_v34  ;;  %2642 = vmatprep.subr.bf16.mxu1 %v3596_v20 }
 0x6a3   :  { %2602 = vmatpush1.bf16.msra.mxu0 %v3597_v9  ;;  %2643 = vmatpush1.bf16.msra.mxu1 %v3598_v11  ;;  %v3601_v9 = vld [vmem:[%s5481_s3] ss:$16 sps:$4 sm:$0xff]   ;;  %v3602_v11 = vld [vmem:[%s5481_s3 + $0x8] ss:$16 sps:$4 sm:$0xff]  }
 0x6a4   :  { %2670 = vmatprep.subr.bf16.mxu0 %v3599_v13  ;;  %2711 = vmatprep.subr.bf16.mxu1 %v3600_v15  ;;  %v3603_v13 = vld [vmem:[%s5481_s3 + $0x24] ss:$16 sps:$4 sm:$0xff]   ;;  %v3604_v15 = vld [vmem:[%s5481_s3 + $0x2c] ss:$16 sps:$4 sm:$0xff]  }
 0x739   :  { %v2391_v17 = vpop.f32.mrb[72].mxu0  ;;  %v2432_v45 = vpop.f32.mrb[88].mxu1 }
 0x73a   :  { %v2522_v21 = vadd.f32 %v2391_v17, %v5797_v19  ;;  %v2524_v26 = vadd.f32 %v2432_v45, %v5798_v60  ;;  %v2393_v27 = vpop.f32.mrb[73].mxu0  ;;  %v2434_v28 = vpop.f32.mrb[89].mxu1  ;;  %v3605_v17 = vld [vmem:[%s5481_s3 + $0x20] ss:$16 sps:$4 sm:$0xff]   ;;  %v3606_v45 = vld [vmem:[%s5481_s3 + $0x28] ss:$16 sps:$4 sm:$0xff]  }
 0x73b   :  { %v2523_v31 = vadd.f32 %v2393_v27, %v5799_v24  ;;  %v2525_v38 = vadd.f32 %v2434_v28, %v5800_v32  ;;  %v2395_v16 = vpop.f32.mrb[74].mxu0  ;;  %v2436_v1 = vpop.f32.mrb[90].mxu1  ;;  %v3607_v19 = vld [vmem:[%s5481_s3 + $0x44] ss:$16 sps:$4 sm:$0xff]   ;;  %v3609_v60 = vld [vmem:[%s5481_s3 + $0x40] ss:$16 sps:$4 sm:$0xff]  }
 0x73c   :  { %v3078_v29 = vmul.f32 -1.442695, %v2522_v21  ;;  %v2396_v55 = vpop.f32.mrb[75].mxu0  ;;  %v2437_v30 = vpop.f32.mrb[91].mxu1  ;;  %v3608_v21 = vld [vmem:[%s5481_s3 + $0x4c] ss:$16 sps:$4 sm:$0xff]  }
 0x73d   :  { %v3079_v63 = vmul.f32 -1.442695, %v2523_v31  ;;  %v3080_v51 = vmul.f32 -1.442695, %v2525_v38  ;;  %v3611_v28 = vld [vmem:[%s5481_s3 + $0x64] ss:$16 sps:$4 sm:$0xff]  }
 0x73e   :  { %3435 = vpow2.f32 %v3078_v29  ;;  %v3612_v24 = vld [vmem:[%s5481_s3 + $0x6c] ss:$16 sps:$4 sm:$0xff]   ;;  %v3613_v29 = vld [vmem:[%s5481_s3 + $0x60] ss:$16 sps:$4 sm:$0xff]   ;;  %v3614_v55 = vld [vmem:[%s5481_s3 + $0x68] ss:$16 sps:$4 sm:$0xff]  }
 0x73f   :  { %3437 = vpow2.f32 %v3079_v63  ;;  %v3615_v30 = vld [vmem:[%s5481_s3 + $0x84] ss:$16 sps:$4 sm:$0xff]   ;;  %v3616_v63 = vld [vmem:[%s5481_s3 + $0x8c] ss:$16 sps:$4 sm:$0xff]  }
 0x740   :  { %3439 = vpow2.f32 %v3080_v51  ;;  %v3617_v51 = vld [vmem:[%s5481_s3 + $0x80] ss:$16 sps:$4 sm:$0xff]  }
 0x741   :  { %3441 = vtanh.f32 %v2524_v26  ;;  %v3610_v26 = vld [vmem:[%s5481_s3 + $0x48] ss:$16 sps:$4 sm:$0xff]  }
 0x748   :  { %v3436_v6 = vpop.eup %3435 }
 0x749   :  { %v3438_v14 = vpop.eup %3437  ;;  %v2529_v49 = vadd.f32 1.0, %v3436_v6  ;;  %v3618_v6 = vld [vmem:[%s5481_s3 + $0x88] ss:$16 sps:$4 sm:$0xff]  }
 0x74a   :  { %v2535_v10 = vadd.f32 1.0, %v3438_v14  ;;  %v3440_v3 = vpop.eup %3439  ;;  %v3619_v14 = vld [vmem:[%s5481_s3 + $0xa4] ss:$16 sps:$4 sm:$0xff]  }
 0x74b   :  { %3443 = vrcp.f32 %v2529_v49  ;;  %v3442_v47 = vpop.eup %3441  ;;  %v2542_v58 = vadd.f32 1.0, %v3440_v3  ;;  %v3620_v49 = vld [vmem:[%s5481_s3 + $0xac] ss:$16 sps:$4 sm:$0xff]   ;;  %v3622_v3 = vld [vmem:[%s5481_s3 + $0xa8] ss:$16 sps:$4 sm:$0xff]  }
 0x74c   :  { %3445 = vrcp.f32 %v2535_v10  ;;  %v3621_v10 = vld [vmem:[%s5481_s3 + $0xa0] ss:$16 sps:$4 sm:$0xff]  }
 0x74d   :  { %3447 = vrcp.f32 %v2542_v58 }
 0x755   :  { %v3444_v12 = vpop.eup %3443 }
 0x756   :  { %v3446_v48 = vpop.eup %3445  ;;  %v2546_v56 = vmul.f32 %v3444_v12, %v3442_v47  ;;  %v3623_v47 = vld [vmem:[%s5481_s3 + $0xc4] ss:$16 sps:$4 sm:$0xff]   ;;  %v3624_v12 = vld [vmem:[%s5481_s3 + $0xcc] ss:$16 sps:$4 sm:$0xff]  }
 0x757   :  { %v2545_v25 = vmul.f32 %v3446_v48, %v5185_v37  ;;  %v3448_v33 = vpop.eup %3447  ;;  %v3625_v48 = vld [vmem:[%s5481_s3 + $0xc0] ss:$16 sps:$4 sm:$0xff]  }
 0x759   :  { %v5335_v0 = vadd.f32 %v2546_v56, %v2545_v25  ;;  %v2474_v2 = vpop.f32.mrb[76].mxu0  ;;  %v2515_v62 = vpop.f32.mrb[92].mxu1  ;;  %v3626_v56 = vld [vmem:[%s5481_s3 + $0xc8] ss:$16 sps:$4 sm:$0xff]   ;;  %v3627_v25 = vld [vmem:[%s5481_s3 + $0xe4] ss:$16 sps:$4 sm:$0xff]  }
 0x75a   :  { %v2550_v52 = vadd.f32 %v2474_v2, %v5801_v7  ;;  %v2552_v22 = vadd.f32 %v2515_v62, %v5802_v39  ;;  %v2476_v59 = vpop.f32.mrb[77].mxu0  ;;  %v2517_v23 = vpop.f32.mrb[93].mxu1  ;;  %v3628_v2 = vld [vmem:[%s5481_s3 + $0xec] ss:$16 sps:$4 sm:$0xff]   ;;  %v3630_v39 = vld [vmem:[%s5481_s3 + $0xe8] ss:$16 sps:$4 sm:$0xff]  }
 0x75b   :  { %v2551_v5 = vadd.f32 %v2476_v59, %v5803_v4  ;;  %v2553_v44 = vadd.f32 %v2517_v23, %v5804_v18  ;;  %v2478_v8 = vpop.f32.mrb[78].mxu0  ;;  %v2519_v53 = vpop.f32.mrb[94].mxu1  ;;  %3449 = vtanh.f32 %v5335_v0  ;;  %v3235_v59 = vld [vmem:[%s5483_s5] sm:$0xff]   ;;  %v3632_v23 = vmov 0.0   ;;  %v3236_v4 = vld [vmem:[%s5483_s5 + $0x8] sm:$0xff]   ;;  %v3238_v18 = vld [vmem:[%s5483_s5 + $0x18] sm:$0xff]  }
 0x75c   :  { %v3081_v37 = vmul.f32 -1.442695, %v2550_v52  ;;  %v2479_v50 = vpop.f32.mrb[79].mxu0  ;;  %v2520_v41 = vpop.f32.mrb[95].mxu1  ;;  %v3629_v52 = vld [vmem:[%s5481_s3 + $0xe0] ss:$16 sps:$4 sm:$0xff]  }
 0x75d   :  { %v3082_v57 = vmul.f32 -1.442695, %v2551_v5  ;;  %v3083_v36 = vmul.f32 -1.442695, %v2553_v44  ;;  %v3237_v5 = vld [vmem:[%s5483_s5 + $0x10] sm:$0xff]   ;;  %v3239_v44 = vld [vmem:[%s5483_s5 + $0x20] sm:$0xff]  }
 0x75e   :  { %3451 = vpow2.f32 %v3081_v37  ;;  %v3240_v8 = vld [vmem:[%s5483_s5 + $0x28] sm:$0xff]   ;;  %v3241_v53 = vld [vmem:[%s5483_s5 + $0x30] sm:$0xff]   ;;  %v3242_v37 = vld [vmem:[%s5483_s5 + $0x38] sm:$0xff]  }
 0x75f   :  { %3453 = vpow2.f32 %v3082_v57  ;;  %v5805_v57 = vld [vmem:[#allocation40_spill] sm:$0xff] }
 0x760   :  { %3455 = vpow2.f32 %v3083_v36 }
 0x761   :  { %3457 = vtanh.f32 %v2552_v22 }
 0x765   :  { %v3450_v46 = vpop.eup %3449 }
 0x766   :  { %v2549_v54 = vmul.f32 %v3450_v46, %v3448_v33  ;;  %v5806_v46 = vld [vmem:[#allocation70_spill] sm:$0xff] }
 0x768   :  { %v3452_v35 = vpop.eup %3451  ;;  %v2586_v61 = vpack.c.bf16 %v2549_v54, %v2549_v54 }
 0x769   :  { %v3454_v42 = vpop.eup %3453  ;;  %v2557_v34 = vadd.f32 1.0, %v3452_v35 }
 0x76a   :  { %v2563_v20 = vadd.f32 1.0, %v3454_v42  ;;  %2620 = vmatmul.mubr.bf16.vlgmr.msra.gmra.mrb[80].mxu0 %v2586_v61  ;;  %2661 = vmatmul.mubr.bf16.vlgmr.msra.gmra.mrb[96].mxu1 %v2586_v61  ;;  %v5807_v61 = vld [vmem:[#allocation42_spill] sm:$0xff] }
 0x76b   :  { %3459 = vrcp.f32 %v2557_v34  ;;  %2671 = vmatpush1.bf16.msra.mxu0 %v3601_v9  ;;  %2712 = vmatpush1.bf16.msra.mxu1 %v3602_v11  ;;  %v5808_v34 = vld [vmem:[#allocation71_spill] sm:$0xff] }
 0x76c   :  { %3461 = vrcp.f32 %v2563_v20  ;;  %2672 = vmatprep.subr.bf16.mxu0 %v3603_v13  ;;  %2713 = vmatprep.subr.bf16.mxu1 %v3604_v15 }
 0x76d   :  { %2702 = vmatprep.mubr.bf16.mxu0 %v5652_v40  ;;  %2743 = vmatprep.mubr.bf16.mxu1 %v5652_v40  ;;  %v3456_v40 = vpop.eup %3455 }
 0x76e   :  { %v3458_v27 = vpop.eup %3457  ;;  %v2570_v16 = vadd.f32 1.0, %v3456_v40 }
 0x76f   :  { %2673 = vmatpush1.bf16.msra.mxu0 %v3605_v17  ;;  %2714 = vmatpush1.bf16.msra.mxu1 %v3606_v45 }
 0x770   :  { %2674 = vmatprep.subr.bf16.mxu0 %v3607_v19  ;;  %2715 = vmatprep.subr.bf16.mxu1 %v3608_v21  ;;  %3463 = vrcp.f32 %v2570_v16 }
 0x773   :  { %2675 = vmatpush1.bf16.msra.mxu0 %v3609_v60  ;;  %2716 = vmatpush1.bf16.msra.mxu1 %v3610_v26 }
 0x774   :  { %2676 = vmatprep.subr.bf16.mxu0 %v3611_v28  ;;  %2717 = vmatprep.subr.bf16.mxu1 %v3612_v24 }
 0x775   :  { %v3460_v31 = vpop.eup %3459 }
 0x776   :  { %v3462_v32 = vpop.eup %3461  ;;  %v2574_v38 = vmul.f32 %v3460_v31, %v3458_v27 }
 0x777   :  { %v2573_v1 = vmul.f32 %v3462_v32, %v5211_v43  ;;  %2677 = vmatpush1.bf16.msra.mxu0 %v3613_v29  ;;  %2718 = vmatpush1.bf16.msra.mxu1 %v3614_v55 }
 0x778   :  { %2678 = vmatprep.subr.bf16.mxu0 %v3615_v30  ;;  %2719 = vmatprep.subr.bf16.mxu1 %v3616_v63  ;;  %v5809_v30 = vld [vmem:[#allocation44_spill] sm:$0xff] }
 0x779   :  { %v5393_v43 = vadd.f32 %v2574_v38, %v2573_v1 }
 0x77a   :  { %v3464_v58 = vpop.eup %3463 }
 0x77b   :  { %2679 = vmatpush1.bf16.msra.mxu0 %v3617_v51  ;;  %2720 = vmatpush1.bf16.msra.mxu1 %v3618_v6  ;;  %3465 = vtanh.f32 %v5393_v43  ;;  %v5810_v51 = vld [vmem:[#allocation72_spill] sm:$0xff] }
 0x77c   :  { %2680 = vmatprep.subr.bf16.mxu0 %v3619_v14  ;;  %2721 = vmatprep.subr.bf16.mxu1 %v3620_v49 }
 0x77f   :  { %2681 = vmatpush1.bf16.msra.mxu0 %v3621_v10  ;;  %2722 = vmatpush1.bf16.msra.mxu1 %v3622_v3  ;;  %v5811_v10 = vld [vmem:[#allocation45_spill] sm:$0xff] }
 0x780   :  { %2682 = vmatprep.subr.bf16.mxu0 %v3623_v47  ;;  %2723 = vmatprep.subr.bf16.mxu1 %v3624_v12  ;;  %v5812_v47 = vld [vmem:[#allocation73_spill] sm:$0xff] }
 0x783   :  { %2683 = vmatpush1.bf16.msra.mxu0 %v3625_v48  ;;  %2724 = vmatpush1.bf16.msra.mxu1 %v3626_v56 }
 0x784   :  { %2684 = vmatprep.subr.bf16.mxu0 %v3627_v25  ;;  %2725 = vmatprep.subr.bf16.mxu1 %v3628_v2 }
 0x785   :  { %v3466_v62 = vpop.eup %3465 }
 0x786   :  { %v2577_v7 = vmul.f32 %v3466_v62, %v3464_v58 }
 0x787   :  { %2685 = vmatpush1.bf16.msra.mxu0 %v3629_v52  ;;  %2726 = vmatpush1.bf16.msra.mxu1 %v3630_v39 }
 0x788   :  { %v2669_v22 = vpack.c.bf16 %v2577_v7, %v2577_v7  ;;  %3108 = vmatprep.subr.bf16.mxu0 %v3632_v23 }
 0x78a   :  { %2703 = vmatmul.mubr.bf16.vlgmr.msra.gmra.mrb[84].mxu0 %v2669_v22  ;;  %2744 = vmatmul.mubr.bf16.vlgmr.msra.gmra.mrb[100].mxu1 %v2669_v22 }
 0x78b   :  { %3109 = vmatpush3.bf16.msra.mxu0 %v3235_v59  ;;  %3124 = vmatprep.mubr.msk.bf16.mxu0 %vm3633_vm1, %v3632_v23 }
 0x78c   :  { %3110 = vmatprep.subr.bf16.mxu0 %v3632_v23 }
 0x78f   :  { %3111 = vmatpush3.bf16.msra.mxu0 %v3236_v4 }
 0x790   :  { %3112 = vmatprep.subr.bf16.mxu0 %v3632_v23 }
 0x793   :  { %3113 = vmatpush3.bf16.msra.mxu0 %v3237_v5 }
 0x794   :  { %3114 = vmatprep.subr.bf16.mxu0 %v3632_v23 }
 0x797   :  { %3115 = vmatpush3.bf16.msra.mxu0 %v3238_v18 }
 0x798   :  { %3116 = vmatprep.subr.bf16.mxu0 %v3632_v23 }
 0x79b   :  { %3117 = vmatpush3.bf16.msra.mxu0 %v3239_v44 }
 0x79c   :  { %3118 = vmatprep.subr.bf16.mxu0 %v3632_v23 }
 0x79f   :  { %3119 = vmatpush3.bf16.msra.mxu0 %v3240_v8 }
 0x7a0   :  { %3120 = vmatprep.subr.bf16.mxu0 %v3632_v23 }
 0x7a3   :  { %3121 = vmatpush3.bf16.msra.mxu0 %v3241_v53 }
 0x7a4   :  { %3122 = vmatprep.subr.bf16.mxu0 %v3632_v23 }
 0x7a7   :  { %3123 = vmatpush3.bf16.msra.mxu0 %v3242_v37 }
 0x83d   :  { %v2621_v50 = vpop.f32.mrb[80].mxu0  ;;  %v2662_v41 = vpop.f32.mrb[96].mxu1 }
 0x83e   :  { %v2752_v33 = vadd.f32 %v2621_v50, %v5805_v57  ;;  %v2754_v36 = vadd.f32 %v2662_v41, %v5806_v46  ;;  %v2623_v54 = vpop.f32.mrb[81].mxu0  ;;  %v2664_v35 = vpop.f32.mrb[97].mxu1 }
 0x83f   :  { %v2753_v42 = vadd.f32 %v2623_v54, %v5807_v61  ;;  %v2755_v20 = vadd.f32 %v2664_v35, %v5808_v34  ;;  %v2625_v9 = vpop.f32.mrb[82].mxu0  ;;  %v2666_v11 = vpop.f32.mrb[98].mxu1  ;;  %v3090_v35 = vld [vmem:[%s5484_s6] ss:$0 sm:$0xff] }
 0x840   :  { %v3084_v13 = vmul.f32 -1.442695, %v2752_v33  ;;  %v2626_v15 = vpop.f32.mrb[83].mxu0  ;;  %v2667_v17 = vpop.f32.mrb[99].mxu1 }
 0x841   :  { %v3085_v45 = vmul.f32 -1.442695, %v2753_v42  ;;  %v3086_v19 = vmul.f32 -1.442695, %v2755_v20 }
 0x842   :  { %3467 = vpow2.f32 %v3084_v13 }
 0x843   :  { %3469 = vpow2.f32 %v3085_v45 }
 0x844   :  { %3471 = vpow2.f32 %v3086_v19 }
 0x845   :  { %3473 = vtanh.f32 %v2754_v36 }
 0x84c   :  { %v3468_v21 = vpop.eup %3467 }
 0x84d   :  { %v3470_v40 = vpop.eup %3469  ;;  %v2759_v60 = vadd.f32 1.0, %v3468_v21 }
 0x84e   :  { %v2765_v26 = vadd.f32 1.0, %v3470_v40  ;;  %v3472_v27 = vpop.eup %3471 }
 0x84f   :  { %3475 = vrcp.f32 %v2759_v60  ;;  %v3474_v28 = vpop.eup %3473  ;;  %v2772_v38 = vadd.f32 1.0, %v3472_v27 }
 0x850   :  { %3477 = vrcp.f32 %v2765_v26 }
 0x851   :  { %3479 = vrcp.f32 %v2772_v38 }
 0x859   :  { %v3476_v24 = vpop.eup %3475 }
 0x85a   :  { %v3478_v31 = vpop.eup %3477  ;;  %v2776_v32 = vmul.f32 %v3476_v24, %v3474_v28 }
 0x85b   :  { %v2775_v16 = vmul.f32 %v3478_v31, %v5335_v0  ;;  %v3480_v62 = vpop.eup %3479 }
 0x85d   :  { %v2777_v1 = vadd.f32 %v2776_v32, %v2775_v16  ;;  %v2704_v29 = vpop.f32.mrb[84].mxu0  ;;  %v2745_v55 = vpop.f32.mrb[100].mxu1 }
 0x85e   :  { %v2780_v63 = vadd.f32 %v2704_v29, %v5809_v30  ;;  %v2782_v6 = vadd.f32 %v2745_v55, %v5810_v51  ;;  %v2706_v14 = vpop.f32.mrb[85].mxu0  ;;  %v2747_v49 = vpop.f32.mrb[101].mxu1 }
 0x85f   :  { %3481 = vtanh.f32 %v2777_v1  ;;  %v2781_v3 = vadd.f32 %v2706_v14, %v5811_v10  ;;  %v2783_v12 = vadd.f32 %v2747_v49, %v5812_v47  ;;  %v2708_v48 = vpop.f32.mrb[86].mxu0  ;;  %v2749_v56 = vpop.f32.mrb[102].mxu1 }
 0x860   :  { %v3087_v58 = vmul.f32 -1.442695, %v2780_v63  ;;  %v2709_v25 = vpop.f32.mrb[87].mxu0  ;;  %v2750_v0 = vpop.f32.mrb[103].mxu1 }
 0x861   :  { %v3088_v2 = vmul.f32 -1.442695, %v2781_v3  ;;  %v3089_v52 = vmul.f32 -1.442695, %v2783_v12 }
 0x862   :  { %3483 = vpow2.f32 %v3087_v58 }
 0x863   :  { %3485 = vpow2.f32 %v3088_v2 }
 0x864   :  { %3487 = vpow2.f32 %v3089_v52 }
 0x865   :  { %3489 = vtanh.f32 %v2782_v6 }
 0x869   :  { %v3482_v7 = vpop.eup %3481 }
 0x86a   :  { %v2779_v39 = vmul.f32 %v3482_v7, %v3480_v62 }
 0x86c   :  { %v3484_v22 = vpop.eup %3483 }
 0x86d   :  { %v3486_v59 = vpop.eup %3485  ;;  %v2787_v23 = vadd.f32 1.0, %v3484_v22 }
 0x86e   :  { %v2793_v4 = vadd.f32 1.0, %v3486_v59  ;;  %v3488_v5 = vpop.eup %3487 }
 0x86f   :  { %3491 = vrcp.f32 %v2787_v23  ;;  %v3490_v18 = vpop.eup %3489  ;;  %v2800_v37 = vadd.f32 1.0, %v3488_v5 }
 0x870   :  { %3493 = vrcp.f32 %v2793_v4 }
 0x871   :  { %3495 = vrcp.f32 %v2800_v37 }
 0x879   :  { %v3492_v44 = vpop.eup %3491 }
 0x87a   :  { %v3494_v8 = vpop.eup %3493  ;;  %v2804_v53 = vmul.f32 %v3492_v44, %v3490_v18 }
 0x87b   :  { %v2803_v50 = vmul.f32 %v3494_v8, %v5393_v43  ;;  %v3496_v57 = vpop.eup %3495 }
 0x87d   :  { %v2805_v41 = vadd.f32 %v2804_v53, %v2803_v50 }
 0x87f   :  { %3497 = vtanh.f32 %v2805_v41 }
 0x889   :  { %v3498_v33 = vpop.eup %3497 }
 0x88a   :  { %v2807_v46 = vmul.f32 %v3498_v33, %v3496_v57 }
 0x88c   :  { %v2808_v36 = vadd.f32 %v2807_v46, %v2779_v39 }
 0x88e   :  { %v2809_v54 = vpack.c.bf16 %v2808_v36, %v2808_v36 }
 0x890   :  { %3125 = vmatmul.mubr.bf16.vlgmr.msra.gmra.mrb[88].mxu0 %v2809_v54 }
 0x963   :  { %v2915_v61 = vpop.f32.mrb[88].mxu0 }
 0x964   :  { %v2916_v42 = vadd.f32 %v3090_v35, %v2915_v61  ;;  %v3126_v34 = vpop.f32.mrb[89].mxu0 }
 0x965   :  { %v2918_v20 = vpop.f32.mrb[90].mxu0 }
 0x966   :  { %2921 = vmax.xlane.f32.xlu0 %v2916_v42  ;;  %v3127_v9 = vpop.f32.mrb[91].mxu0 }
 0x9f3   :  { %v2922_v43 = vpop.xlane.xlu0 %2921 }
 0x9f4   :  { %v2923_v11 = vsub.f32 %v2916_v42, %v2922_v43 }
 0x9f6   :  { %v2924_v13 = vmul.f32 1.442695, %v2923_v11 }
 0x9f8   :  { %3499 = vpow2.f32 %v2924_v13 }
 0xa02   :  { %v3500_v15 = vpop.eup %3499 }
 0xa03   :  { %2926 = vadd.xlane.f32.xlu0 %v3500_v15 }
 0xa90   :  { %v2927_v17 = vpop.xlane.xlu0 %2926 }
 0xa91   :  { %3501 = vrcp.f32 %v2927_v17 }
 0xa9b   :  { %v3502_v45 = vpop.eup %3501 }
 0xa9c   :  { %v2929_v19 = vmul.f32 %v3502_v45, %v3500_v15 }
 0xa9e   :  { %2930 = vst [vmem:[%s5485_s7] sm:$0xff] %v2929_v19 }

</bundles_post_ra>
